<compile_context>
chip_gen: v6e
topology: v6e:2x2x1
jax: 0.10.0
libtpu: 0.0.40
codegen_flags: <defaults>
</compile_context>

<pallas_src>
import functools

import jax
import jax.numpy as jnp
from jax.experimental import pallas as pl
from jax.experimental.pallas import tpu as pltpu


# ---------------------------------------------------------------------------
# Scaled-down HuBERT-large-like config (real values noted in comments).
# ---------------------------------------------------------------------------
CFG = dict(
    conv_dim=(32, 32, 32),       # hubert-large: (512,)*7
    conv_kernel=(10, 3, 3),      # hubert-large: (10,3,3,3,3,2,2)
    conv_stride=(5, 2, 2),       # hubert-large: (5,2,2,2,2,2,2)
    hidden_size=64,              # hubert-large: 1024  (== feature_len)
    num_heads=4,                 # hubert-large: 16
    intermediate_size=128,       # hubert-large: 4096
    num_layers=11,               # hidden_states[11] = output of encoder layer 10
    pos_conv_kernel=4,           # hubert-large: 128
    pos_conv_groups=2,           # hubert-large: 16
    layer_norm_eps=1e-5,
    head_hidden=48,              # regression head mid width (reference: 1024)
    dim_out=8,
)


def _round_up(v, m):
    return ((v + m - 1) // m) * m


# ---------------------------------------------------------------------------
# In-kernel helpers (all f32 elementwise math; bf16 only on MXU operands)
# ---------------------------------------------------------------------------
def _gelu(x):
    # TODO(synk): PyTorch/HF GELU is exact erf-GELU; tanh approximation used for
    # a TPU-friendly (EUP tanh) lowering.
    c = 0.7978845608028654
    return 0.5 * x * (1.0 + jnp.tanh(c * (x + 0.044715 * x * x * x)))


def _ln_rows(x, g, b, eps):
    mu = jnp.mean(x, axis=-1, keepdims=True)
    var = jnp.mean(jnp.square(x - mu), axis=-1, keepdims=True)
    return (x - mu) * jax.lax.rsqrt(var + eps) * g + b


# ---------------------------------------------------------------------------
# Kernel: one conv-feature-extractor layer (matmul + bias -> LN(C) -> GELU),
# row-tiled over the (B*T_out) axis.
# ---------------------------------------------------------------------------
def _conv_block_kernel(p_ref, w_ref, b_ref, g_ref, beta_ref, o_ref, *, eps):
    y = jnp.dot(p_ref[...], w_ref[...],
                preferred_element_type=jnp.float32) + b_ref[...]
    o_ref[...] = _gelu(_ln_rows(y, g_ref[...], beta_ref[...], eps))


def conv_block(patches, w, b, g, beta, eps, row_tile=256):
    m, kc = patches.shape
    n = w.shape[1]
    tm = min(row_tile, _round_up(m, 8))
    mp = _round_up(m, tm)
    if mp != m:
        patches = jnp.pad(patches, ((0, mp - m), (0, 0)))
    out = pl.pallas_call(
        functools.partial(_conv_block_kernel, eps=eps),
        out_shape=jax.ShapeDtypeStruct((mp, n), jnp.float32),
        grid=(mp // tm,),
        in_specs=[
            pl.BlockSpec((tm, kc), lambda i: (i, 0)),
            pl.BlockSpec((kc, n), lambda i: (0, 0)),
            pl.BlockSpec((1, n), lambda i: (0, 0)),
            pl.BlockSpec((1, n), lambda i: (0, 0)),
            pl.BlockSpec((1, n), lambda i: (0, 0)),
        ],
        out_specs=pl.BlockSpec((tm, n), lambda i: (i, 0)),
        compiler_params=pltpu.CompilerParams(dimension_semantics=("parallel",)),
    )(patches, w, b, g, beta)
    return out[:m]


# ---------------------------------------------------------------------------
# Kernel: feature projection (LN -> Linear), row-tiled.
# ---------------------------------------------------------------------------
def _feat_proj_kernel(x_ref, g_ref, beta_ref, w_ref, b_ref, o_ref, *, eps):
    xn = _ln_rows(x_ref[...], g_ref[...], beta_ref[...], eps)
    o_ref[...] = jnp.dot(xn.astype(jnp.bfloat16), w_ref[...],
                         preferred_element_type=jnp.float32) + b_ref[...]


def feat_proj(x, g, beta, w, b, eps, row_tile=512):
    m, c = x.shape
    n = w.shape[1]
    tm = min(row_tile, _round_up(m, 8))
    mp = _round_up(m, tm)
    if mp != m:
        x = jnp.pad(x, ((0, mp - m), (0, 0)))
    out = pl.pallas_call(
        functools.partial(_feat_proj_kernel, eps=eps),
        out_shape=jax.ShapeDtypeStruct((mp, n), jnp.float32),
        grid=(mp // tm,),
        in_specs=[
            pl.BlockSpec((tm, c), lambda i: (i, 0)),
            pl.BlockSpec((1, c), lambda i: (0, 0)),
            pl.BlockSpec((1, c), lambda i: (0, 0)),
            pl.BlockSpec((c, n), lambda i: (0, 0)),
            pl.BlockSpec((1, n), lambda i: (0, 0)),
        ],
        out_specs=pl.BlockSpec((tm, n), lambda i: (i, 0)),
        compiler_params=pltpu.CompilerParams(dimension_semantics=("parallel",)),
    )(x, g, beta, w, b)
    return out[:m]


# ---------------------------------------------------------------------------
# Kernel: grouped positional conv, in-kernel as Kp shifted (D, D) matmuls over a
# resident per-batch (Tp, D) block, + GELU + residual.  No host im2col (keeps
# HBM traffic at 1x instead of Kp x).
# TODO(synk): HF applies weight_norm to the pos-conv weight; omitted for this
# deterministic init (numerically equivalent to some unnormalized weight).
# ---------------------------------------------------------------------------
def _pos_conv_kernel(x_ref, w_ref, b_ref, o_ref, *, Kp, pad):
    x = x_ref[0]                                        # (Tp, D) f32
    Tp, D = x.shape
    acc = jnp.zeros((Tp, D), jnp.float32)
    for kk in range(Kp):                                # static taps
        s = kk - pad                                    # time shift of this tap
        if s == 0:
            xs = x
        elif s > 0:
            xs = jnp.concatenate(
                [x[s:, :], jnp.zeros((s, D), jnp.float32)], axis=0)
        else:
            xs = jnp.concatenate(
                [jnp.zeros((-s, D), jnp.float32), x[:s, :]], axis=0)
        acc = acc + jnp.dot(xs.astype(jnp.bfloat16), w_ref[kk],
                            preferred_element_type=jnp.float32)
    o_ref[0] = x + _gelu(acc + b_ref[...])


def pos_conv(h, w, b, *, Kp, pad):
    B, Tp, D = h.shape
    return pl.pallas_call(
        functools.partial(_pos_conv_kernel, Kp=Kp, pad=pad),
        out_shape=jax.ShapeDtypeStruct((B, Tp, D), jnp.float32),
        grid=(B,),
        in_specs=[
            pl.BlockSpec((1, Tp, D), lambda bb: (bb, 0, 0)),
            pl.BlockSpec((Kp, D, D), lambda bb: (0, 0, 0)),
            pl.BlockSpec((1, D), lambda bb: (0, 0)),
        ],
        out_specs=pl.BlockSpec((1, Tp, D), lambda bb: (bb, 0, 0)),
        compiler_params=pltpu.CompilerParams(dimension_semantics=("parallel",)),
    )(h, w, b)


# ---------------------------------------------------------------------------
# Kernel: the full pre-LN encoder stack + masked mean pool + regression head.
# ONE pallas_call, grid=(B, L): the per-batch (Tp, D) activation stays resident
# in a VMEM scratch across all L layer steps; the pooled head runs only on the
# last layer step.  Batch axis is "parallel" (v7x megacore), layer axis is
# "arbitrary" (sequential, weights streamed per step).
# ---------------------------------------------------------------------------
def _encoder_kernel(h0_ref, kbias_ref,
                    ln1g_ref, ln1b_ref, qkvw_ref, qkvb_ref, ow_ref, ob_ref,
                    ln2g_ref, ln2b_ref, ffiw_ref, ffib_ref, ffow_ref, ffob_ref,
                    h1w_ref, h1b_ref, h2w_ref, h2b_ref,
                    out_ref, acc_ref, *, H, dh, D, T, eps, scale):
    l = pl.program_id(1)

    @pl.when(l == 0)
    def _():
        acc_ref[...] = h0_ref[0]

    x = acc_ref[...]                                    # (Tp, D) f32 residual stream

    # --- self-attention block (pre-LN) ---
    xn = _ln_rows(x, ln1g_ref[0], ln1b_ref[0], eps).astype(jnp.bfloat16)
    qkv = jnp.dot(xn, qkvw_ref[0],
                  preferred_element_type=jnp.float32) + qkvb_ref[0]   # (Tp, 3D)
    qkv16 = qkv.astype(jnp.bfloat16)
    kbias = kbias_ref[...]                              # (Tp, Tp) key-padding bias

    ctx_heads = []
    for h in range(H):                                  # static unroll (H small)
        q = qkv16[:, h * dh:(h + 1) * dh]
        k = qkv16[:, D + h * dh:D + (h + 1) * dh]
        v = qkv16[:, 2 * D + h * dh:2 * D + (h + 1) * dh]
        s = jax.lax.dot_general(q, k, (((1,), (1,)), ((), ())),
                                preferred_element_type=jnp.float32) * scale + kbias
        m = jnp.max(s, axis=-1, keepdims=True)
        p = jnp.exp(s - m)
        p = p * pl.reciprocal(jnp.sum(p, axis=-1, keepdims=True), approx=True)
        ctx_heads.append(jnp.dot(p.astype(jnp.bfloat16), v,
                                 preferred_element_type=jnp.float32))
    ctx = jnp.concatenate(ctx_heads, axis=-1).astype(jnp.bfloat16)    # (Tp, D)
    x = x + jnp.dot(ctx, ow_ref[0],
                    preferred_element_type=jnp.float32) + ob_ref[0]

    # --- feed-forward block (pre-LN) ---
    xn2 = _ln_rows(x, ln2g_ref[0], ln2b_ref[0], eps).astype(jnp.bfloat16)
    ff = _gelu(jnp.dot(xn2, ffiw_ref[0],
                       preferred_element_type=jnp.float32) + ffib_ref[0])
    y = x + jnp.dot(ff.astype(jnp.bfloat16), ffow_ref[0],
                    preferred_element_type=jnp.float32) + ffob_ref[0]
    acc_ref[...] = y                                    # single VMEM write per layer

    # --- last layer: masked mean over real time + Linear -> Tanh -> Linear ---
    @pl.when(l == pl.num_programs(1) - 1)
    def _():
        Tp = y.shape[0]
        tidx = jax.lax.broadcasted_iota(jnp.int32, (Tp, D), 0)
        masked = jnp.where(tidx < T, y, 0.0)
        pooled = jnp.sum(masked, axis=0, keepdims=True) * (1.0 / T)   # (1, D)
        z = jnp.tanh(jnp.dot(pooled.astype(jnp.bfloat16), h1w_ref[...],
                             preferred_element_type=jnp.float32) + h1b_ref[...])
        o = jnp.dot(z.astype(jnp.bfloat16), h2w_ref[...],
                    preferred_element_type=jnp.float32) + h2b_ref[...]
        out_ref[0] = jnp.broadcast_to(o, (8, o.shape[-1]))


def encoder_head(h3d, kbias, enc, h1_w, h1_b, h2_w, h2_b, *, B, Tp, T, H, dh, eps):
    L, _, D = enc["ln1_g"].shape
    F = enc["ffi_w"].shape[-1]
    hid = h1_w.shape[1]
    n_out = h2_w.shape[1]
    scale = dh ** -0.5

    wmap = lambda b, l: (l, 0, 0)      # per-layer stacked weights
    cmap = lambda b, l: (0, 0)         # constant (head weights, key bias)

    out = pl.pallas_call(
        functools.partial(_encoder_kernel, H=H, dh=dh, D=D, T=T, eps=eps,
                          scale=scale),
        out_shape=jax.ShapeDtypeStruct((B, 8, n_out), jnp.float32),
        grid=(B, L),
        in_specs=[
            pl.BlockSpec((1, Tp, D), lambda b, l: (b, 0, 0)),   # h0 (per batch)
            pl.BlockSpec((Tp, Tp), cmap),                       # key-padding bias
            pl.BlockSpec((1, 1, D), wmap),                      # ln1_g
            pl.BlockSpec((1, 1, D), wmap),                      # ln1_b
            pl.BlockSpec((1, D, 3 * D), wmap),                  # fused qkv_w
            pl.BlockSpec((1, 1, 3 * D), wmap),                  # fused qkv_b
            pl.BlockSpec((1, D, D), wmap),                      # o_w
            pl.BlockSpec((1, 1, D), wmap),                      # o_b
            pl.BlockSpec((1, 1, D), wmap),                      # ln2_g
            pl.BlockSpec((1, 1, D), wmap),                      # ln2_b
            pl.BlockSpec((1, D, F), wmap),                      # ffi_w
            pl.BlockSpec((1, 1, F), wmap),                      # ffi_b
            pl.BlockSpec((1, F, D), wmap),                      # ffo_w
            pl.BlockSpec((1, 1, D), wmap),                      # ffo_b
            pl.BlockSpec((D, hid), cmap),                       # head1 w
            pl.BlockSpec((1, hid), cmap),                       # head1 b
            pl.BlockSpec((hid, n_out), cmap),                   # head2 w
            pl.BlockSpec((1, n_out), cmap),                     # head2 b
        ],
        out_specs=pl.BlockSpec((1, 8, n_out), lambda b, l: (b, 0, 0)),
        scratch_shapes=[pltpu.VMEM((Tp, D), jnp.float32)],      # resident activation
        compiler_params=pltpu.CompilerParams(
            dimension_semantics=("parallel", "arbitrary")),
    )(h3d, kbias,
      enc["ln1_g"], enc["ln1_b"], enc["qkv_w"], enc["qkv_b"],
      enc["o_w"], enc["o_b"], enc["ln2_g"], enc["ln2_b"],
      enc["ffi_w"], enc["ffi_b"], enc["ffo_w"], enc["ffo_b"],
      h1_w, h1_b, h2_w, h2_b)
    return out[:, 0, :]                                          # (B, dim_out)


# ---------------------------------------------------------------------------
# Glue: channels-last im2col for Conv1d lowered to a matmul (lane-dense).
# ---------------------------------------------------------------------------
def im2col_nwc(x, kernel, stride):
    """x: (B, T, C) -> (B*T_out, kernel*C) patches with (k, c) flattening."""
    b, t, c = x.shape
    t_out = (t - kernel) // stride + 1
    starts = jnp.arange(t_out) * stride
    idx = starts[:, None] + jnp.arange(kernel)[None, :]          # (T_out, K)
    patches = x[:, idx, :]                                       # (B, T_out, K, C)
    return patches.reshape(b * t_out, kernel * c), t_out


# ---------------------------------------------------------------------------
# Deterministic parameter init (weights bf16 for MXU, biases / LN params f32)
# ---------------------------------------------------------------------------
def init_params(key):
    cfg = CFG
    D = cfg["hidden_size"]
    F = cfg["intermediate_size"]
    L = cfg["num_layers"]
    keys = iter(jax.random.split(key, 64))

    def nrm(shape, s=0.02):
        return s * jax.random.normal(next(keys), shape, jnp.float32)

    p = {}

    # conv feature extractor ("layer" norm mode).  Weight layout (K*C_in, C_out)
    # with (k, c) flattening — consistent with im2col_nwc (random init, no ckpt).
    convs = []
    c_in = 1
    for c_out, k in zip(cfg["conv_dim"], cfg["conv_kernel"]):
        convs.append(dict(
            w=nrm((k * c_in, c_out), 0.05).astype(jnp.bfloat16),
            b=nrm((1, c_out), 0.01),
            g=jnp.ones((1, c_out), jnp.float32),
            beta=jnp.zeros((1, c_out), jnp.float32),
        ))
        c_in = c_out
    p["conv"] = convs

    # feature projection: LN + Linear(conv_dim[-1] -> D)
    c_last = cfg["conv_dim"][-1]
    p["fp_ln_g"] = jnp.ones((1, c_last), jnp.float32)
    p["fp_ln_b"] = jnp.zeros((1, c_last), jnp.float32)
    p["fp_w"] = nrm((c_last, D)).astype(jnp.bfloat16)
    p["fp_b"] = nrm((1, D), 0.01)

    # grouped positional conv -> per-tap block-diagonal dense weights (Kp, D, D)
    G, Cg, Kp = cfg["pos_conv_groups"], D // cfg["pos_conv_groups"], cfg["pos_conv_kernel"]
    W = jnp.zeros((Kp, D, D), jnp.float32)
    for g in range(G):
        wg = nrm((Kp, Cg, Cg))
        W = W.at[:, g * Cg:(g + 1) * Cg, g * Cg:(g + 1) * Cg].set(wg)
    p["pos_w"] = W.astype(jnp.bfloat16)
    p["pos_b"] = nrm((1, D), 0.01)

    # encoder layers, stacked over L for the single fused pallas_call.
    # qkv_w columns: [0:D]=Q, [D:2D]=K, [2D:3D]=V.
    p["enc"] = dict(
        ln1_g=jnp.ones((L, 1, D), jnp.float32),
        ln1_b=jnp.zeros((L, 1, D), jnp.float32),
        qkv_w=nrm((L, D, 3 * D)).astype(jnp.bfloat16),
        qkv_b=nrm((L, 1, 3 * D), 0.01),
        o_w=nrm((L, D, D)).astype(jnp.bfloat16),
        o_b=nrm((L, 1, D), 0.01),
        ln2_g=jnp.ones((L, 1, D), jnp.float32),
        ln2_b=jnp.zeros((L, 1, D), jnp.float32),
        ffi_w=nrm((L, D, F)).astype(jnp.bfloat16),
        ffi_b=nrm((L, 1, F), 0.01),
        ffo_w=nrm((L, F, D)).astype(jnp.bfloat16),
        ffo_b=nrm((L, 1, D), 0.01),
    )

    # regression head: Dropout -> Linear(D, head_hidden) -> Tanh -> Dropout -> Linear
    # TODO(synk): reference declares nn.Linear(1204, dim_out) after a 1024-wide Tanh
    # (a typo that would fail in PyTorch); a consistent width (head_hidden) is used.
    p["h1_w"] = nrm((D, cfg["head_hidden"])).astype(jnp.bfloat16)
    p["h1_b"] = nrm((1, cfg["head_hidden"]), 0.01)
    p["h2_w"] = nrm((cfg["head_hidden"], cfg["dim_out"])).astype(jnp.bfloat16)
    p["h2_b"] = nrm((1, cfg["dim_out"]), 0.01)
    return p


# ---------------------------------------------------------------------------
# Forward pass (6 pallas_call launches total)
# ---------------------------------------------------------------------------
def hubert_forward(params, x):
    cfg = CFG
    B = x.shape[0]
    D = cfg["hidden_size"]
    H = cfg["num_heads"]
    dh = D // H
    eps = cfg["layer_norm_eps"]

    # 1. processor normalization (zero-mean / unit-var per utterance) in plain XLA
    x = x.astype(jnp.float32)
    mu = jnp.mean(x, axis=-1, keepdims=True)
    var = jnp.mean(jnp.square(x - mu), axis=-1, keepdims=True)
    feats = (x - mu) * jax.lax.rsqrt(var + 1e-7)

    # 2. conv feature extractor, channels-last (B, T, C); bf16 patches into the MXU
    h = feats[:, :, None]
    for lp, k, s in zip(params["conv"], cfg["conv_kernel"], cfg["conv_stride"]):
        patches, t_out = im2col_nwc(h, k, s)
        y = conv_block(patches.astype(jnp.bfloat16),
                       lp["w"], lp["b"], lp["g"], lp["beta"], eps)
        h = y.reshape(B, t_out, -1)
    T = h.shape[1]
    c_last = h.shape[2]

    # 3. feature projection (LN + Linear), one fused row-tiled kernel
    h = feat_proj(h.reshape(B * T, c_last), params["fp_ln_g"], params["fp_ln_b"],
                  params["fp_w"], params["fp_b"], eps).reshape(B, T, D)

    # 4. pad time to a sublane-aligned Tp (zeros ≡ the conv 'same' padding), then
    #    grouped positional conv (in-kernel shifted matmuls) + GELU + residual.
    Tp = _round_up(T, 8)
    h = jnp.pad(h, ((0, 0), (0, Tp - T), (0, 0)))
    Kp = cfg["pos_conv_kernel"]
    h = pos_conv(h, params["pos_w"], params["pos_b"], Kp=Kp, pad=Kp // 2)

    # 5+6. fused 11-layer pre-LN encoder (hidden_states[11] == output of layer 10,
    #      no final LN) + masked mean over real time + regression head.
    kbias = jnp.broadcast_to(
        jnp.where(jnp.arange(Tp) < T, 0.0, -1e9)[None, :], (Tp, Tp)
    ).astype(jnp.float32)
    out = encoder_head(h, kbias, params["enc"],
                       params["h1_w"], params["h1_b"],
                       params["h2_w"], params["h2_b"],
                       B=B, Tp=Tp, T=T, H=H, dh=dh, eps=eps)
    return out                                                   # (B, dim_out)


if __name__ == "__main__":
    key = jax.random.PRNGKey(0)
    pkey, xkey = jax.random.split(key)
    params = init_params(pkey)
    x = jax.random.normal(xkey, (2, 400), jnp.float32)   # (B, T_raw) raw audio

    fwd = jax.jit(hubert_forward)
    out = jax.block_until_ready(fwd(params, x))
    assert out.shape == (2, CFG["dim_out"]), out.shape
    assert bool(jnp.all(jnp.isfinite(out)))
    print("KERNEL_OK")
</pallas_src>

<mosaic_0001>
module attributes {stable_mosaic.version = 11 : i64} {
  func.func @_conv_block_kernel(%arg0: i32, %arg1: memref<160x10xbf16, #tpu.memory_space<vmem>>, %arg2: memref<10x32xbf16, #tpu.memory_space<vmem>>, %arg3: memref<1x32xf32, #tpu.memory_space<vmem>>, %arg4: memref<1x32xf32, #tpu.memory_space<vmem>>, %arg5: memref<1x32xf32, #tpu.memory_space<vmem>>, %arg6: memref<160x32xf32, #tpu.memory_space<vmem>>) attributes {dimension_semantics = [#tpu.dimension_semantics<parallel>], iteration_bounds = array<i64: 1>, scalar_prefetch = 0 : i64, scratch_operands = 0 : i64, tpu.core_type = #tpu.core_type<tc>, window_params = [{transform_indices = @transform_0, window_bounds = array<i64: 160, 10>}, {pipeline_mode = #tpu.pipeline_mode<synchronous>, transform_indices = @transform_1, window_bounds = array<i64: 10, 32>}, {pipeline_mode = #tpu.pipeline_mode<synchronous>, transform_indices = @transform_2, window_bounds = array<i64: 1, 32>}, {pipeline_mode = #tpu.pipeline_mode<synchronous>, transform_indices = @transform_3, window_bounds = array<i64: 1, 32>}, {pipeline_mode = #tpu.pipeline_mode<synchronous>, transform_indices = @transform_4, window_bounds = array<i64: 1, 32>}, {transform_indices = @transform_5, window_bounds = array<i64: 160, 32>}]} {
    %c0 = arith.constant 0 : index
    %c0_0 = arith.constant 0 : index
    %0 = vector.load %arg1[%c0, %c0_0] : memref<160x10xbf16, #tpu.memory_space<vmem>>, vector<160x10xbf16>
    %c0_1 = arith.constant 0 : index
    %c0_2 = arith.constant 0 : index
    %1 = vector.load %arg2[%c0_1, %c0_2] : memref<10x32xbf16, #tpu.memory_space<vmem>>, vector<10x32xbf16>
    %cst = arith.constant dense<0.000000e+00> : vector<160x32xf32>
    %2 = tpu.matmul %0, %1, %cst {dimension_numbers = #tpu.dot_dimension_numbers<[1], [0], [0], [1], [0, 0, 1, 1], [], []>} : vector<160x10xbf16>, vector<10x32xbf16>, vector<160x32xf32> -> vector<160x32xf32>
    %c0_3 = arith.constant 0 : index
    %c0_4 = arith.constant 0 : index
    %3 = vector.load %arg3[%c0_3, %c0_4] : memref<1x32xf32, #tpu.memory_space<vmem>>, vector<1x32xf32>
    %4 = vector.broadcast %3 : vector<1x32xf32> to vector<160x32xf32>
    %5 = arith.addf %2, %4 : vector<160x32xf32>
    %c0_5 = arith.constant 0 : index
    %c0_6 = arith.constant 0 : index
    %6 = vector.load %arg4[%c0_5, %c0_6] : memref<1x32xf32, #tpu.memory_space<vmem>>, vector<1x32xf32>
    %c0_7 = arith.constant 0 : index
    %c0_8 = arith.constant 0 : index
    %7 = vector.load %arg5[%c0_7, %c0_8] : memref<1x32xf32, #tpu.memory_space<vmem>>, vector<1x32xf32>
    %cst_9 = arith.constant dense<0.000000e+00> : vector<160xf32>
    %8 = vector.multi_reduction <add>, %5, %cst_9 [1] : vector<160x32xf32> to vector<160xf32>
    %9 = vector.shape_cast %8 : vector<160xf32> to vector<160x1xf32>
    %cst_10 = arith.constant 3.200000e+01 : f32
    %10 = vector.broadcast %cst_10 : f32 to vector<160x1xf32>
    %11 = arith.divf %9, %10 : vector<160x1xf32>
    %12 = vector.broadcast %11 : vector<160x1xf32> to vector<160x32xf32>
    %13 = arith.subf %5, %12 : vector<160x32xf32>
    %14 = arith.mulf %13, %13 : vector<160x32xf32>
    %cst_11 = arith.constant dense<0.000000e+00> : vector<160xf32>
    %15 = vector.multi_reduction <add>, %14, %cst_11 [1] : vector<160x32xf32> to vector<160xf32>
    %16 = vector.shape_cast %15 : vector<160xf32> to vector<160x1xf32>
    %cst_12 = arith.constant 3.200000e+01 : f32
    %17 = vector.broadcast %cst_12 : f32 to vector<160x1xf32>
    %18 = arith.divf %16, %17 : vector<160x1xf32>
    %19 = vector.broadcast %11 : vector<160x1xf32> to vector<160x32xf32>
    %20 = arith.subf %5, %19 : vector<160x32xf32>
    %cst_13 = arith.constant 9.99999974E-6 : f32
    %21 = vector.broadcast %cst_13 : f32 to vector<160x1xf32>
    %22 = arith.addf %18, %21 : vector<160x1xf32>
    %23 = math.rsqrt %22 : vector<160x1xf32>
    %24 = vector.broadcast %23 : vector<160x1xf32> to vector<160x32xf32>
    %25 = arith.mulf %20, %24 : vector<160x32xf32>
    %26 = vector.broadcast %6 : vector<1x32xf32> to vector<160x32xf32>
    %27 = arith.mulf %25, %26 : vector<160x32xf32>
    %28 = vector.broadcast %7 : vector<1x32xf32> to vector<160x32xf32>
    %29 = arith.addf %27, %28 : vector<160x32xf32>
    %cst_14 = arith.constant 5.000000e-01 : f32
    %30 = vector.broadcast %cst_14 : f32 to vector<160x32xf32>
    %31 = arith.mulf %30, %29 : vector<160x32xf32>
    %cst_15 = arith.constant 4.471500e-02 : f32
    %32 = vector.broadcast %cst_15 : f32 to vector<160x32xf32>
    %33 = arith.mulf %32, %29 : vector<160x32xf32>
    %34 = arith.mulf %33, %29 : vector<160x32xf32>
    %35 = arith.mulf %34, %29 : vector<160x32xf32>
    %36 = arith.addf %29, %35 : vector<160x32xf32>
    %cst_16 = arith.constant 0.797884583 : f32
    %37 = vector.broadcast %cst_16 : f32 to vector<160x32xf32>
    %38 = arith.mulf %37, %36 : vector<160x32xf32>
    %39 = math.tanh %38 : vector<160x32xf32>
    %cst_17 = arith.constant 1.000000e+00 : f32
    %40 = vector.broadcast %cst_17 : f32 to vector<160x32xf32>
    %41 = arith.addf %40, %39 : vector<160x32xf32>
    %42 = arith.mulf %31, %41 : vector<160x32xf32>
    %c0_18 = arith.constant 0 : index
    %c0_19 = arith.constant 0 : index
    %43 = vector.load %arg6[%c0_18, %c0_19] : memref<160x32xf32, #tpu.memory_space<vmem>>, vector<160x32xf32>
    tpu.vector_store %arg6[%c0_18, %c0_19], %42 {strides = array<i32>} : memref<160x32xf32, #tpu.memory_space<vmem>>, vector<160x32xf32>,
    return
  }
  func.func @transform_0(%arg0: i32) -> (i32, i32) {
    %c0_i32 = arith.constant 0 : i32
    %c0_i32_0 = arith.constant 0 : i32
    return %arg0, %c0_i32 : i32, i32
  }
  func.func @transform_1(%arg0: i32) -> (i32, i32) {
    %c0_i32 = arith.constant 0 : i32
    %c0_i32_0 = arith.constant 0 : i32
    %c0_i32_1 = arith.constant 0 : i32
    return %c0_i32, %c0_i32_0 : i32, i32
  }
  func.func @transform_2(%arg0: i32) -> (i32, i32) {
    %c0_i32 = arith.constant 0 : i32
    %c0_i32_0 = arith.constant 0 : i32
    %c0_i32_1 = arith.constant 0 : i32
    return %c0_i32, %c0_i32_0 : i32, i32
  }
  func.func @transform_3(%arg0: i32) -> (i32, i32) {
    %c0_i32 = arith.constant 0 : i32
    %c0_i32_0 = arith.constant 0 : i32
    %c0_i32_1 = arith.constant 0 : i32
    return %c0_i32, %c0_i32_0 : i32, i32
  }
  func.func @transform_4(%arg0: i32) -> (i32, i32) {
    %c0_i32 = arith.constant 0 : i32
    %c0_i32_0 = arith.constant 0 : i32
    %c0_i32_1 = arith.constant 0 : i32
    return %c0_i32, %c0_i32_0 : i32, i32
  }
  func.func @transform_5(%arg0: i32) -> (i32, i32) {
    %c0_i32 = arith.constant 0 : i32
    %c0_i32_0 = arith.constant 0 : i32
    return %arg0, %c0_i32 : i32, i32
  }
}

module attributes {stable_mosaic.version = 11 : i64} {
  func.func @_conv_block_kernel(%arg0: i32, %arg1: memref<80x96xbf16, #tpu.memory_space<vmem>>, %arg2: memref<96x32xbf16, #tpu.memory_space<vmem>>, %arg3: memref<1x32xf32, #tpu.memory_space<vmem>>, %arg4: memref<1x32xf32, #tpu.memory_space<vmem>>, %arg5: memref<1x32xf32, #tpu.memory_space<vmem>>, %arg6: memref<80x32xf32, #tpu.memory_space<vmem>>) attributes {dimension_semantics = [#tpu.dimension_semantics<parallel>], iteration_bounds = array<i64: 1>, scalar_prefetch = 0 : i64, scratch_operands = 0 : i64, tpu.core_type = #tpu.core_type<tc>, window_params = [{transform_indices = @transform_0, window_bounds = array<i64: 80, 96>}, {pipeline_mode = #tpu.pipeline_mode<synchronous>, transform_indices = @transform_1, window_bounds = array<i64: 96, 32>}, {pipeline_mode = #tpu.pipeline_mode<synchronous>, transform_indices = @transform_2, window_bounds = array<i64: 1, 32>}, {pipeline_mode = #tpu.pipeline_mode<synchronous>, transform_indices = @transform_3, window_bounds = array<i64: 1, 32>}, {pipeline_mode = #tpu.pipeline_mode<synchronous>, transform_indices = @transform_4, window_bounds = array<i64: 1, 32>}, {transform_indices = @transform_5, window_bounds = array<i64: 80, 32>}]} {
    %c0 = arith.constant 0 : index
    %c0_0 = arith.constant 0 : index
    %0 = vector.load %arg1[%c0, %c0_0] : memref<80x96xbf16, #tpu.memory_space<vmem>>, vector<80x96xbf16>
    %c0_1 = arith.constant 0 : index
    %c0_2 = arith.constant 0 : index
    %1 = vector.load %arg2[%c0_1, %c0_2] : memref<96x32xbf16, #tpu.memory_space<vmem>>, vector<96x32xbf16>
    %cst = arith.constant dense<0.000000e+00> : vector<80x32xf32>
    %2 = tpu.matmul %0, %1, %cst {dimension_numbers = #tpu.dot_dimension_numbers<[1], [0], [0], [1], [0, 0, 1, 1], [], []>} : vector<80x96xbf16>, vector<96x32xbf16>, vector<80x32xf32> -> vector<80x32xf32>
    %c0_3 = arith.constant 0 : index
    %c0_4 = arith.constant 0 : index
    %3 = vector.load %arg3[%c0_3, %c0_4] : memref<1x32xf32, #tpu.memory_space<vmem>>, vector<1x32xf32>
    %4 = vector.broadcast %3 : vector<1x32xf32> to vector<80x32xf32>
    %5 = arith.addf %2, %4 : vector<80x32xf32>
    %c0_5 = arith.constant 0 : index
    %c0_6 = arith.constant 0 : index
    %6 = vector.load %arg4[%c0_5, %c0_6] : memref<1x32xf32, #tpu.memory_space<vmem>>, vector<1x32xf32>
    %c0_7 = arith.constant 0 : index
    %c0_8 = arith.constant 0 : index
    %7 = vector.load %arg5[%c0_7, %c0_8] : memref<1x32xf32, #tpu.memory_space<vmem>>, vector<1x32xf32>
    %cst_9 = arith.constant dense<0.000000e+00> : vector<80xf32>
    %8 = vector.multi_reduction <add>, %5, %cst_9 [1] : vector<80x32xf32> to vector<80xf32>
    %9 = vector.shape_cast %8 : vector<80xf32> to vector<80x1xf32>
    %cst_10 = arith.constant 3.200000e+01 : f32
    %10 = vector.broadcast %cst_10 : f32 to vector<80x1xf32>
    %11 = arith.divf %9, %10 : vector<80x1xf32>
    %12 = vector.broadcast %11 : vector<80x1xf32> to vector<80x32xf32>
    %13 = arith.subf %5, %12 : vector<80x32xf32>
    %14 = arith.mulf %13, %13 : vector<80x32xf32>
    %cst_11 = arith.constant dense<0.000000e+00> : vector<80xf32>
    %15 = vector.multi_reduction <add>, %14, %cst_11 [1] : vector<80x32xf32> to vector<80xf32>
    %16 = vector.shape_cast %15 : vector<80xf32> to vector<80x1xf32>
    %cst_12 = arith.constant 3.200000e+01 : f32
    %17 = vector.broadcast %cst_12 : f32 to vector<80x1xf32>
    %18 = arith.divf %16, %17 : vector<80x1xf32>
    %19 = vector.broadcast %11 : vector<80x1xf32> to vector<80x32xf32>
    %20 = arith.subf %5, %19 : vector<80x32xf32>
    %cst_13 = arith.constant 9.99999974E-6 : f32
    %21 = vector.broadcast %cst_13 : f32 to vector<80x1xf32>
    %22 = arith.addf %18, %21 : vector<80x1xf32>
    %23 = math.rsqrt %22 : vector<80x1xf32>
    %24 = vector.broadcast %23 : vector<80x1xf32> to vector<80x32xf32>
    %25 = arith.mulf %20, %24 : vector<80x32xf32>
    %26 = vector.broadcast %6 : vector<1x32xf32> to vector<80x32xf32>
    %27 = arith.mulf %25, %26 : vector<80x32xf32>
    %28 = vector.broadcast %7 : vector<1x32xf32> to vector<80x32xf32>
    %29 = arith.addf %27, %28 : vector<80x32xf32>
    %cst_14 = arith.constant 5.000000e-01 : f32
    %30 = vector.broadcast %cst_14 : f32 to vector<80x32xf32>
    %31 = arith.mulf %30, %29 : vector<80x32xf32>
    %cst_15 = arith.constant 4.471500e-02 : f32
    %32 = vector.broadcast %cst_15 : f32 to vector<80x32xf32>
    %33 = arith.mulf %32, %29 : vector<80x32xf32>
    %34 = arith.mulf %33, %29 : vector<80x32xf32>
    %35 = arith.mulf %34, %29 : vector<80x32xf32>
    %36 = arith.addf %29, %35 : vector<80x32xf32>
    %cst_16 = arith.constant 0.797884583 : f32
    %37 = vector.broadcast %cst_16 : f32 to vector<80x32xf32>
    %38 = arith.mulf %37, %36 : vector<80x32xf32>
    %39 = math.tanh %38 : vector<80x32xf32>
    %cst_17 = arith.constant 1.000000e+00 : f32
    %40 = vector.broadcast %cst_17 : f32 to vector<80x32xf32>
    %41 = arith.addf %40, %39 : vector<80x32xf32>
    %42 = arith.mulf %31, %41 : vector<80x32xf32>
    %c0_18 = arith.constant 0 : index
    %c0_19 = arith.constant 0 : index
    %43 = vector.load %arg6[%c0_18, %c0_19] : memref<80x32xf32, #tpu.memory_space<vmem>>, vector<80x32xf32>
    tpu.vector_store %arg6[%c0_18, %c0_19], %42 {strides = array<i32>} : memref<80x32xf32, #tpu.memory_space<vmem>>, vector<80x32xf32>,
    return
  }
  func.func @transform_0(%arg0: i32) -> (i32, i32) {
    %c0_i32 = arith.constant 0 : i32
    %c0_i32_0 = arith.constant 0 : i32
    return %arg0, %c0_i32 : i32, i32
  }
  func.func @transform_1(%arg0: i32) -> (i32, i32) {
    %c0_i32 = arith.constant 0 : i32
    %c0_i32_0 = arith.constant 0 : i32
    %c0_i32_1 = arith.constant 0 : i32
    return %c0_i32, %c0_i32_0 : i32, i32
  }
  func.func @transform_2(%arg0: i32) -> (i32, i32) {
    %c0_i32 = arith.constant 0 : i32
    %c0_i32_0 = arith.constant 0 : i32
    %c0_i32_1 = arith.constant 0 : i32
    return %c0_i32, %c0_i32_0 : i32, i32
  }
  func.func @transform_3(%arg0: i32) -> (i32, i32) {
    %c0_i32 = arith.constant 0 : i32
    %c0_i32_0 = arith.constant 0 : i32
    %c0_i32_1 = arith.constant 0 : i32
    return %c0_i32, %c0_i32_0 : i32, i32
  }
  func.func @transform_4(%arg0: i32) -> (i32, i32) {
    %c0_i32 = arith.constant 0 : i32
    %c0_i32_0 = arith.constant 0 : i32
    %c0_i32_1 = arith.constant 0 : i32
    return %c0_i32, %c0_i32_0 : i32, i32
  }
  func.func @transform_5(%arg0: i32) -> (i32, i32) {
    %c0_i32 = arith.constant 0 : i32
    %c0_i32_0 = arith.constant 0 : i32
    return %arg0, %c0_i32 : i32, i32
  }
}

module attributes {stable_mosaic.version = 11 : i64} {
  func.func @_feat_proj_kernel(%arg0: i32, %arg1: memref<40x32xf32, #tpu.memory_space<vmem>>, %arg2: memref<1x32xf32, #tpu.memory_space<vmem>>, %arg3: memref<1x32xf32, #tpu.memory_space<vmem>>, %arg4: memref<32x64xbf16, #tpu.memory_space<vmem>>, %arg5: memref<1x64xf32, #tpu.memory_space<vmem>>, %arg6: memref<40x64xf32, #tpu.memory_space<vmem>>) attributes {dimension_semantics = [#tpu.dimension_semantics<parallel>], iteration_bounds = array<i64: 1>, scalar_prefetch = 0 : i64, scratch_operands = 0 : i64, tpu.core_type = #tpu.core_type<tc>, window_params = [{transform_indices = @transform_0, window_bounds = array<i64: 40, 32>}, {pipeline_mode = #tpu.pipeline_mode<synchronous>, transform_indices = @transform_1, window_bounds = array<i64: 1, 32>}, {pipeline_mode = #tpu.pipeline_mode<synchronous>, transform_indices = @transform_2, window_bounds = array<i64: 1, 32>}, {pipeline_mode = #tpu.pipeline_mode<synchronous>, transform_indices = @transform_3, window_bounds = array<i64: 32, 64>}, {pipeline_mode = #tpu.pipeline_mode<synchronous>, transform_indices = @transform_4, window_bounds = array<i64: 1, 64>}, {transform_indices = @transform_5, window_bounds = array<i64: 40, 64>}]} {
    %c0 = arith.constant 0 : index
    %c0_0 = arith.constant 0 : index
    %0 = vector.load %arg1[%c0, %c0_0] : memref<40x32xf32, #tpu.memory_space<vmem>>, vector<40x32xf32>
    %c0_1 = arith.constant 0 : index
    %c0_2 = arith.constant 0 : index
    %1 = vector.load %arg2[%c0_1, %c0_2] : memref<1x32xf32, #tpu.memory_space<vmem>>, vector<1x32xf32>
    %c0_3 = arith.constant 0 : index
    %c0_4 = arith.constant 0 : index
    %2 = vector.load %arg3[%c0_3, %c0_4] : memref<1x32xf32, #tpu.memory_space<vmem>>, vector<1x32xf32>
    %cst = arith.constant dense<0.000000e+00> : vector<40xf32>
    %3 = vector.multi_reduction <add>, %0, %cst [1] : vector<40x32xf32> to vector<40xf32>
    %4 = vector.shape_cast %3 : vector<40xf32> to vector<40x1xf32>
    %cst_5 = arith.constant 3.200000e+01 : f32
    %5 = vector.broadcast %cst_5 : f32 to vector<40x1xf32>
    %6 = arith.divf %4, %5 : vector<40x1xf32>
    %7 = vector.broadcast %6 : vector<40x1xf32> to vector<40x32xf32>
    %8 = arith.subf %0, %7 : vector<40x32xf32>
    %9 = arith.mulf %8, %8 : vector<40x32xf32>
    %cst_6 = arith.constant dense<0.000000e+00> : vector<40xf32>
    %10 = vector.multi_reduction <add>, %9, %cst_6 [1] : vector<40x32xf32> to vector<40xf32>
    %11 = vector.shape_cast %10 : vector<40xf32> to vector<40x1xf32>
    %cst_7 = arith.constant 3.200000e+01 : f32
    %12 = vector.broadcast %cst_7 : f32 to vector<40x1xf32>
    %13 = arith.divf %11, %12 : vector<40x1xf32>
    %14 = vector.broadcast %6 : vector<40x1xf32> to vector<40x32xf32>
    %15 = arith.subf %0, %14 : vector<40x32xf32>
    %cst_8 = arith.constant 9.99999974E-6 : f32
    %16 = vector.broadcast %cst_8 : f32 to vector<40x1xf32>
    %17 = arith.addf %13, %16 : vector<40x1xf32>
    %18 = math.rsqrt %17 : vector<40x1xf32>
    %19 = vector.broadcast %18 : vector<40x1xf32> to vector<40x32xf32>
    %20 = arith.mulf %15, %19 : vector<40x32xf32>
    %21 = vector.broadcast %1 : vector<1x32xf32> to vector<40x32xf32>
    %22 = arith.mulf %20, %21 : vector<40x32xf32>
    %23 = vector.broadcast %2 : vector<1x32xf32> to vector<40x32xf32>
    %24 = arith.addf %22, %23 : vector<40x32xf32>
    %25 = arith.truncf %24 : vector<40x32xf32> to vector<40x32xbf16>
    %c0_9 = arith.constant 0 : index
    %c0_10 = arith.constant 0 : index
    %26 = vector.load %arg4[%c0_9, %c0_10] : memref<32x64xbf16, #tpu.memory_space<vmem>>, vector<32x64xbf16>
    %cst_11 = arith.constant dense<0.000000e+00> : vector<40x64xf32>
    %27 = tpu.matmul %25, %26, %cst_11 {dimension_numbers = #tpu.dot_dimension_numbers<[1], [0], [0], [1], [0, 0, 1, 1], [], []>} : vector<40x32xbf16>, vector<32x64xbf16>, vector<40x64xf32> -> vector<40x64xf32>
    %c0_12 = arith.constant 0 : index
    %c0_13 = arith.constant 0 : index
    %28 = vector.load %arg5[%c0_12, %c0_13] : memref<1x64xf32, #tpu.memory_space<vmem>>, vector<1x64xf32>
    %29 = vector.broadcast %28 : vector<1x64xf32> to vector<40x64xf32>
    %30 = arith.addf %27, %29 : vector<40x64xf32>
    %c0_14 = arith.constant 0 : index
    %c0_15 = arith.constant 0 : index
    %31 = vector.load %arg6[%c0_14, %c0_15] : memref<40x64xf32, #tpu.memory_space<vmem>>, vector<40x64xf32>
    tpu.vector_store %arg6[%c0_14, %c0_15], %30 {strides = array<i32>} : memref<40x64xf32, #tpu.memory_space<vmem>>, vector<40x64xf32>,
    return
  }
  func.func @transform_0(%arg0: i32) -> (i32, i32) {
    %c0_i32 = arith.constant 0 : i32
    %c0_i32_0 = arith.constant 0 : i32
    return %arg0, %c0_i32 : i32, i32
  }
  func.func @transform_1(%arg0: i32) -> (i32, i32) {
    %c0_i32 = arith.constant 0 : i32
    %c0_i32_0 = arith.constant 0 : i32
    %c0_i32_1 = arith.constant 0 : i32
    return %c0_i32, %c0_i32_0 : i32, i32
  }
  func.func @transform_2(%arg0: i32) -> (i32, i32) {
    %c0_i32 = arith.constant 0 : i32
    %c0_i32_0 = arith.constant 0 : i32
    %c0_i32_1 = arith.constant 0 : i32
    return %c0_i32, %c0_i32_0 : i32, i32
  }
  func.func @transform_3(%arg0: i32) -> (i32, i32) {
    %c0_i32 = arith.constant 0 : i32
    %c0_i32_0 = arith.constant 0 : i32
    %c0_i32_1 = arith.constant 0 : i32
    return %c0_i32, %c0_i32_0 : i32, i32
  }
  func.func @transform_4(%arg0: i32) -> (i32, i32) {
    %c0_i32 = arith.constant 0 : i32
    %c0_i32_0 = arith.constant 0 : i32
    %c0_i32_1 = arith.constant 0 : i32
    return %c0_i32, %c0_i32_0 : i32, i32
  }
  func.func @transform_5(%arg0: i32) -> (i32, i32) {
    %c0_i32 = arith.constant 0 : i32
    %c0_i32_0 = arith.constant 0 : i32
    return %arg0, %c0_i32 : i32, i32
  }
}

module attributes {stable_mosaic.version = 11 : i64} {
  func.func @_conv_block_kernel(%arg0: i32, %arg1: memref<40x96xbf16, #tpu.memory_space<vmem>>, %arg2: memref<96x32xbf16, #tpu.memory_space<vmem>>, %arg3: memref<1x32xf32, #tpu.memory_space<vmem>>, %arg4: memref<1x32xf32, #tpu.memory_space<vmem>>, %arg5: memref<1x32xf32, #tpu.memory_space<vmem>>, %arg6: memref<40x32xf32, #tpu.memory_space<vmem>>) attributes {dimension_semantics = [#tpu.dimension_semantics<parallel>], iteration_bounds = array<i64: 1>, scalar_prefetch = 0 : i64, scratch_operands = 0 : i64, tpu.core_type = #tpu.core_type<tc>, window_params = [{transform_indices = @transform_0, window_bounds = array<i64: 40, 96>}, {pipeline_mode = #tpu.pipeline_mode<synchronous>, transform_indices = @transform_1, window_bounds = array<i64: 96, 32>}, {pipeline_mode = #tpu.pipeline_mode<synchronous>, transform_indices = @transform_2, window_bounds = array<i64: 1, 32>}, {pipeline_mode = #tpu.pipeline_mode<synchronous>, transform_indices = @transform_3, window_bounds = array<i64: 1, 32>}, {pipeline_mode = #tpu.pipeline_mode<synchronous>, transform_indices = @transform_4, window_bounds = array<i64: 1, 32>}, {transform_indices = @transform_5, window_bounds = array<i64: 40, 32>}]} {
    %c0 = arith.constant 0 : index
    %c0_0 = arith.constant 0 : index
    %0 = vector.load %arg1[%c0, %c0_0] : memref<40x96xbf16, #tpu.memory_space<vmem>>, vector<40x96xbf16>
    %c0_1 = arith.constant 0 : index
    %c0_2 = arith.constant 0 : index
    %1 = vector.load %arg2[%c0_1, %c0_2] : memref<96x32xbf16, #tpu.memory_space<vmem>>, vector<96x32xbf16>
    %cst = arith.constant dense<0.000000e+00> : vector<40x32xf32>
    %2 = tpu.matmul %0, %1, %cst {dimension_numbers = #tpu.dot_dimension_numbers<[1], [0], [0], [1], [0, 0, 1, 1], [], []>} : vector<40x96xbf16>, vector<96x32xbf16>, vector<40x32xf32> -> vector<40x32xf32>
    %c0_3 = arith.constant 0 : index
    %c0_4 = arith.constant 0 : index
    %3 = vector.load %arg3[%c0_3, %c0_4] : memref<1x32xf32, #tpu.memory_space<vmem>>, vector<1x32xf32>
    %4 = vector.broadcast %3 : vector<1x32xf32> to vector<40x32xf32>
    %5 = arith.addf %2, %4 : vector<40x32xf32>
    %c0_5 = arith.constant 0 : index
    %c0_6 = arith.constant 0 : index
    %6 = vector.load %arg4[%c0_5, %c0_6] : memref<1x32xf32, #tpu.memory_space<vmem>>, vector<1x32xf32>
    %c0_7 = arith.constant 0 : index
    %c0_8 = arith.constant 0 : index
    %7 = vector.load %arg5[%c0_7, %c0_8] : memref<1x32xf32, #tpu.memory_space<vmem>>, vector<1x32xf32>
    %cst_9 = arith.constant dense<0.000000e+00> : vector<40xf32>
    %8 = vector.multi_reduction <add>, %5, %cst_9 [1] : vector<40x32xf32> to vector<40xf32>
    %9 = vector.shape_cast %8 : vector<40xf32> to vector<40x1xf32>
    %cst_10 = arith.constant 3.200000e+01 : f32
    %10 = vector.broadcast %cst_10 : f32 to vector<40x1xf32>
    %11 = arith.divf %9, %10 : vector<40x1xf32>
    %12 = vector.broadcast %11 : vector<40x1xf32> to vector<40x32xf32>
    %13 = arith.subf %5, %12 : vector<40x32xf32>
    %14 = arith.mulf %13, %13 : vector<40x32xf32>
    %cst_11 = arith.constant dense<0.000000e+00> : vector<40xf32>
    %15 = vector.multi_reduction <add>, %14, %cst_11 [1] : vector<40x32xf32> to vector<40xf32>
    %16 = vector.shape_cast %15 : vector<40xf32> to vector<40x1xf32>
    %cst_12 = arith.constant 3.200000e+01 : f32
    %17 = vector.broadcast %cst_12 : f32 to vector<40x1xf32>
    %18 = arith.divf %16, %17 : vector<40x1xf32>
    %19 = vector.broadcast %11 : vector<40x1xf32> to vector<40x32xf32>
    %20 = arith.subf %5, %19 : vector<40x32xf32>
    %cst_13 = arith.constant 9.99999974E-6 : f32
    %21 = vector.broadcast %cst_13 : f32 to vector<40x1xf32>
    %22 = arith.addf %18, %21 : vector<40x1xf32>
    %23 = math.rsqrt %22 : vector<40x1xf32>
    %24 = vector.broadcast %23 : vector<40x1xf32> to vector<40x32xf32>
    %25 = arith.mulf %20, %24 : vector<40x32xf32>
    %26 = vector.broadcast %6 : vector<1x32xf32> to vector<40x32xf32>
    %27 = arith.mulf %25, %26 : vector<40x32xf32>
    %28 = vector.broadcast %7 : vector<1x32xf32> to vector<40x32xf32>
    %29 = arith.addf %27, %28 : vector<40x32xf32>
    %cst_14 = arith.constant 5.000000e-01 : f32
    %30 = vector.broadcast %cst_14 : f32 to vector<40x32xf32>
    %31 = arith.mulf %30, %29 : vector<40x32xf32>
    %cst_15 = arith.constant 4.471500e-02 : f32
    %32 = vector.broadcast %cst_15 : f32 to vector<40x32xf32>
    %33 = arith.mulf %32, %29 : vector<40x32xf32>
    %34 = arith.mulf %33, %29 : vector<40x32xf32>
    %35 = arith.mulf %34, %29 : vector<40x32xf32>
    %36 = arith.addf %29, %35 : vector<40x32xf32>
    %cst_16 = arith.constant 0.797884583 : f32
    %37 = vector.broadcast %cst_16 : f32 to vector<40x32xf32>
    %38 = arith.mulf %37, %36 : vector<40x32xf32>
    %39 = math.tanh %38 : vector<40x32xf32>
    %cst_17 = arith.constant 1.000000e+00 : f32
    %40 = vector.broadcast %cst_17 : f32 to vector<40x32xf32>
    %41 = arith.addf %40, %39 : vector<40x32xf32>
    %42 = arith.mulf %31, %41 : vector<40x32xf32>
    %c0_18 = arith.constant 0 : index
    %c0_19 = arith.constant 0 : index
    %43 = vector.load %arg6[%c0_18, %c0_19] : memref<40x32xf32, #tpu.memory_space<vmem>>, vector<40x32xf32>
    tpu.vector_store %arg6[%c0_18, %c0_19], %42 {strides = array<i32>} : memref<40x32xf32, #tpu.memory_space<vmem>>, vector<40x32xf32>,
    return
  }
  func.func @transform_0(%arg0: i32) -> (i32, i32) {
    %c0_i32 = arith.constant 0 : i32
    %c0_i32_0 = arith.constant 0 : i32
    return %arg0, %c0_i32 : i32, i32
  }
  func.func @transform_1(%arg0: i32) -> (i32, i32) {
    %c0_i32 = arith.constant 0 : i32
    %c0_i32_0 = arith.constant 0 : i32
    %c0_i32_1 = arith.constant 0 : i32
    return %c0_i32, %c0_i32_0 : i32, i32
  }
  func.func @transform_2(%arg0: i32) -> (i32, i32) {
    %c0_i32 = arith.constant 0 : i32
    %c0_i32_0 = arith.constant 0 : i32
    %c0_i32_1 = arith.constant 0 : i32
    return %c0_i32, %c0_i32_0 : i32, i32
  }
  func.func @transform_3(%arg0: i32) -> (i32, i32) {
    %c0_i32 = arith.constant 0 : i32
    %c0_i32_0 = arith.constant 0 : i32
    %c0_i32_1 = arith.constant 0 : i32
    return %c0_i32, %c0_i32_0 : i32, i32
  }
  func.func @transform_4(%arg0: i32) -> (i32, i32) {
    %c0_i32 = arith.constant 0 : i32
    %c0_i32_0 = arith.constant 0 : i32
    %c0_i32_1 = arith.constant 0 : i32
    return %c0_i32, %c0_i32_0 : i32, i32
  }
  func.func @transform_5(%arg0: i32) -> (i32, i32) {
    %c0_i32 = arith.constant 0 : i32
    %c0_i32_0 = arith.constant 0 : i32
    return %arg0, %c0_i32 : i32, i32
  }
}

module attributes {stable_mosaic.version = 11 : i64} {
  func.func @_pos_conv_kernel(%arg0: i32, %arg1: memref<1x24x64xf32, #tpu.memory_space<vmem>>, %arg2: memref<4x64x64xbf16, #tpu.memory_space<vmem>>, %arg3: memref<1x64xf32, #tpu.memory_space<vmem>>, %arg4: memref<1x24x64xf32, #tpu.memory_space<vmem>>) attributes {dimension_semantics = [#tpu.dimension_semantics<parallel>], iteration_bounds = array<i64: 2>, scalar_prefetch = 0 : i64, scratch_operands = 0 : i64, tpu.core_type = #tpu.core_type<tc>, window_params = [{transform_indices = @transform_0, window_bounds = array<i64: 1, 24, 64>}, {pipeline_mode = #tpu.pipeline_mode<synchronous>, transform_indices = @transform_1, window_bounds = array<i64: 4, 64, 64>}, {pipeline_mode = #tpu.pipeline_mode<synchronous>, transform_indices = @transform_2, window_bounds = array<i64: 1, 64>}, {transform_indices = @transform_3, window_bounds = array<i64: 1, 24, 64>}]} {
    %c0 = arith.constant 0 : index
    %c0_0 = arith.constant 0 : index
    %c0_1 = arith.constant 0 : index
    %0 = vector.load %arg1[%c0, %c0_0, %c0_1] : memref<1x24x64xf32, #tpu.memory_space<vmem>>, vector<1x24x64xf32>
    %1 = vector.shape_cast %0 : vector<1x24x64xf32> to vector<24x64xf32>
    %cst = arith.constant 0.000000e+00 : f32
    %2 = vector.broadcast %cst : f32 to vector<24x64xf32>
    %cst_2 = arith.constant 0.000000e+00 : f32
    %3 = vector.broadcast %cst_2 : f32 to vector<2x64xf32>
    %4 = vector.extract_strided_slice %1 {offsets = [0, 0], sizes = [22, 64], strides = [1, 1]} : vector<24x64xf32> to vector<22x64xf32>
    %5 = tpu.concatenate %3, %4 in 0 : vector<2x64xf32>, vector<22x64xf32> -> vector<24x64xf32>
    %6 = arith.truncf %5 : vector<24x64xf32> to vector<24x64xbf16>
    %c0_3 = arith.constant 0 : index
    %c0_4 = arith.constant 0 : index
    %c0_5 = arith.constant 0 : index
    %7 = vector.load %arg2[%c0_3, %c0_4, %c0_5] : memref<4x64x64xbf16, #tpu.memory_space<vmem>>, vector<1x64x64xbf16>
    %8 = vector.shape_cast %7 : vector<1x64x64xbf16> to vector<64x64xbf16>
    %cst_6 = arith.constant dense<0.000000e+00> : vector<24x64xf32>
    %9 = tpu.matmul %6, %8, %cst_6 {dimension_numbers = #tpu.dot_dimension_numbers<[1], [0], [0], [1], [0, 0, 1, 1], [], []>} : vector<24x64xbf16>, vector<64x64xbf16>, vector<24x64xf32> -> vector<24x64xf32>
    %10 = arith.addf %2, %9 : vector<24x64xf32>
    %cst_7 = arith.constant 0.000000e+00 : f32
    %11 = vector.broadcast %cst_7 : f32 to vector<1x64xf32>
    %12 = vector.extract_strided_slice %1 {offsets = [0, 0], sizes = [23, 64], strides = [1, 1]} : vector<24x64xf32> to vector<23x64xf32>
    %13 = tpu.concatenate %11, %12 in 0 : vector<1x64xf32>, vector<23x64xf32> -> vector<24x64xf32>
    %14 = arith.truncf %13 : vector<24x64xf32> to vector<24x64xbf16>
    %c1 = arith.constant 1 : index
    %c0_8 = arith.constant 0 : index
    %c0_9 = arith.constant 0 : index
    %15 = vector.load %arg2[%c1, %c0_8, %c0_9] : memref<4x64x64xbf16, #tpu.memory_space<vmem>>, vector<1x64x64xbf16>
    %16 = vector.shape_cast %15 : vector<1x64x64xbf16> to vector<64x64xbf16>
    %cst_10 = arith.constant dense<0.000000e+00> : vector<24x64xf32>
    %17 = tpu.matmul %14, %16, %cst_10 {dimension_numbers = #tpu.dot_dimension_numbers<[1], [0], [0], [1], [0, 0, 1, 1], [], []>} : vector<24x64xbf16>, vector<64x64xbf16>, vector<24x64xf32> -> vector<24x64xf32>
    %18 = arith.addf %10, %17 : vector<24x64xf32>
    %19 = arith.truncf %1 : vector<24x64xf32> to vector<24x64xbf16>
    %c2 = arith.constant 2 : index
    %c0_11 = arith.constant 0 : index
    %c0_12 = arith.constant 0 : index
    %20 = vector.load %arg2[%c2, %c0_11, %c0_12] : memref<4x64x64xbf16, #tpu.memory_space<vmem>>, vector<1x64x64xbf16>
    %21 = vector.shape_cast %20 : vector<1x64x64xbf16> to vector<64x64xbf16>
    %cst_13 = arith.constant dense<0.000000e+00> : vector<24x64xf32>
    %22 = tpu.matmul %19, %21, %cst_13 {dimension_numbers = #tpu.dot_dimension_numbers<[1], [0], [0], [1], [0, 0, 1, 1], [], []>} : vector<24x64xbf16>, vector<64x64xbf16>, vector<24x64xf32> -> vector<24x64xf32>
    %23 = arith.addf %18, %22 : vector<24x64xf32>
    %24 = vector.extract_strided_slice %1 {offsets = [1, 0], sizes = [23, 64], strides = [1, 1]} : vector<24x64xf32> to vector<23x64xf32>
    %cst_14 = arith.constant 0.000000e+00 : f32
    %25 = vector.broadcast %cst_14 : f32 to vector<1x64xf32>
    %26 = tpu.concatenate %24, %25 in 0 : vector<23x64xf32>, vector<1x64xf32> -> vector<24x64xf32>
    %27 = arith.truncf %26 : vector<24x64xf32> to vector<24x64xbf16>
    %c3 = arith.constant 3 : index
    %c0_15 = arith.constant 0 : index
    %c0_16 = arith.constant 0 : index
    %28 = vector.load %arg2[%c3, %c0_15, %c0_16] : memref<4x64x64xbf16, #tpu.memory_space<vmem>>, vector<1x64x64xbf16>
    %29 = vector.shape_cast %28 : vector<1x64x64xbf16> to vector<64x64xbf16>
    %cst_17 = arith.constant dense<0.000000e+00> : vector<24x64xf32>
    %30 = tpu.matmul %27, %29, %cst_17 {dimension_numbers = #tpu.dot_dimension_numbers<[1], [0], [0], [1], [0, 0, 1, 1], [], []>} : vector<24x64xbf16>, vector<64x64xbf16>, vector<24x64xf32> -> vector<24x64xf32>
    %31 = arith.addf %23, %30 : vector<24x64xf32>
    %c0_18 = arith.constant 0 : index
    %c0_19 = arith.constant 0 : index
    %32 = vector.load %arg3[%c0_18, %c0_19] : memref<1x64xf32, #tpu.memory_space<vmem>>, vector<1x64xf32>
    %33 = vector.broadcast %32 : vector<1x64xf32> to vector<24x64xf32>
    %34 = arith.addf %31, %33 : vector<24x64xf32>
    %cst_20 = arith.constant 5.000000e-01 : f32
    %35 = vector.broadcast %cst_20 : f32 to vector<24x64xf32>
    %36 = arith.mulf %35, %34 : vector<24x64xf32>
    %cst_21 = arith.constant 4.471500e-02 : f32
    %37 = vector.broadcast %cst_21 : f32 to vector<24x64xf32>
    %38 = arith.mulf %37, %34 : vector<24x64xf32>
    %39 = arith.mulf %38, %34 : vector<24x64xf32>
    %40 = arith.mulf %39, %34 : vector<24x64xf32>
    %41 = arith.addf %34, %40 : vector<24x64xf32>
    %cst_22 = arith.constant 0.797884583 : f32
    %42 = vector.broadcast %cst_22 : f32 to vector<24x64xf32>
    %43 = arith.mulf %42, %41 : vector<24x64xf32>
    %44 = math.tanh %43 : vector<24x64xf32>
    %cst_23 = arith.constant 1.000000e+00 : f32
    %45 = vector.broadcast %cst_23 : f32 to vector<24x64xf32>
    %46 = arith.addf %45, %44 : vector<24x64xf32>
    %47 = arith.mulf %36, %46 : vector<24x64xf32>
    %48 = arith.addf %1, %47 : vector<24x64xf32>
    %c0_24 = arith.constant 0 : index
    %c0_25 = arith.constant 0 : index
    %c0_26 = arith.constant 0 : index
    %49 = vector.load %arg4[%c0_24, %c0_25, %c0_26] : memref<1x24x64xf32, #tpu.memory_space<vmem>>, vector<1x24x64xf32>
    %50 = vector.shape_cast %49 : vector<1x24x64xf32> to vector<24x64xf32>
    %51 = vector.shape_cast %48 : vector<24x64xf32> to vector<1x24x64xf32>
    tpu.vector_store %arg4[%c0_24, %c0_25, %c0_26], %51 {strides = array<i32>} : memref<1x24x64xf32, #tpu.memory_space<vmem>>, vector<1x24x64xf32>,
    return
  }
  func.func @transform_0(%arg0: i32) -> (i32, i32, i32) {
    %c0_i32 = arith.constant 0 : i32
    %c0_i32_0 = arith.constant 0 : i32
    %c0_i32_1 = arith.constant 0 : i32
    return %arg0, %c0_i32, %c0_i32_0 : i32, i32, i32
  }
  func.func @transform_1(%arg0: i32) -> (i32, i32, i32) {
    %c0_i32 = arith.constant 0 : i32
    %c0_i32_0 = arith.constant 0 : i32
    %c0_i32_1 = arith.constant 0 : i32
    %c0_i32_2 = arith.constant 0 : i32
    return %c0_i32, %c0_i32_0, %c0_i32_1 : i32, i32, i32
  }
  func.func @transform_2(%arg0: i32) -> (i32, i32) {
    %c0_i32 = arith.constant 0 : i32
    %c0_i32_0 = arith.constant 0 : i32
    %c0_i32_1 = arith.constant 0 : i32
    return %c0_i32, %c0_i32_0 : i32, i32
  }
  func.func @transform_3(%arg0: i32) -> (i32, i32, i32) {
    %c0_i32 = arith.constant 0 : i32
    %c0_i32_0 = arith.constant 0 : i32
    %c0_i32_1 = arith.constant 0 : i32
    return %arg0, %c0_i32, %c0_i32_0 : i32, i32, i32
  }
}

module attributes {stable_mosaic.version = 11 : i64} {
  func.func @_encoder_kernel(%arg0: i32, %arg1: i32, %arg2: memref<1x24x64xf32, #tpu.memory_space<vmem>>, %arg3: memref<24x24xf32, #tpu.memory_space<vmem>>, %arg4: memref<1x1x64xf32, #tpu.memory_space<vmem>>, %arg5: memref<1x1x64xf32, #tpu.memory_space<vmem>>, %arg6: memref<1x64x192xbf16, #tpu.memory_space<vmem>>, %arg7: memref<1x1x192xf32, #tpu.memory_space<vmem>>, %arg8: memref<1x64x64xbf16, #tpu.memory_space<vmem>>, %arg9: memref<1x1x64xf32, #tpu.memory_space<vmem>>, %arg10: memref<1x1x64xf32, #tpu.memory_space<vmem>>, %arg11: memref<1x1x64xf32, #tpu.memory_space<vmem>>, %arg12: memref<1x64x128xbf16, #tpu.memory_space<vmem>>, %arg13: memref<1x1x128xf32, #tpu.memory_space<vmem>>, %arg14: memref<1x128x64xbf16, #tpu.memory_space<vmem>>, %arg15: memref<1x1x64xf32, #tpu.memory_space<vmem>>, %arg16: memref<64x48xbf16, #tpu.memory_space<vmem>>, %arg17: memref<1x48xf32, #tpu.memory_space<vmem>>, %arg18: memref<48x8xbf16, #tpu.memory_space<vmem>>, %arg19: memref<1x8xf32, #tpu.memory_space<vmem>>, %arg20: memref<1x8x8xf32, #tpu.memory_space<vmem>>, %arg21: memref<24x64xf32, #tpu.memory_space<vmem>>) attributes {dimension_semantics = [#tpu.dimension_semantics<parallel>, #tpu.dimension_semantics<arbitrary>], iteration_bounds = array<i64: 2, 11>, scalar_prefetch = 0 : i64, scratch_operands = 1 : i64, tpu.core_type = #tpu.core_type<tc>, window_params = [{transform_indices = @transform_0, window_bounds = array<i64: 1, 24, 64>}, {pipeline_mode = #tpu.pipeline_mode<synchronous>, transform_indices = @transform_1, window_bounds = array<i64: 24, 24>}, {transform_indices = @transform_2, window_bounds = array<i64: 1, 1, 64>}, {transform_indices = @transform_3, window_bounds = array<i64: 1, 1, 64>}, {transform_indices = @transform_4, window_bounds = array<i64: 1, 64, 192>}, {transform_indices = @transform_5, window_bounds = array<i64: 1, 1, 192>}, {transform_indices = @transform_6, window_bounds = array<i64: 1, 64, 64>}, {transform_indices = @transform_7, window_bounds = array<i64: 1, 1, 64>}, {transform_indices = @transform_8, window_bounds = array<i64: 1, 1, 64>}, {transform_indices = @transform_9, window_bounds = array<i64: 1, 1, 64>}, {transform_indices = @transform_10, window_bounds = array<i64: 1, 64, 128>}, {transform_indices = @transform_11, window_bounds = array<i64: 1, 1, 128>}, {transform_indices = @transform_12, window_bounds = array<i64: 1, 128, 64>}, {transform_indices = @transform_13, window_bounds = array<i64: 1, 1, 64>}, {pipeline_mode = #tpu.pipeline_mode<synchronous>, transform_indices = @transform_14, window_bounds = array<i64: 64, 48>}, {pipeline_mode = #tpu.pipeline_mode<synchronous>, transform_indices = @transform_15, window_bounds = array<i64: 1, 48>}, {pipeline_mode = #tpu.pipeline_mode<synchronous>, transform_indices = @transform_16, window_bounds = array<i64: 48, 8>}, {pipeline_mode = #tpu.pipeline_mode<synchronous>, transform_indices = @transform_17, window_bounds = array<i64: 1, 8>}, {transform_indices = @transform_18, window_bounds = array<i64: 1, 8, 8>}]} {
    %c0_i32 = arith.constant 0 : i32
    %0 = arith.cmpi eq, %arg1, %c0_i32 : i32
    %1 = arith.extui %0 : i1 to i32
    %c0_i32_0 = arith.constant 0 : i32
    %2 = arith.cmpi ne, %1, %c0_i32_0 : i32
    scf.if %2 {
      %c0_80 = arith.constant 0 : index
      %c0_81 = arith.constant 0 : index
      %c0_82 = arith.constant 0 : index
      %186 = vector.load %arg2[%c0_80, %c0_81, %c0_82] : memref<1x24x64xf32, #tpu.memory_space<vmem>>, vector<1x24x64xf32>
      %187 = vector.shape_cast %186 : vector<1x24x64xf32> to vector<24x64xf32>
      %c0_83 = arith.constant 0 : index
      %c0_84 = arith.constant 0 : index
      %188 = vector.load %arg21[%c0_83, %c0_84] : memref<24x64xf32, #tpu.memory_space<vmem>>, vector<24x64xf32>
      tpu.vector_store %arg21[%c0_83, %c0_84], %187 {strides = array<i32>} : memref<24x64xf32, #tpu.memory_space<vmem>>, vector<24x64xf32>,
    } else {
    }
    %c0 = arith.constant 0 : index
    %c0_1 = arith.constant 0 : index
    %3 = vector.load %arg21[%c0, %c0_1] : memref<24x64xf32, #tpu.memory_space<vmem>>, vector<24x64xf32>
    %c0_2 = arith.constant 0 : index
    %c0_3 = arith.constant 0 : index
    %c0_4 = arith.constant 0 : index
    %4 = vector.load %arg4[%c0_2, %c0_3, %c0_4] : memref<1x1x64xf32, #tpu.memory_space<vmem>>, vector<1x1x64xf32>
    %5 = vector.shape_cast %4 : vector<1x1x64xf32> to vector<1x64xf32>
    %c0_5 = arith.constant 0 : index
    %c0_6 = arith.constant 0 : index
    %c0_7 = arith.constant 0 : index
    %6 = vector.load %arg5[%c0_5, %c0_6, %c0_7] : memref<1x1x64xf32, #tpu.memory_space<vmem>>, vector<1x1x64xf32>
    %7 = vector.shape_cast %6 : vector<1x1x64xf32> to vector<1x64xf32>
    %cst = arith.constant dense<0.000000e+00> : vector<24xf32>
    %8 = vector.multi_reduction <add>, %3, %cst [1] : vector<24x64xf32> to vector<24xf32>
    %9 = vector.shape_cast %8 : vector<24xf32> to vector<24x1xf32>
    %cst_8 = arith.constant 6.400000e+01 : f32
    %10 = vector.broadcast %cst_8 : f32 to vector<24x1xf32>
    %11 = arith.divf %9, %10 : vector<24x1xf32>
    %12 = vector.broadcast %11 : vector<24x1xf32> to vector<24x64xf32>
    %13 = arith.subf %3, %12 : vector<24x64xf32>
    %14 = arith.mulf %13, %13 : vector<24x64xf32>
    %cst_9 = arith.constant dense<0.000000e+00> : vector<24xf32>
    %15 = vector.multi_reduction <add>, %14, %cst_9 [1] : vector<24x64xf32> to vector<24xf32>
    %16 = vector.shape_cast %15 : vector<24xf32> to vector<24x1xf32>
    %cst_10 = arith.constant 6.400000e+01 : f32
    %17 = vector.broadcast %cst_10 : f32 to vector<24x1xf32>
    %18 = arith.divf %16, %17 : vector<24x1xf32>
    %19 = vector.broadcast %11 : vector<24x1xf32> to vector<24x64xf32>
    %20 = arith.subf %3, %19 : vector<24x64xf32>
    %cst_11 = arith.constant 9.99999974E-6 : f32
    %21 = vector.broadcast %cst_11 : f32 to vector<24x1xf32>
    %22 = arith.addf %18, %21 : vector<24x1xf32>
    %23 = math.rsqrt %22 : vector<24x1xf32>
    %24 = vector.broadcast %23 : vector<24x1xf32> to vector<24x64xf32>
    %25 = arith.mulf %20, %24 : vector<24x64xf32>
    %26 = vector.broadcast %5 : vector<1x64xf32> to vector<24x64xf32>
    %27 = arith.mulf %25, %26 : vector<24x64xf32>
    %28 = vector.broadcast %7 : vector<1x64xf32> to vector<24x64xf32>
    %29 = arith.addf %27, %28 : vector<24x64xf32>
    %30 = arith.truncf %29 : vector<24x64xf32> to vector<24x64xbf16>
    %c0_12 = arith.constant 0 : index
    %c0_13 = arith.constant 0 : index
    %c0_14 = arith.constant 0 : index
    %31 = vector.load %arg6[%c0_12, %c0_13, %c0_14] : memref<1x64x192xbf16, #tpu.memory_space<vmem>>, vector<1x64x192xbf16>
    %32 = vector.shape_cast %31 : vector<1x64x192xbf16> to vector<64x192xbf16>
    %cst_15 = arith.constant dense<0.000000e+00> : vector<24x192xf32>
    %33 = tpu.matmul %30, %32, %cst_15 {dimension_numbers = #tpu.dot_dimension_numbers<[1], [0], [0], [1], [0, 0, 1, 1], [], []>} : vector<24x64xbf16>, vector<64x192xbf16>, vector<24x192xf32> -> vector<24x192xf32>
    %c0_16 = arith.constant 0 : index
    %c0_17 = arith.constant 0 : index
    %c0_18 = arith.constant 0 : index
    %34 = vector.load %arg7[%c0_16, %c0_17, %c0_18] : memref<1x1x192xf32, #tpu.memory_space<vmem>>, vector<1x1x192xf32>
    %35 = vector.shape_cast %34 : vector<1x1x192xf32> to vector<1x192xf32>
    %36 = vector.broadcast %35 : vector<1x192xf32> to vector<24x192xf32>
    %37 = arith.addf %33, %36 : vector<24x192xf32>
    %38 = arith.truncf %37 : vector<24x192xf32> to vector<24x192xbf16>
    %c0_19 = arith.constant 0 : index
    %c0_20 = arith.constant 0 : index
    %39 = vector.load %arg3[%c0_19, %c0_20] : memref<24x24xf32, #tpu.memory_space<vmem>>, vector<24x24xf32>
    %40 = vector.extract_strided_slice %38 {offsets = [0, 0], sizes = [24, 16], strides = [1, 1]} : vector<24x192xbf16> to vector<24x16xbf16>
    %41 = vector.extract_strided_slice %38 {offsets = [0, 64], sizes = [24, 16], strides = [1, 1]} : vector<24x192xbf16> to vector<24x16xbf16>
    %42 = vector.extract_strided_slice %38 {offsets = [0, 128], sizes = [24, 16], strides = [1, 1]} : vector<24x192xbf16> to vector<24x16xbf16>
    %cst_21 = arith.constant dense<0.000000e+00> : vector<24x24xf32>
    %43 = tpu.matmul %40, %41, %cst_21 {dimension_numbers = #tpu.dot_dimension_numbers<[1], [1], [0], [0], [0, 0, 1, 0], [], []>} : vector<24x16xbf16>, vector<24x16xbf16>, vector<24x24xf32> -> vector<24x24xf32>
    %cst_22 = arith.constant 2.500000e-01 : f32
    %44 = vector.broadcast %cst_22 : f32 to vector<24x24xf32>
    %45 = arith.mulf %43, %44 : vector<24x24xf32>
    %46 = arith.addf %45, %39 : vector<24x24xf32>
    %cst_23 = arith.constant dense<0xFF800000> : vector<24xf32>
    %47 = vector.multi_reduction <maximumf>, %46, %cst_23 [1] : vector<24x24xf32> to vector<24xf32>
    %48 = vector.shape_cast %47 : vector<24xf32> to vector<24x1xf32>
    %49 = vector.broadcast %48 : vector<24x1xf32> to vector<24x24xf32>
    %50 = arith.subf %46, %49 : vector<24x24xf32>
    %51 = math.exp %50 : vector<24x24xf32>
    %cst_24 = arith.constant dense<0.000000e+00> : vector<24xf32>
    %52 = vector.multi_reduction <add>, %51, %cst_24 [1] : vector<24x24xf32> to vector<24xf32>
    %53 = vector.shape_cast %52 : vector<24xf32> to vector<24x1xf32>
    %54 = tpu.reciprocal %53 {approx = true} : vector<24x1xf32> -> vector<24x1xf32>
    %55 = vector.broadcast %54 : vector<24x1xf32> to vector<24x24xf32>
    %56 = arith.mulf %51, %55 : vector<24x24xf32>
    %57 = arith.truncf %56 : vector<24x24xf32> to vector<24x24xbf16>
    %cst_25 = arith.constant dense<0.000000e+00> : vector<24x16xf32>
    %58 = tpu.matmul %57, %42, %cst_25 {dimension_numbers = #tpu.dot_dimension_numbers<[1], [0], [0], [1], [0, 0, 1, 1], [], []>} : vector<24x24xbf16>, vector<24x16xbf16>, vector<24x16xf32> -> vector<24x16xf32>
    %59 = vector.extract_strided_slice %38 {offsets = [0, 16], sizes = [24, 16], strides = [1, 1]} : vector<24x192xbf16> to vector<24x16xbf16>
    %60 = vector.extract_strided_slice %38 {offsets = [0, 80], sizes = [24, 16], strides = [1, 1]} : vector<24x192xbf16> to vector<24x16xbf16>
    %61 = vector.extract_strided_slice %38 {offsets = [0, 144], sizes = [24, 16], strides = [1, 1]} : vector<24x192xbf16> to vector<24x16xbf16>
    %cst_26 = arith.constant dense<0.000000e+00> : vector<24x24xf32>
    %62 = tpu.matmul %59, %60, %cst_26 {dimension_numbers = #tpu.dot_dimension_numbers<[1], [1], [0], [0], [0, 0, 1, 0], [], []>} : vector<24x16xbf16>, vector<24x16xbf16>, vector<24x24xf32> -> vector<24x24xf32>
    %cst_27 = arith.constant 2.500000e-01 : f32
    %63 = vector.broadcast %cst_27 : f32 to vector<24x24xf32>
    %64 = arith.mulf %62, %63 : vector<24x24xf32>
    %65 = arith.addf %64, %39 : vector<24x24xf32>
    %cst_28 = arith.constant dense<0xFF800000> : vector<24xf32>
    %66 = vector.multi_reduction <maximumf>, %65, %cst_28 [1] : vector<24x24xf32> to vector<24xf32>
    %67 = vector.shape_cast %66 : vector<24xf32> to vector<24x1xf32>
    %68 = vector.broadcast %67 : vector<24x1xf32> to vector<24x24xf32>
    %69 = arith.subf %65, %68 : vector<24x24xf32>
    %70 = math.exp %69 : vector<24x24xf32>
    %cst_29 = arith.constant dense<0.000000e+00> : vector<24xf32>
    %71 = vector.multi_reduction <add>, %70, %cst_29 [1] : vector<24x24xf32> to vector<24xf32>
    %72 = vector.shape_cast %71 : vector<24xf32> to vector<24x1xf32>
    %73 = tpu.reciprocal %72 {approx = true} : vector<24x1xf32> -> vector<24x1xf32>
    %74 = vector.broadcast %73 : vector<24x1xf32> to vector<24x24xf32>
    %75 = arith.mulf %70, %74 : vector<24x24xf32>
    %76 = arith.truncf %75 : vector<24x24xf32> to vector<24x24xbf16>
    %cst_30 = arith.constant dense<0.000000e+00> : vector<24x16xf32>
    %77 = tpu.matmul %76, %61, %cst_30 {dimension_numbers = #tpu.dot_dimension_numbers<[1], [0], [0], [1], [0, 0, 1, 1], [], []>} : vector<24x24xbf16>, vector<24x16xbf16>, vector<24x16xf32> -> vector<24x16xf32>
    %78 = vector.extract_strided_slice %38 {offsets = [0, 32], sizes = [24, 16], strides = [1, 1]} : vector<24x192xbf16> to vector<24x16xbf16>
    %79 = vector.extract_strided_slice %38 {offsets = [0, 96], sizes = [24, 16], strides = [1, 1]} : vector<24x192xbf16> to vector<24x16xbf16>
    %80 = vector.extract_strided_slice %38 {offsets = [0, 160], sizes = [24, 16], strides = [1, 1]} : vector<24x192xbf16> to vector<24x16xbf16>
    %cst_31 = arith.constant dense<0.000000e+00> : vector<24x24xf32>
    %81 = tpu.matmul %78, %79, %cst_31 {dimension_numbers = #tpu.dot_dimension_numbers<[1], [1], [0], [0], [0, 0, 1, 0], [], []>} : vector<24x16xbf16>, vector<24x16xbf16>, vector<24x24xf32> -> vector<24x24xf32>
    %cst_32 = arith.constant 2.500000e-01 : f32
    %82 = vector.broadcast %cst_32 : f32 to vector<24x24xf32>
    %83 = arith.mulf %81, %82 : vector<24x24xf32>
    %84 = arith.addf %83, %39 : vector<24x24xf32>
    %cst_33 = arith.constant dense<0xFF800000> : vector<24xf32>
    %85 = vector.multi_reduction <maximumf>, %84, %cst_33 [1] : vector<24x24xf32> to vector<24xf32>
    %86 = vector.shape_cast %85 : vector<24xf32> to vector<24x1xf32>
    %87 = vector.broadcast %86 : vector<24x1xf32> to vector<24x24xf32>
    %88 = arith.subf %84, %87 : vector<24x24xf32>
    %89 = math.exp %88 : vector<24x24xf32>
    %cst_34 = arith.constant dense<0.000000e+00> : vector<24xf32>
    %90 = vector.multi_reduction <add>, %89, %cst_34 [1] : vector<24x24xf32> to vector<24xf32>
    %91 = vector.shape_cast %90 : vector<24xf32> to vector<24x1xf32>
    %92 = tpu.reciprocal %91 {approx = true} : vector<24x1xf32> -> vector<24x1xf32>
    %93 = vector.broadcast %92 : vector<24x1xf32> to vector<24x24xf32>
    %94 = arith.mulf %89, %93 : vector<24x24xf32>
    %95 = arith.truncf %94 : vector<24x24xf32> to vector<24x24xbf16>
    %cst_35 = arith.constant dense<0.000000e+00> : vector<24x16xf32>
    %96 = tpu.matmul %95, %80, %cst_35 {dimension_numbers = #tpu.dot_dimension_numbers<[1], [0], [0], [1], [0, 0, 1, 1], [], []>} : vector<24x24xbf16>, vector<24x16xbf16>, vector<24x16xf32> -> vector<24x16xf32>
    %97 = vector.extract_strided_slice %38 {offsets = [0, 48], sizes = [24, 16], strides = [1, 1]} : vector<24x192xbf16> to vector<24x16xbf16>
    %98 = vector.extract_strided_slice %38 {offsets = [0, 112], sizes = [24, 16], strides = [1, 1]} : vector<24x192xbf16> to vector<24x16xbf16>
    %99 = vector.extract_strided_slice %38 {offsets = [0, 176], sizes = [24, 16], strides = [1, 1]} : vector<24x192xbf16> to vector<24x16xbf16>
    %cst_36 = arith.constant dense<0.000000e+00> : vector<24x24xf32>
    %100 = tpu.matmul %97, %98, %cst_36 {dimension_numbers = #tpu.dot_dimension_numbers<[1], [1], [0], [0], [0, 0, 1, 0], [], []>} : vector<24x16xbf16>, vector<24x16xbf16>, vector<24x24xf32> -> vector<24x24xf32>
    %cst_37 = arith.constant 2.500000e-01 : f32
    %101 = vector.broadcast %cst_37 : f32 to vector<24x24xf32>
    %102 = arith.mulf %100, %101 : vector<24x24xf32>
    %103 = arith.addf %102, %39 : vector<24x24xf32>
    %cst_38 = arith.constant dense<0xFF800000> : vector<24xf32>
    %104 = vector.multi_reduction <maximumf>, %103, %cst_38 [1] : vector<24x24xf32> to vector<24xf32>
    %105 = vector.shape_cast %104 : vector<24xf32> to vector<24x1xf32>
    %106 = vector.broadcast %105 : vector<24x1xf32> to vector<24x24xf32>
    %107 = arith.subf %103, %106 : vector<24x24xf32>
    %108 = math.exp %107 : vector<24x24xf32>
    %cst_39 = arith.constant dense<0.000000e+00> : vector<24xf32>
    %109 = vector.multi_reduction <add>, %108, %cst_39 [1] : vector<24x24xf32> to vector<24xf32>
    %110 = vector.shape_cast %109 : vector<24xf32> to vector<24x1xf32>
    %111 = tpu.reciprocal %110 {approx = true} : vector<24x1xf32> -> vector<24x1xf32>
    %112 = vector.broadcast %111 : vector<24x1xf32> to vector<24x24xf32>
    %113 = arith.mulf %108, %112 : vector<24x24xf32>
    %114 = arith.truncf %113 : vector<24x24xf32> to vector<24x24xbf16>
    %cst_40 = arith.constant dense<0.000000e+00> : vector<24x16xf32>
    %115 = tpu.matmul %114, %99, %cst_40 {dimension_numbers = #tpu.dot_dimension_numbers<[1], [0], [0], [1], [0, 0, 1, 1], [], []>} : vector<24x24xbf16>, vector<24x16xbf16>, vector<24x16xf32> -> vector<24x16xf32>
    %116 = tpu.concatenate %58, %77, %96, %115 in 1 : vector<24x16xf32>, vector<24x16xf32>, vector<24x16xf32>, vector<24x16xf32> -> vector<24x64xf32>
    %117 = arith.truncf %116 : vector<24x64xf32> to vector<24x64xbf16>
    %c0_41 = arith.constant 0 : index
    %c0_42 = arith.constant 0 : index
    %c0_43 = arith.constant 0 : index
    %118 = vector.load %arg8[%c0_41, %c0_42, %c0_43] : memref<1x64x64xbf16, #tpu.memory_space<vmem>>, vector<1x64x64xbf16>
    %119 = vector.shape_cast %118 : vector<1x64x64xbf16> to vector<64x64xbf16>
    %cst_44 = arith.constant dense<0.000000e+00> : vector<24x64xf32>
    %120 = tpu.matmul %117, %119, %cst_44 {dimension_numbers = #tpu.dot_dimension_numbers<[1], [0], [0], [1], [0, 0, 1, 1], [], []>} : vector<24x64xbf16>, vector<64x64xbf16>, vector<24x64xf32> -> vector<24x64xf32>
    %121 = arith.addf %3, %120 : vector<24x64xf32>
    %c0_45 = arith.constant 0 : index
    %c0_46 = arith.constant 0 : index
    %c0_47 = arith.constant 0 : index
    %122 = vector.load %arg9[%c0_45, %c0_46, %c0_47] : memref<1x1x64xf32, #tpu.memory_space<vmem>>, vector<1x1x64xf32>
    %123 = vector.shape_cast %122 : vector<1x1x64xf32> to vector<1x64xf32>
    %124 = vector.broadcast %123 : vector<1x64xf32> to vector<24x64xf32>
    %125 = arith.addf %121, %124 : vector<24x64xf32>
    %c0_48 = arith.constant 0 : index
    %c0_49 = arith.constant 0 : index
    %c0_50 = arith.constant 0 : index
    %126 = vector.load %arg10[%c0_48, %c0_49, %c0_50] : memref<1x1x64xf32, #tpu.memory_space<vmem>>, vector<1x1x64xf32>
    %127 = vector.shape_cast %126 : vector<1x1x64xf32> to vector<1x64xf32>
    %c0_51 = arith.constant 0 : index
    %c0_52 = arith.constant 0 : index
    %c0_53 = arith.constant 0 : index
    %128 = vector.load %arg11[%c0_51, %c0_52, %c0_53] : memref<1x1x64xf32, #tpu.memory_space<vmem>>, vector<1x1x64xf32>
    %129 = vector.shape_cast %128 : vector<1x1x64xf32> to vector<1x64xf32>
    %cst_54 = arith.constant dense<0.000000e+00> : vector<24xf32>
    %130 = vector.multi_reduction <add>, %125, %cst_54 [1] : vector<24x64xf32> to vector<24xf32>
    %131 = vector.shape_cast %130 : vector<24xf32> to vector<24x1xf32>
    %cst_55 = arith.constant 6.400000e+01 : f32
    %132 = vector.broadcast %cst_55 : f32 to vector<24x1xf32>
    %133 = arith.divf %131, %132 : vector<24x1xf32>
    %134 = vector.broadcast %133 : vector<24x1xf32> to vector<24x64xf32>
    %135 = arith.subf %125, %134 : vector<24x64xf32>
    %136 = arith.mulf %135, %135 : vector<24x64xf32>
    %cst_56 = arith.constant dense<0.000000e+00> : vector<24xf32>
    %137 = vector.multi_reduction <add>, %136, %cst_56 [1] : vector<24x64xf32> to vector<24xf32>
    %138 = vector.shape_cast %137 : vector<24xf32> to vector<24x1xf32>
    %cst_57 = arith.constant 6.400000e+01 : f32
    %139 = vector.broadcast %cst_57 : f32 to vector<24x1xf32>
    %140 = arith.divf %138, %139 : vector<24x1xf32>
    %141 = vector.broadcast %133 : vector<24x1xf32> to vector<24x64xf32>
    %142 = arith.subf %125, %141 : vector<24x64xf32>
    %cst_58 = arith.constant 9.99999974E-6 : f32
    %143 = vector.broadcast %cst_58 : f32 to vector<24x1xf32>
    %144 = arith.addf %140, %143 : vector<24x1xf32>
    %145 = math.rsqrt %144 : vector<24x1xf32>
    %146 = vector.broadcast %145 : vector<24x1xf32> to vector<24x64xf32>
    %147 = arith.mulf %142, %146 : vector<24x64xf32>
    %148 = vector.broadcast %127 : vector<1x64xf32> to vector<24x64xf32>
    %149 = arith.mulf %147, %148 : vector<24x64xf32>
    %150 = vector.broadcast %129 : vector<1x64xf32> to vector<24x64xf32>
    %151 = arith.addf %149, %150 : vector<24x64xf32>
    %152 = arith.truncf %151 : vector<24x64xf32> to vector<24x64xbf16>
    %c0_59 = arith.constant 0 : index
    %c0_60 = arith.constant 0 : index
    %c0_61 = arith.constant 0 : index
    %153 = vector.load %arg12[%c0_59, %c0_60, %c0_61] : memref<1x64x128xbf16, #tpu.memory_space<vmem>>, vector<1x64x128xbf16>
    %154 = vector.shape_cast %153 : vector<1x64x128xbf16> to vector<64x128xbf16>
    %cst_62 = arith.constant dense<0.000000e+00> : vector<24x128xf32>
    %155 = tpu.matmul %152, %154, %cst_62 {dimension_numbers = #tpu.dot_dimension_numbers<[1], [0], [0], [1], [0, 0, 1, 1], [], []>} : vector<24x64xbf16>, vector<64x128xbf16>, vector<24x128xf32> -> vector<24x128xf32>
    %c0_63 = arith.constant 0 : index
    %c0_64 = arith.constant 0 : index
    %c0_65 = arith.constant 0 : index
    %156 = vector.load %arg13[%c0_63, %c0_64, %c0_65] : memref<1x1x128xf32, #tpu.memory_space<vmem>>, vector<1x1x128xf32>
    %157 = vector.shape_cast %156 : vector<1x1x128xf32> to vector<1x128xf32>
    %158 = vector.broadcast %157 : vector<1x128xf32> to vector<24x128xf32>
    %159 = arith.addf %155, %158 : vector<24x128xf32>
    %cst_66 = arith.constant 5.000000e-01 : f32
    %160 = vector.broadcast %cst_66 : f32 to vector<24x128xf32>
    %161 = arith.mulf %160, %159 : vector<24x128xf32>
    %cst_67 = arith.constant 4.471500e-02 : f32
    %162 = vector.broadcast %cst_67 : f32 to vector<24x128xf32>
    %163 = arith.mulf %162, %159 : vector<24x128xf32>
    %164 = arith.mulf %163, %159 : vector<24x128xf32>
    %165 = arith.mulf %164, %159 : vector<24x128xf32>
    %166 = arith.addf %159, %165 : vector<24x128xf32>
    %cst_68 = arith.constant 0.797884583 : f32
    %167 = vector.broadcast %cst_68 : f32 to vector<24x128xf32>
    %168 = arith.mulf %167, %166 : vector<24x128xf32>
    %169 = math.tanh %168 : vector<24x128xf32>
    %cst_69 = arith.constant 1.000000e+00 : f32
    %170 = vector.broadcast %cst_69 : f32 to vector<24x128xf32>
    %171 = arith.addf %170, %169 : vector<24x128xf32>
    %172 = arith.mulf %161, %171 : vector<24x128xf32>
    %173 = arith.truncf %172 : vector<24x128xf32> to vector<24x128xbf16>
    %c0_70 = arith.constant 0 : index
    %c0_71 = arith.constant 0 : index
    %c0_72 = arith.constant 0 : index
    %174 = vector.load %arg14[%c0_70, %c0_71, %c0_72] : memref<1x128x64xbf16, #tpu.memory_space<vmem>>, vector<1x128x64xbf16>
    %175 = vector.shape_cast %174 : vector<1x128x64xbf16> to vector<128x64xbf16>
    %cst_73 = arith.constant dense<0.000000e+00> : vector<24x64xf32>
    %176 = tpu.matmul %173, %175, %cst_73 {dimension_numbers = #tpu.dot_dimension_numbers<[1], [0], [0], [1], [0, 0, 1, 1], [], []>} : vector<24x128xbf16>, vector<128x64xbf16>, vector<24x64xf32> -> vector<24x64xf32>
    %177 = arith.addf %125, %176 : vector<24x64xf32>
    %c0_74 = arith.constant 0 : index
    %c0_75 = arith.constant 0 : index
    %c0_76 = arith.constant 0 : index
    %178 = vector.load %arg15[%c0_74, %c0_75, %c0_76] : memref<1x1x64xf32, #tpu.memory_space<vmem>>, vector<1x1x64xf32>
    %179 = vector.shape_cast %178 : vector<1x1x64xf32> to vector<1x64xf32>
    %180 = vector.broadcast %179 : vector<1x64xf32> to vector<24x64xf32>
    %181 = arith.addf %177, %180 : vector<24x64xf32>
    %c0_77 = arith.constant 0 : index
    %c0_78 = arith.constant 0 : index
    %182 = vector.load %arg21[%c0_77, %c0_78] : memref<24x64xf32, #tpu.memory_space<vmem>>, vector<24x64xf32>
    tpu.vector_store %arg21[%c0_77, %c0_78], %181 {strides = array<i32>} : memref<24x64xf32, #tpu.memory_space<vmem>>, vector<24x64xf32>,
    %c10_i32 = arith.constant 10 : i32
    %183 = arith.cmpi eq, %arg1, %c10_i32 : i32
    %184 = arith.extui %183 : i1 to i32
    %c0_i32_79 = arith.constant 0 : i32
    %185 = arith.cmpi ne, %184, %c0_i32_79 : i32
    scf.if %185 {
      %186 = tpu.iota {dimensions = array<i32: 0>} : vector<24x64xi32>
      %c19_i32 = arith.constant 19 : i32
      %187 = vector.broadcast %c19_i32 : i32 to vector<24x64xi32>
      %188 = arith.cmpi slt, %186, %187 : vector<24x64xi32>
      %cst_80 = arith.constant 0.000000e+00 : f32
      %189 = vector.broadcast %cst_80 : f32 to vector<24x64xf32>
      %190 = arith.select %188, %181, %189 : vector<24x64xi1>, vector<24x64xf32>
      %cst_81 = arith.constant dense<0.000000e+00> : vector<64xf32>
      %191 = vector.multi_reduction <add>, %190, %cst_81 [0] : vector<24x64xf32> to vector<64xf32>
      %192 = vector.shape_cast %191 : vector<64xf32> to vector<1x64xf32>
      %cst_82 = arith.constant 0.0526315793 : f32
      %193 = vector.broadcast %cst_82 : f32 to vector<1x64xf32>
      %194 = arith.mulf %192, %193 : vector<1x64xf32>
      %195 = arith.truncf %194 : vector<1x64xf32> to vector<1x64xbf16>
      %c0_83 = arith.constant 0 : index
      %c0_84 = arith.constant 0 : index
      %196 = vector.load %arg16[%c0_83, %c0_84] : memref<64x48xbf16, #tpu.memory_space<vmem>>, vector<64x48xbf16>
      %cst_85 = arith.constant dense<0.000000e+00> : vector<1x48xf32>
      %197 = tpu.matmul %195, %196, %cst_85 {dimension_numbers = #tpu.dot_dimension_numbers<[1], [0], [0], [1], [0, 0, 1, 1], [], []>} : vector<1x64xbf16>, vector<64x48xbf16>, vector<1x48xf32> -> vector<1x48xf32>
      %c0_86 = arith.constant 0 : index
      %c0_87 = arith.constant 0 : index
      %198 = vector.load %arg17[%c0_86, %c0_87] : memref<1x48xf32, #tpu.memory_space<vmem>>, vector<1x48xf32>
      %199 = arith.addf %197, %198 : vector<1x48xf32>
      %200 = math.tanh %199 : vector<1x48xf32>
      %201 = arith.truncf %200 : vector<1x48xf32> to vector<1x48xbf16>
      %c0_88 = arith.constant 0 : index
      %c0_89 = arith.constant 0 : index
      %202 = vector.load %arg18[%c0_88, %c0_89] : memref<48x8xbf16, #tpu.memory_space<vmem>>, vector<48x8xbf16>
      %cst_90 = arith.constant dense<0.000000e+00> : vector<1x8xf32>
      %203 = tpu.matmul %201, %202, %cst_90 {dimension_numbers = #tpu.dot_dimension_numbers<[1], [0], [0], [1], [0, 0, 1, 1], [], []>} : vector<1x48xbf16>, vector<48x8xbf16>, vector<1x8xf32> -> vector<1x8xf32>
      %c0_91 = arith.constant 0 : index
      %c0_92 = arith.constant 0 : index
      %204 = vector.load %arg19[%c0_91, %c0_92] : memref<1x8xf32, #tpu.memory_space<vmem>>, vector<1x8xf32>
      %205 = arith.addf %203, %204 : vector<1x8xf32>
      %206 = vector.shape_cast %205 : vector<1x8xf32> to vector<1x8xf32>
      %207 = vector.broadcast %206 : vector<1x8xf32> to vector<8x8xf32>
      %c0_93 = arith.constant 0 : index
      %c0_94 = arith.constant 0 : index
      %c0_95 = arith.constant 0 : index
      %208 = vector.load %arg20[%c0_93, %c0_94, %c0_95] : memref<1x8x8xf32, #tpu.memory_space<vmem>>, vector<1x8x8xf32>
      %209 = vector.shape_cast %208 : vector<1x8x8xf32> to vector<8x8xf32>
      %210 = vector.shape_cast %207 : vector<8x8xf32> to vector<1x8x8xf32>
      tpu.vector_store %arg20[%c0_93, %c0_94, %c0_95], %210 {strides = array<i32>} : memref<1x8x8xf32, #tpu.memory_space<vmem>>, vector<1x8x8xf32>,
    } else {
    }
    return
  }
  func.func @transform_0(%arg0: i32, %arg1: i32) -> (i32, i32, i32) {
    %c0_i32 = arith.constant 0 : i32
    %c0_i32_0 = arith.constant 0 : i32
    %c0_i32_1 = arith.constant 0 : i32
    return %arg0, %c0_i32, %c0_i32_0 : i32, i32, i32
  }
  func.func @transform_1(%arg0: i32, %arg1: i32) -> (i32, i32) {
    %c0_i32 = arith.constant 0 : i32
    %c0_i32_0 = arith.constant 0 : i32
    %c0_i32_1 = arith.constant 0 : i32
    return %c0_i32, %c0_i32_0 : i32, i32
  }
  func.func @transform_2(%arg0: i32, %arg1: i32) -> (i32, i32, i32) {
    %c0_i32 = arith.constant 0 : i32
    %c0_i32_0 = arith.constant 0 : i32
    %c0_i32_1 = arith.constant 0 : i32
    return %arg1, %c0_i32, %c0_i32_0 : i32, i32, i32
  }
  func.func @transform_3(%arg0: i32, %arg1: i32) -> (i32, i32, i32) {
    %c0_i32 = arith.constant 0 : i32
    %c0_i32_0 = arith.constant 0 : i32
    %c0_i32_1 = arith.constant 0 : i32
    return %arg1, %c0_i32, %c0_i32_0 : i32, i32, i32
  }
  func.func @transform_4(%arg0: i32, %arg1: i32) -> (i32, i32, i32) {
    %c0_i32 = arith.constant 0 : i32
    %c0_i32_0 = arith.constant 0 : i32
    %c0_i32_1 = arith.constant 0 : i32
    return %arg1, %c0_i32, %c0_i32_0 : i32, i32, i32
  }
  func.func @transform_5(%arg0: i32, %arg1: i32) -> (i32, i32, i32) {
    %c0_i32 = arith.constant 0 : i32
    %c0_i32_0 = arith.constant 0 : i32
    %c0_i32_1 = arith.constant 0 : i32
    return %arg1, %c0_i32, %c0_i32_0 : i32, i32, i32
  }
  func.func @transform_6(%arg0: i32, %arg1: i32) -> (i32, i32, i32) {
    %c0_i32 = arith.constant 0 : i32
    %c0_i32_0 = arith.constant 0 : i32
    %c0_i32_1 = arith.constant 0 : i32
    return %arg1, %c0_i32, %c0_i32_0 : i32, i32, i32
  }
  func.func @transform_7(%arg0: i32, %arg1: i32) -> (i32, i32, i32) {
    %c0_i32 = arith.constant 0 : i32
    %c0_i32_0 = arith.constant 0 : i32
    %c0_i32_1 = arith.constant 0 : i32
    return %arg1, %c0_i32, %c0_i32_0 : i32, i32, i32
  }
  func.func @transform_8(%arg0: i32, %arg1: i32) -> (i32, i32, i32) {
    %c0_i32 = arith.constant 0 : i32
    %c0_i32_0 = arith.constant 0 : i32
    %c0_i32_1 = arith.constant 0 : i32
    return %arg1, %c0_i32, %c0_i32_0 : i32, i32, i32
  }
  func.func @transform_9(%arg0: i32, %arg1: i32) -> (i32, i32, i32) {
    %c0_i32 = arith.constant 0 : i32
    %c0_i32_0 = arith.constant 0 : i32
    %c0_i32_1 = arith.constant 0 : i32
    return %arg1, %c0_i32, %c0_i32_0 : i32, i32, i32
  }
  func.func @transform_10(%arg0: i32, %arg1: i32) -> (i32, i32, i32) {
    %c0_i32 = arith.constant 0 : i32
    %c0_i32_0 = arith.constant 0 : i32
    %c0_i32_1 = arith.constant 0 : i32
    return %arg1, %c0_i32, %c0_i32_0 : i32, i32, i32
  }
  func.func @transform_11(%arg0: i32, %arg1: i32) -> (i32, i32, i32) {
    %c0_i32 = arith.constant 0 : i32
    %c0_i32_0 = arith.constant 0 : i32
    %c0_i32_1 = arith.constant 0 : i32
    return %arg1, %c0_i32, %c0_i32_0 : i32, i32, i32
  }
  func.func @transform_12(%arg0: i32, %arg1: i32) -> (i32, i32, i32) {
    %c0_i32 = arith.constant 0 : i32
    %c0_i32_0 = arith.constant 0 : i32
    %c0_i32_1 = arith.constant 0 : i32
    return %arg1, %c0_i32, %c0_i32_0 : i32, i32, i32
  }
  func.func @transform_13(%arg0: i32, %arg1: i32) -> (i32, i32, i32) {
    %c0_i32 = arith.constant 0 : i32
    %c0_i32_0 = arith.constant 0 : i32
    %c0_i32_1 = arith.constant 0 : i32
    return %arg1, %c0_i32, %c0_i32_0 : i32, i32, i32
  }
  func.func @transform_14(%arg0: i32, %arg1: i32) -> (i32, i32) {
    %c0_i32 = arith.constant 0 : i32
    %c0_i32_0 = arith.constant 0 : i32
    %c0_i32_1 = arith.constant 0 : i32
    return %c0_i32, %c0_i32_0 : i32, i32
  }
  func.func @transform_15(%arg0: i32, %arg1: i32) -> (i32, i32) {
    %c0_i32 = arith.constant 0 : i32
    %c0_i32_0 = arith.constant 0 : i32
    %c0_i32_1 = arith.constant 0 : i32
    return %c0_i32, %c0_i32_0 : i32, i32
  }
  func.func @transform_16(%arg0: i32, %arg1: i32) -> (i32, i32) {
    %c0_i32 = arith.constant 0 : i32
    %c0_i32_0 = arith.constant 0 : i32
    %c0_i32_1 = arith.constant 0 : i32
    return %c0_i32, %c0_i32_0 : i32, i32
  }
  func.func @transform_17(%arg0: i32, %arg1: i32) -> (i32, i32) {
    %c0_i32 = arith.constant 0 : i32
    %c0_i32_0 = arith.constant 0 : i32
    %c0_i32_1 = arith.constant 0 : i32
    return %c0_i32, %c0_i32_0 : i32, i32
  }
  func.func @transform_18(%arg0: i32, %arg1: i32) -> (i32, i32, i32) {
    %c0_i32 = arith.constant 0 : i32
    %c0_i32_0 = arith.constant 0 : i32
    %c0_i32_1 = arith.constant 0 : i32
    return %arg0, %c0_i32, %c0_i32_0 : i32, i32, i32
  }
}

</mosaic_0001>

<bundles_post_ra>
// kernel: hubert_forward.6
= control target key start
LH: loop header
LB: loop body
LE: loop exit
PB: predicated region body
PF: predicated region fallthrough
CT: control target
= control target key end

     0   :  { %vm136_vm0 = vcmask 1044480   ;;  %vm105_vm1 = vcmask 80896   ;;  %vm255_vm2 = vcmask 261120   ;;  %s1481_s1 = inlined_call_operand.vmem [shape: bf16[10,32], index: 1, kind: input, shape index: {}]   ;;  %s1482_s0 = inlined_call_operand.vmem [shape: bf16[160,10], index: 0, kind: input, shape index: {}]   ;;  %s1483_s2 = inlined_call_operand.vmem [shape: f32[1,32], index: 2, kind: input, shape index: {}]   ;;  %s1484_s3 = inlined_call_operand.vmem [shape: f32[1,32], index: 3, kind: input, shape index: {}]   ;;  %s1485_s4 = inlined_call_operand.vmem [shape: f32[1,32], index: 4, kind: input, shape index: {}]   ;;  %s1486_s5 = inlined_call_operand.vmem [shape: f32[160,32], index: 5, kind: output, shape index: {}]  }
   0x1   :  { %v834_v0 = vld [vmem:[%s1481_s1] sm:$0x1f]   ;;  %v836_v3 = vld [vmem:[%s1482_s0 + $0x30] sm:$0xff]   ;;  %v837_v4 = vld [vmem:[%s1482_s0 + $0x8] sm:$0xff]  }
   0x2   :  { %v835_v1 = vld [vmem:[%s1482_s0] sm:$0xff]   ;;  %832 = vmatprep.subr.msk.bf16.mxu0 %vm136_vm0, %v834_v0  ;;  %833 = vmatprep.subr.msk.bf16.mxu1 %vm136_vm0, %v834_v0  ;;  %v138_v2 = vsel %vm136_vm0, %v834_v0, 0  ;;  %v838_v5 = vld [vmem:[%s1482_s0 + $0x38] sm:$0xff]   ;;  %v839_v6 = vld [vmem:[%s1482_s0 + $0x10] sm:$0xff]  }
   0x3   :  { %809 = vmatpush3.bf16.msra.mxu0 %v138_v2  ;;  %831 = vmatpush3.bf16.msra.mxu1 %v138_v2  ;;  %v841_v7 = vld [vmem:[%s1482_s0 + $0x40] sm:$0xff]   ;;  %v840_v8 = vld [vmem:[%s1482_s0 + $0x18] sm:$0xff]   ;;  %v842_v9 = vld [vmem:[%s1482_s0 + $0x48] sm:$0xff]  }
   0x4   :  { %810 = vmatprep.mubr.msk.bf16.mxu0 %vm105_vm1, %v835_v1  ;;  %822 = vmatprep.mubr.msk.bf16.mxu1 %vm105_vm1, %v836_v3  ;;  %v843_v10 = vld [vmem:[%s1482_s0 + $0x20] sm:$0xff]   ;;  %v844_v11 = vld [vmem:[%s1482_s0 + $0x28] sm:$0xff]  }
   0x5   :  { %v1001_v12 = vld [vmem:[%s1483_s2] ss:$0 sm:$0xff] }
   0x6   :  { %811 = vmatmul.mubr.msk.bf16.vlgmr.msra.gmra.mxu0 %vm105_vm1, %v837_v4  ;;  %823 = vmatmul.mubr.msk.bf16.vlgmr.msra.gmra.mxu1 %vm105_vm1, %v838_v5 }
   0x7   :  { %814 = vmatprep.mubr.msk.bf16.mxu0 %vm105_vm1, %v839_v6  ;;  %826 = vmatprep.mubr.msk.bf16.mxu1 %vm105_vm1, %v841_v7 }
   0xe   :  { %815 = vmatmul.mubr.msk.bf16.gmra.mxu0 %vm105_vm1, %v840_v8  ;;  %827 = vmatmul.mubr.msk.bf16.gmra.mxu1 %vm105_vm1, %v842_v9 }
   0xf   :  { %818 = vmatprep.mubr.msk.bf16.mxu0 %vm105_vm1, %v843_v10 }
  0x16   :  { %819 = vmatmul.mubr.msk.bf16.gmra.mxu0 %vm105_vm1, %v844_v11 }
  0xc6   :  { %v812_v13 = vpop.f32.mrf.mxu0  ;;  %v824_v14 = vpop.f32.mrf.mxu1 }
  0xc7   :  { %v1004_v15 = vadd.f32 %v812_v13, %v1001_v12  ;;  %v1007_v16 = vadd.f32 %v824_v14, %v1001_v12 }
  0xc8   :  { %v174_v17 = vpop.f32.mrf.mxu0  ;;  %v222_v18 = vpop.f32.mrf.mxu1 }
  0xc9   :  { %v1010_v19 = vadd.f32 %v1001_v12, %v174_v17  ;;  %v298_v20 = vsel %vm255_vm2, %v1007_v16, 0.0  ;;  %v262_v21 = vsel %vm255_vm2, %v1004_v15, 0.0  ;;  %v1020_v27 = vadd.f32 %v1001_v12, %v222_v18 }
  0xca   :  { %299 = vadd.xlane.f32.xlu0 %v298_v20  ;;  %v825_v22 = vpop.f32.mrf.mxu1  ;;  %263 = vadd.xlane.f32.xlu1 %v262_v21  ;;  %v813_v23 = vpop.f32.mrf.mxu0 }
  0xcb   :  { %v1017_v24 = vadd.f32 %v813_v23, %v1001_v12  ;;  %v1023_v28 = vadd.f32 %v825_v22, %v1001_v12  ;;  %v256_v30 = vsel %vm255_vm2, %v1010_v19, 0.0  ;;  %v292_v37 = vsel %vm255_vm2, %v1020_v27, 0.0 }
  0xcc   :  { %v177_v25 = vpop.f32.mrf.mxu0  ;;  %v225_v26 = vpop.f32.mrf.mxu1 }
  0xcd   :  { %v265_v29 = vsel %vm255_vm2, %v1017_v24, 0.0  ;;  %v1030_v34 = vadd.f32 %v1001_v12, %v177_v25  ;;  %v1033_v35 = vadd.f32 %v1001_v12, %v225_v26  ;;  %v301_v36 = vsel %vm255_vm2, %v1023_v28, 0.0 }
  0xce   :  { %266 = vadd.xlane.f32.xlu1 %v265_v29  ;;  %257 = vadd.xlane.f32.xlu0 %v256_v30  ;;  %v816_v31 = vpop.f32.mrf.mxu0  ;;  %v828_v32 = vpop.f32.mrf.mxu1 }
  0xcf   :  { %v1040_v40 = vadd.f32 %v816_v31, %v1001_v12  ;;  %v295_v43 = vsel %vm255_vm2, %v1033_v35, 0.0  ;;  %v259_v44 = vsel %vm255_vm2, %v1030_v34, 0.0  ;;  %v1090_v3 = vadd.f32 %v828_v32, %v1001_v12 }
  0xd0   :  { %v190_v33 = vpop.f32.mrf.mxu0  ;;  %v238_v39 = vpop.f32.mrf.mxu1 }
  0xd1   :  { %v274_v48 = vsel %vm255_vm2, %v1040_v40, 0.0  ;;  %v1054_v49 = vadd.f32 %v1001_v12, %v190_v33  ;;  %v1060_v53 = vadd.f32 %v1001_v12, %v238_v39  ;;  %v310_v8 = vsel %vm255_vm2, %v1090_v3, 0.0 }
  0xd2   :  { %302 = vadd.xlane.f32.xlu1 %v301_v36  ;;  %293 = vadd.xlane.f32.xlu0 %v292_v37  ;;  %v817_v38 = vpop.f32.mrf.mxu0  ;;  %v829_v45 = vpop.f32.mrf.mxu1 }
  0xd3   :  { %v1043_v41 = vadd.f32 %v817_v38, %v1001_v12  ;;  %v268_v56 = vsel %vm255_vm2, %v1054_v49, 0.0  ;;  %v304_v61 = vsel %vm255_vm2, %v1060_v53, 0.0  ;;  %v1093_v4 = vadd.f32 %v829_v45, %v1001_v12 }
  0xd4   :  { %v193_v42 = vpop.f32.mrf.mxu0  ;;  %v241_v51 = vpop.f32.mrf.mxu1 }
  0xd5   :  { %v277_v47 = vsel %vm255_vm2, %v1043_v41, 0.0  ;;  %v1057_v50 = vadd.f32 %v1001_v12, %v193_v42  ;;  %v1063_v54 = vadd.f32 %v1001_v12, %v241_v51  ;;  %v313_v7 = vsel %vm255_vm2, %v1093_v4, 0.0 }
  0xd6   :  { %296 = vadd.xlane.f32.xlu1 %v295_v43  ;;  %260 = vadd.xlane.f32.xlu0 %v259_v44  ;;  %v820_v46 = vpop.f32.mrf.mxu0 }
  0xd7   :  { %v271_v55 = vsel %vm255_vm2, %v1057_v50, 0.0  ;;  %v1070_v58 = vadd.f32 %v820_v46, %v1001_v12  ;;  %v307_v60 = vsel %vm255_vm2, %v1063_v54, 0.0 }
  0xd8   :  { %v206_v52 = vpop.f32.mrf.mxu0 }
  0xd9   :  { %v286_v0 = vsel %vm255_vm2, %v1070_v58, 0.0  ;;  %v1084_v1 = vadd.f32 %v1001_v12, %v206_v52 }
  0xda   :  { %278 = vadd.xlane.f32.xlu1 %v277_v47  ;;  %275 = vadd.xlane.f32.xlu0 %v274_v48  ;;  %v821_v57 = vpop.f32.mrf.mxu0 }
  0xdb   :  { %v1073_v59 = vadd.f32 %v821_v57, %v1001_v12  ;;  %v280_v6 = vsel %vm255_vm2, %v1084_v1, 0.0 }
  0xdc   :  { %v209_v62 = vpop.f32.mrf.mxu0 }
  0xdd   :  { %v289_v63 = vsel %vm255_vm2, %v1073_v59, 0.0  ;;  %v1087_v2 = vadd.f32 %v1001_v12, %v209_v62 }
  0xde   :  { %272 = vadd.xlane.f32.xlu1 %v271_v55  ;;  %269 = vadd.xlane.f32.xlu0 %v268_v56 }
  0xdf   :  { %v283_v5 = vsel %vm255_vm2, %v1087_v2, 0.0 }
  0xe2   :  { %308 = vadd.xlane.f32.xlu1 %v307_v60  ;;  %305 = vadd.xlane.f32.xlu0 %v304_v61 }
  0xe6   :  { %290 = vadd.xlane.f32.xlu1 %v289_v63  ;;  %287 = vadd.xlane.f32.xlu0 %v286_v0 }
  0xea   :  { %284 = vadd.xlane.f32.xlu1 %v283_v5  ;;  %281 = vadd.xlane.f32.xlu0 %v280_v6 }
  0xee   :  { %314 = vadd.xlane.f32.xlu1 %v313_v7  ;;  %311 = vadd.xlane.f32.xlu0 %v310_v8 }
 0x153   :  { %v300_v9 = vpop.xlane.xlu0 %299  ;;  %v264_v10 = vpop.xlane.xlu1 %263 }
 0x154   :  { %v331_v11 = vmul.f32 0.03125, %v300_v9  ;;  %v319_v12 = vmul.f32 0.03125, %v264_v10 }
 0x156   :  { %v1104_v13 = vsub.f32 %v1007_v16, %v331_v11  ;;  %v1107_v14 = vsub.f32 %v1004_v15, %v319_v12 }
 0x157   :  { %v267_v17 = vpop.xlane.xlu1 %266  ;;  %v258_v18 = vpop.xlane.xlu0 %257 }
 0x158   :  { %v320_v20 = vmul.f32 0.03125, %v267_v17  ;;  %v317_v21 = vmul.f32 0.03125, %v258_v18  ;;  %v359_v22 = vmul.f32 %v1107_v14, %v1107_v14  ;;  %v371_v16 = vmul.f32 %v1104_v13, %v1104_v13 }
 0x15a   :  { %v1112_v23 = vsub.f32 %v1017_v24, %v320_v20  ;;  %v1115_v25 = vsub.f32 %v1010_v19, %v317_v21  ;;  %v383_v26 = vsel %vm255_vm2, %v359_v22, 0.0  ;;  %v419_v37 = vsel %vm255_vm2, %v371_v16, 0.0 }
 0x15b   :  { %v303_v15 = vpop.xlane.xlu1 %302  ;;  %384 = vadd.xlane.f32.xlu0 %v383_v26  ;;  %v294_v29 = vpop.xlane.xlu0 %293 }
 0x15c   :  { %v332_v30 = vmul.f32 0.03125, %v303_v15  ;;  %v329_v31 = vmul.f32 0.03125, %v294_v29  ;;  %v360_v32 = vmul.f32 %v1112_v23, %v1112_v23  ;;  %v357_v24 = vmul.f32 %v1115_v25, %v1115_v25 }
 0x15e   :  { %v1125_v33 = vsub.f32 %v1023_v28, %v332_v30  ;;  %v1128_v19 = vsub.f32 %v1020_v27, %v329_v31  ;;  %v386_v36 = vsel %vm255_vm2, %v360_v32, 0.0  ;;  %v377_v45 = vsel %vm255_vm2, %v357_v24, 0.0 }
 0x15f   :  { %v297_v38 = vpop.xlane.xlu1 %296  ;;  %387 = vadd.xlane.f32.xlu1 %v386_v36  ;;  %420 = vadd.xlane.f32.xlu0 %v419_v37  ;;  %v261_v39 = vpop.xlane.xlu0 %260 }
 0x160   :  { %v330_v42 = vmul.f32 0.03125, %v297_v38  ;;  %v318_v43 = vmul.f32 0.03125, %v261_v39  ;;  %v372_v44 = vmul.f32 %v1125_v33, %v1125_v33  ;;  %v369_v47 = vmul.f32 %v1128_v19, %v1128_v19 }
 0x162   :  { %v1136_v28 = vsub.f32 %v1033_v35, %v330_v42  ;;  %v1139_v27 = vsub.f32 %v1030_v34, %v318_v43  ;;  %v422_v46 = vsel %vm255_vm2, %v372_v44, 0.0  ;;  %v413_v60 = vsel %vm255_vm2, %v369_v47, 0.0 }
 0x163   :  { %v279_v48 = vpop.xlane.xlu1 %278  ;;  %423 = vadd.xlane.f32.xlu1 %v422_v46  ;;  %378 = vadd.xlane.f32.xlu0 %v377_v45  ;;  %v276_v51 = vpop.xlane.xlu0 %275 }
 0x164   :  { %v324_v52 = vmul.f32 0.03125, %v279_v48  ;;  %v323_v55 = vmul.f32 0.03125, %v276_v51  ;;  %v358_v56 = vmul.f32 %v1139_v27, %v1139_v27  ;;  %v370_v35 = vmul.f32 %v1136_v28, %v1136_v28 }
 0x166   :  { %v1149_v34 = vsub.f32 %v1043_v41, %v324_v52  ;;  %v1152_v57 = vsub.f32 %v1040_v40, %v323_v55  ;;  %v380_v61 = vsel %vm255_vm2, %v358_v56, 0.0  ;;  %v416_v7 = vsel %vm255_vm2, %v370_v35, 0.0 }
 0x167   :  { %v273_v62 = vpop.xlane.xlu1 %272  ;;  %414 = vadd.xlane.f32.xlu0 %v413_v60  ;;  %381 = vadd.xlane.f32.xlu1 %v380_v61  ;;  %v270_v63 = vpop.xlane.xlu0 %269 }
 0x168   :  { %v322_v0 = vmul.f32 0.03125, %v273_v62  ;;  %v321_v5 = vmul.f32 0.03125, %v270_v63  ;;  %v363_v6 = vmul.f32 %v1152_v57, %v1152_v57  ;;  %v364_v9 = vmul.f32 %v1149_v34, %v1149_v34 }
 0x16a   :  { %v1160_v41 = vsub.f32 %v1057_v50, %v322_v0  ;;  %v1163_v40 = vsub.f32 %v1054_v49, %v321_v5  ;;  %v395_v8 = vsel %vm255_vm2, %v363_v6, 0.0  ;;  %v398_v21 = vsel %vm255_vm2, %v364_v9, 0.0 }
 0x16b   :  { %v309_v10 = vpop.xlane.xlu1 %308  ;;  %417 = vadd.xlane.f32.xlu1 %v416_v7  ;;  %396 = vadd.xlane.f32.xlu0 %v395_v8  ;;  %v306_v11 = vpop.xlane.xlu0 %305 }
 0x16c   :  { %v334_v12 = vmul.f32 0.03125, %v309_v10  ;;  %v333_v17 = vmul.f32 0.03125, %v306_v11  ;;  %v361_v18 = vmul.f32 %v1163_v40, %v1163_v40  ;;  %v362_v50 = vmul.f32 %v1160_v41, %v1160_v41 }
 0x16e   :  { %v1173_v49 = vsub.f32 %v1063_v54, %v334_v12  ;;  %v1176_v20 = vsub.f32 %v1060_v53, %v333_v17  ;;  %v389_v22 = vsel %vm255_vm2, %v361_v18, 0.0  ;;  %v392_v31 = vsel %vm255_vm2, %v362_v50, 0.0 }
 0x16f   :  { %v291_v26 = vpop.xlane.xlu1 %290  ;;  %399 = vadd.xlane.f32.xlu1 %v398_v21  ;;  %390 = vadd.xlane.f32.xlu0 %v389_v22  ;;  %v288_v16 = vpop.xlane.xlu0 %287 }
 0x170   :  { %v328_v15 = vmul.f32 0.03125, %v291_v26  ;;  %v327_v29 = vmul.f32 0.03125, %v288_v16  ;;  %v373_v30 = vmul.f32 %v1176_v20, %v1176_v20  ;;  %v374_v24 = vmul.f32 %v1173_v49, %v1173_v49 }
 0x172   :  { %v1184_v54 = vsub.f32 %v1073_v59, %v328_v15  ;;  %v1187_v53 = vsub.f32 %v1070_v58, %v327_v29  ;;  %v425_v32 = vsel %vm255_vm2, %v373_v30, 0.0  ;;  %v428_v44 = vsel %vm255_vm2, %v374_v24, 0.0 }
 0x173   :  { %v285_v36 = vpop.xlane.xlu1 %284  ;;  %393 = vadd.xlane.f32.xlu1 %v392_v31  ;;  %426 = vadd.xlane.f32.xlu0 %v425_v32  ;;  %v282_v37 = vpop.xlane.xlu0 %281 }
 0x174   :  { %v326_v38 = vmul.f32 0.03125, %v285_v36  ;;  %v325_v39 = vmul.f32 0.03125, %v282_v37  ;;  %v367_v42 = vmul.f32 %v1187_v53, %v1187_v53  ;;  %v368_v59 = vmul.f32 %v1184_v54, %v1184_v54 }
 0x176   :  { %v1197_v58 = vsub.f32 %v1087_v2, %v326_v38  ;;  %v1200_v43 = vsub.f32 %v1084_v1, %v325_v39  ;;  %v407_v45 = vsel %vm255_vm2, %v367_v42, 0.0  ;;  %v410_v55 = vsel %vm255_vm2, %v368_v59, 0.0  ;;  %v1226_v39 = vld [vmem:[%s1484_s3] ss:$0 sm:$0xff] }
 0x177   :  { %v315_v46 = vpop.xlane.xlu1 %314  ;;  %429 = vadd.xlane.f32.xlu1 %v428_v44  ;;  %408 = vadd.xlane.f32.xlu0 %v407_v45  ;;  %v312_v47 = vpop.xlane.xlu0 %311  ;;  %v1232_v45 = vld [vmem:[%s1485_s4] ss:$0 sm:$0xff] }
 0x178   :  { %v336_v48 = vmul.f32 0.03125, %v315_v46  ;;  %v335_v51 = vmul.f32 0.03125, %v312_v47  ;;  %v365_v52 = vmul.f32 %v1200_v43, %v1200_v43  ;;  %v366_v35 = vmul.f32 %v1197_v58, %v1197_v58 }
 0x17a   :  { %v1208_v2 = vsub.f32 %v1093_v4, %v336_v48  ;;  %v1211_v1 = vsub.f32 %v1090_v3, %v335_v51  ;;  %v401_v56 = vsel %vm255_vm2, %v365_v52, 0.0  ;;  %v404_v61 = vsel %vm255_vm2, %v366_v35, 0.0 }
 0x17b   :  { %411 = vadd.xlane.f32.xlu1 %v410_v55  ;;  %402 = vadd.xlane.f32.xlu0 %v401_v56 }
 0x17c   :  { %v375_v60 = vmul.f32 %v1211_v1, %v1211_v1  ;;  %v376_v4 = vmul.f32 %v1208_v2, %v1208_v2 }
 0x17e   :  { %v431_v62 = vsel %vm255_vm2, %v375_v60, 0.0  ;;  %v434_v3 = vsel %vm255_vm2, %v376_v4, 0.0 }
 0x17f   :  { %405 = vadd.xlane.f32.xlu1 %v404_v61  ;;  %432 = vadd.xlane.f32.xlu0 %v431_v62 }
 0x183   :  { %435 = vadd.xlane.f32.xlu1 %v434_v3 }
 0x1e4   :  { %v385_v63 = vpop.xlane.xlu0 %384 }
 0x1e5   :  { %v439_v0 = vmul.f32 0.03125, %v385_v63 }
 0x1e7   :  { %v459_v5 = vadd.f32 1e-05, %v439_v0 }
 0x1e8   :  { %v388_v6 = vpop.xlane.xlu1 %387  ;;  %v421_v7 = vpop.xlane.xlu0 %420 }
 0x1e9   :  { %845 = vrsqrt.f32 %v459_v5  ;;  %v440_v8 = vmul.f32 0.03125, %v388_v6  ;;  %v451_v9 = vmul.f32 0.03125, %v421_v7 }
 0x1eb   :  { %v460_v10 = vadd.f32 1e-05, %v440_v8  ;;  %v471_v11 = vadd.f32 1e-05, %v451_v9 }
 0x1ec   :  { %v424_v12 = vpop.xlane.xlu1 %423  ;;  %v379_v17 = vpop.xlane.xlu0 %378 }
 0x1ed   :  { %847 = vrsqrt.f32 %v460_v10  ;;  %v452_v18 = vmul.f32 0.03125, %v424_v12  ;;  %v437_v50 = vmul.f32 0.03125, %v379_v17 }
 0x1ee   :  { %849 = vrsqrt.f32 %v471_v11 }
 0x1ef   :  { %v472_v21 = vadd.f32 1e-05, %v452_v18  ;;  %v457_v22 = vadd.f32 1e-05, %v437_v50 }
 0x1f0   :  { %v382_v26 = vpop.xlane.xlu1 %381  ;;  %v415_v16 = vpop.xlane.xlu0 %414 }
 0x1f1   :  { %851 = vrsqrt.f32 %v472_v21  ;;  %v438_v15 = vmul.f32 0.03125, %v382_v26  ;;  %v449_v29 = vmul.f32 0.03125, %v415_v16 }
 0x1f2   :  { %853 = vrsqrt.f32 %v457_v22 }
 0x1f3   :  { %v458_v30 = vadd.f32 1e-05, %v438_v15  ;;  %v469_v31 = vadd.f32 1e-05, %v449_v29 }
 0x1f4   :  { %v418_v32 = vpop.xlane.xlu1 %417  ;;  %v397_v24 = vpop.xlane.xlu0 %396 }
 0x1f5   :  { %855 = vrsqrt.f32 %v458_v30  ;;  %v450_v36 = vmul.f32 0.03125, %v418_v32  ;;  %v443_v37 = vmul.f32 0.03125, %v397_v24 }
 0x1f6   :  { %v846_v38 = vpop.eup %845  ;;  %857 = vrsqrt.f32 %v469_v31 }
 0x1f7   :  { %v499_v42 = vmul.f32 %v846_v38, %v1107_v14  ;;  %v470_v59 = vadd.f32 1e-05, %v450_v36  ;;  %v463_v44 = vadd.f32 1e-05, %v443_v37 }
 0x1f8   :  { %v400_v46 = vpop.xlane.xlu1 %399  ;;  %v391_v47 = vpop.xlane.xlu0 %390 }
 0x1f9   :  { %v525_v48 = vmul.f32 %v1226_v39, %v499_v42  ;;  %859 = vrsqrt.f32 %v470_v59  ;;  %v444_v51 = vmul.f32 0.03125, %v400_v46  ;;  %v441_v52 = vmul.f32 0.03125, %v391_v47 }
 0x1fa   :  { %v848_v55 = vpop.eup %847  ;;  %861 = vrsqrt.f32 %v463_v44 }
 0x1fb   :  { %v850_v56 = vpop.eup %849  ;;  %v1236_v35 = vadd.f32 %v1232_v45, %v525_v48  ;;  %v500_v14 = vmul.f32 %v848_v55, %v1112_v23  ;;  %v464_v60 = vadd.f32 1e-05, %v444_v51  ;;  %v461_v61 = vadd.f32 1e-05, %v441_v52 }
 0x1fc   :  { %v511_v62 = vmul.f32 %v850_v56, %v1104_v13  ;;  %v394_v4 = vpop.xlane.xlu1 %393  ;;  %v427_v3 = vpop.xlane.xlu0 %426 }
 0x1fd   :  { %v591_v63 = vmul.f32 0.044715, %v1236_v35  ;;  %v526_v0 = vmul.f32 %v1226_v39, %v500_v14  ;;  %863 = vrsqrt.f32 %v464_v60  ;;  %v442_v7 = vmul.f32 0.03125, %v394_v4 }
 0x1fe   :  { %v852_v5 = vpop.eup %851  ;;  %v537_v6 = vmul.f32 %v1226_v39, %v511_v62  ;;  %865 = vrsqrt.f32 %v461_v61  ;;  %v453_v8 = vmul.f32 0.03125, %v427_v3 }
 0x1ff   :  { %v854_v9 = vpop.eup %853  ;;  %v611_v23 = vmul.f32 %v591_v63, %v1236_v35  ;;  %v1245_v10 = vadd.f32 %v1232_v45, %v526_v0  ;;  %v512_v13 = vmul.f32 %v852_v5, %v1125_v33  ;;  %v462_v17 = vadd.f32 1e-05, %v442_v7 }
 0x200   :  { %v1249_v11 = vadd.f32 %v1232_v45, %v537_v6  ;;  %v497_v12 = vmul.f32 %v854_v9, %v1115_v25  ;;  %v473_v15 = vadd.f32 1e-05, %v453_v8  ;;  %v571_v7 = vmul.f32 0.5, %v1236_v35 }
 0x201   :  { %v631_v18 = vmul.f32 %v611_v23, %v1236_v35  ;;  %v592_v50 = vmul.f32 0.044715, %v1245_v10  ;;  %v538_v21 = vmul.f32 %v1226_v39, %v512_v13  ;;  %867 = vrsqrt.f32 %v462_v17 }
 0x202   :  { %v856_v22 = vpop.eup %855  ;;  %v603_v26 = vmul.f32 0.044715, %v1249_v11  ;;  %v523_v16 = vmul.f32 %v1226_v39, %v497_v12  ;;  %869 = vrsqrt.f32 %v473_v15 }
 0x203   :  { %v858_v33 = vpop.eup %857  ;;  %v651_v29 = vadd.f32 %v631_v18, %v1236_v35  ;;  %v612_v30 = vmul.f32 %v592_v50, %v1245_v10  ;;  %v1260_v25 = vadd.f32 %v1232_v45, %v538_v21  ;;  %v498_v31 = vmul.f32 %v856_v22, %v1139_v27 }
 0x204   :  { %v623_v32 = vmul.f32 %v603_v26, %v1249_v11  ;;  %v1265_v24 = vadd.f32 %v1232_v45, %v523_v16  ;;  %v509_v36 = vmul.f32 %v858_v33, %v1128_v19 }
 0x205   :  { %v671_v37 = vmul.f32 0.7978846, %v651_v29  ;;  %v632_v38 = vmul.f32 %v612_v30, %v1245_v10  ;;  %v604_v42 = vmul.f32 0.044715, %v1260_v25  ;;  %v524_v47 = vmul.f32 %v1226_v39, %v498_v31  ;;  %v1308_v29 = vpop.xlane.xlu1 %429 }
 0x206   :  { %v860_v59 = vpop.eup %859  ;;  %v643_v44 = vmul.f32 %v623_v32, %v1249_v11  ;;  %v589_v46 = vmul.f32 0.044715, %v1265_v24  ;;  %v535_v19 = vmul.f32 %v1226_v39, %v509_v36 }
 0x207   :  { %v862_v27 = vpop.eup %861  ;;  %871 = vtanh.f32 %v671_v37  ;;  %v652_v48 = vadd.f32 %v632_v38, %v1245_v10  ;;  %v624_v51 = vmul.f32 %v604_v42, %v1260_v25  ;;  %v1279_v56 = vadd.f32 %v1232_v45, %v524_v47 }
 0x208   :  { %v663_v52 = vadd.f32 %v643_v44, %v1249_v11  ;;  %v609_v55 = vmul.f32 %v589_v46, %v1265_v24  ;;  %v510_v14 = vmul.f32 %v860_v59, %v1136_v28  ;;  %v1284_v62 = vadd.f32 %v1232_v45, %v535_v19 }
 0x209   :  { %v672_v60 = vmul.f32 0.7978846, %v652_v48  ;;  %v644_v61 = vmul.f32 %v624_v51, %v1260_v25  ;;  %v503_v4 = vmul.f32 %v862_v27, %v1152_v57  ;;  %v590_v5 = vmul.f32 0.044715, %v1279_v56 }
 0x20a   :  { %v864_v3 = vpop.eup %863  ;;  %v683_v63 = vmul.f32 0.7978846, %v663_v52  ;;  %v629_v0 = vmul.f32 %v609_v55, %v1265_v24  ;;  %v601_v8 = vmul.f32 0.044715, %v1284_v62  ;;  %v536_v57 = vmul.f32 %v1226_v39, %v510_v14  ;;  %v409_v55 = vpop.xlane.xlu0 %408 }
 0x20b   :  { %v866_v6 = vpop.eup %865  ;;  %873 = vtanh.f32 %v672_v60  ;;  %v664_v28 = vadd.f32 %v644_v61, %v1260_v25  ;;  %v610_v23 = vmul.f32 %v590_v5, %v1279_v56  ;;  %v529_v17 = vmul.f32 %v1226_v39, %v503_v4  ;;  %v412_v60 = vpop.xlane.xlu1 %411 }
 0x20c   :  { %875 = vtanh.f32 %v683_v63  ;;  %v649_v9 = vadd.f32 %v629_v0, %v1265_v24  ;;  %v621_v12 = vmul.f32 %v601_v8, %v1284_v62  ;;  %v504_v18 = vmul.f32 %v864_v3, %v1149_v34 }
 0x20d   :  { %v684_v13 = vmul.f32 0.7978846, %v664_v28  ;;  %v630_v50 = vmul.f32 %v610_v23, %v1279_v56  ;;  %v1300_v21 = vadd.f32 %v1232_v45, %v536_v57  ;;  %v501_v22 = vmul.f32 %v866_v6, %v1163_v40 }
 0x20e   :  { %v669_v35 = vmul.f32 0.7978846, %v649_v9  ;;  %v868_v26 = vpop.eup %867  ;;  %v641_v16 = vmul.f32 %v621_v12, %v1284_v62  ;;  %v1305_v15 = vadd.f32 %v1232_v45, %v529_v17  ;;  %v530_v33 = vmul.f32 %v1226_v39, %v504_v18 }
 0x20f   :  { %877 = vtanh.f32 %v684_v13  ;;  %v572_v34 = vmul.f32 0.5, %v1245_v10  ;;  %v650_v30 = vadd.f32 %v630_v50, %v1279_v56  ;;  %v602_v31 = vmul.f32 0.044715, %v1300_v21  ;;  %v870_v44 = vpop.eup %869  ;;  %v403_v50 = vpop.xlane.xlu0 %402 }
 0x210   :  { %879 = vtanh.f32 %v669_v35  ;;  %v583_v40 = vmul.f32 0.5, %v1249_v11  ;;  %v661_v32 = vadd.f32 %v641_v16, %v1284_v62  ;;  %v595_v36 = vmul.f32 0.044715, %v1305_v15 }
 0x211   :  { %v1317_v37 = vadd.f32 %v1232_v45, %v530_v33  ;;  %v670_v38 = vmul.f32 0.7978846, %v650_v30  ;;  %v622_v42 = vmul.f32 %v602_v31, %v1300_v21  ;;  %v527_v59 = vmul.f32 %v1226_v39, %v501_v22  ;;  %v406_v33 = vpop.xlane.xlu1 %405 }
 0x212   :  { %v502_v10 = vmul.f32 %v868_v26, %v1160_v41  ;;  %v584_v46 = vmul.f32 0.5, %v1260_v25  ;;  %v681_v47 = vmul.f32 0.7978846, %v661_v32  ;;  %v615_v11 = vmul.f32 %v595_v36, %v1305_v15 }
 0x213   :  { %v596_v27 = vmul.f32 0.044715, %v1317_v37  ;;  %881 = vtanh.f32 %v670_v38  ;;  %v642_v51 = vmul.f32 %v622_v42, %v1300_v21  ;;  %v1327_v19 = vadd.f32 %v1232_v45, %v527_v59 }
 0x214   :  { %v872_v48 = vpop.eup %871  ;;  %v528_v52 = vmul.f32 %v1226_v39, %v502_v10  ;;  %883 = vtanh.f32 %v681_v47  ;;  %v635_v41 = vmul.f32 %v615_v11, %v1305_v15  ;;  %v569_v61 = vmul.f32 0.5, %v1265_v24 }
 0x215   :  { %v711_v14 = vadd.f32 1.0, %v872_v48  ;;  %v616_v25 = vmul.f32 %v596_v27, %v1317_v37  ;;  %v662_v4 = vadd.f32 %v642_v51, %v1300_v21  ;;  %v593_v3 = vmul.f32 0.044715, %v1327_v19 }
 0x216   :  { %v1336_v63 = vadd.f32 %v1232_v45, %v528_v52  ;;  %v655_v5 = vadd.f32 %v635_v41, %v1305_v15  ;;  %v513_v28 = vmul.f32 %v870_v44, %v1176_v20  ;;  %v570_v9 = vmul.f32 0.5, %v1279_v56  ;;  %v433_v41 = vpop.xlane.xlu0 %432 }
 0x217   :  { %v731_v0 = vmul.f32 %v711_v14, %v571_v7  ;;  %v636_v6 = vmul.f32 %v616_v25, %v1317_v37  ;;  %v682_v23 = vmul.f32 0.7978846, %v662_v4  ;;  %v613_v24 = vmul.f32 %v593_v3, %v1327_v19 }
 0x218   :  { %v874_v8 = vpop.eup %873  ;;  %v594_v57 = vmul.f32 0.044715, %v1336_v63  ;;  %v675_v12 = vmul.f32 0.7978846, %v655_v5  ;;  %v539_v20 = vmul.f32 %v1226_v39, %v513_v28  ;;  %v454_v38 = vmul.f32 0.03125, %v1308_v29 }
 0x219   :  { %v876_v13 = vpop.eup %875  ;;  %751 = vst.msk [vmem:[%s1486_s5 + $0x10] sm:$0xff] %vm255_vm2, %v731_v0  ;;  %v712_v7 = vadd.f32 1.0, %v874_v8  ;;  %v656_v17 = vadd.f32 %v636_v6, %v1317_v37  ;;  %885 = vtanh.f32 %v682_v23  ;;  %v633_v56 = vmul.f32 %v613_v24, %v1327_v19  ;;  %v436_v0 = vpop.xlane.xlu1 %435 }
 0x21a   :  { %v723_v18 = vadd.f32 1.0, %v876_v13  ;;  %v614_v35 = vmul.f32 %v594_v57, %v1336_v63  ;;  %887 = vtanh.f32 %v675_v12  ;;  %v1353_v16 = vadd.f32 %v1232_v45, %v539_v20 }
 0x21b   :  { %v732_v22 = vmul.f32 %v712_v7, %v572_v34  ;;  %v676_v26 = vmul.f32 0.7978846, %v656_v17  ;;  %v653_v32 = vadd.f32 %v633_v56, %v1327_v19  ;;  %v581_v59 = vmul.f32 0.5, %v1284_v62 }
 0x21c   :  { %v878_v30 = vpop.eup %877  ;;  %v743_v31 = vmul.f32 %v723_v18, %v583_v40  ;;  %v634_v36 = vmul.f32 %v614_v35, %v1336_v63  ;;  %v605_v10 = vmul.f32 0.044715, %v1353_v16  ;;  %v474_v47 = vadd.f32 1e-05, %v454_v38 }
 0x21d   :  { %v880_v42 = vpop.eup %879  ;;  %752 = vst.msk [vmem:[%s1486_s5 + $0x18] sm:$0xff] %vm255_vm2, %v732_v22  ;;  %v724_v34 = vadd.f32 1.0, %v878_v30  ;;  %889 = vtanh.f32 %v676_v26  ;;  %v673_v44 = vmul.f32 0.7978846, %v653_v32  ;;  %v447_v48 = vmul.f32 0.03125, %v409_v55 }
 0x21e   :  { %763 = vst.msk [vmem:[%s1486_s5 + $0x70] sm:$0xff] %vm255_vm2, %v743_v31  ;;  %v709_v40 = vadd.f32 1.0, %v880_v42  ;;  %v654_v29 = vadd.f32 %v634_v36, %v1336_v63  ;;  %v625_v27 = vmul.f32 %v605_v10, %v1353_v16  ;;  %v448_v51 = vmul.f32 0.03125, %v412_v60 }
 0x21f   :  { %v744_v11 = vmul.f32 %v724_v34, %v584_v46  ;;  %891 = vtanh.f32 %v673_v44  ;;  %v445_v14 = vmul.f32 0.03125, %v403_v50  ;;  %v467_v3 = vadd.f32 1e-05, %v447_v48 }
 0x220   :  { %v729_v52 = vmul.f32 %v709_v40, %v569_v61  ;;  %v674_v62 = vmul.f32 0.7978846, %v654_v29  ;;  %v882_v25 = vpop.eup %881  ;;  %v645_v4 = vmul.f32 %v625_v27, %v1353_v16  ;;  %893 = vrsqrt.f32 %v474_v47 }
 0x221   :  { %764 = vst.msk [vmem:[%s1486_s5 + $0x78] sm:$0xff] %vm255_vm2, %v744_v11  ;;  %v468_v46 = vadd.f32 1e-05, %v448_v51  ;;  %v884_v5 = vpop.eup %883  ;;  %v710_v55 = vadd.f32 1.0, %v882_v25  ;;  %v465_v60 = vadd.f32 1e-05, %v445_v14 }
 0x222   :  { %749 = vst.msk [vmem:[%s1486_s5] sm:$0xff] %vm255_vm2, %v729_v52  ;;  %895 = vtanh.f32 %v674_v62  ;;  %v446_v61 = vmul.f32 0.03125, %v406_v33  ;;  %v721_v6 = vadd.f32 1.0, %v884_v5  ;;  %v665_v28 = vadd.f32 %v645_v4, %v1353_v16 }
 0x223   :  { %897 = vrsqrt.f32 %v467_v3  ;;  %v455_v8 = vmul.f32 0.03125, %v433_v41  ;;  %v730_v23 = vmul.f32 %v710_v55, %v570_v9  ;;  %v456_v57 = vmul.f32 0.03125, %v436_v0 }
 0x224   :  { %899 = vrsqrt.f32 %v468_v46  ;;  %v466_v24 = vadd.f32 1e-05, %v446_v61  ;;  %v741_v13 = vmul.f32 %v721_v6, %v581_v59  ;;  %v685_v7 = vmul.f32 0.7978846, %v665_v28 }
 0x225   :  { %901 = vrsqrt.f32 %v465_v60  ;;  %v475_v12 = vadd.f32 1e-05, %v455_v8  ;;  %750 = vst.msk [vmem:[%s1486_s5 + $0x8] sm:$0xff] %vm255_vm2, %v730_v23  ;;  %v476_v17 = vadd.f32 1e-05, %v456_v57  ;;  %v582_v18 = vmul.f32 0.5, %v1300_v21 }
 0x226   :  { %903 = vrsqrt.f32 %v466_v24  ;;  %v886_v20 = vpop.eup %885  ;;  %761 = vst.msk [vmem:[%s1486_s5 + $0x60] sm:$0xff] %vm255_vm2, %v741_v13  ;;  %v575_v35 = vmul.f32 0.5, %v1305_v15  ;;  %v576_v30 = vmul.f32 0.5, %v1317_v37  ;;  %v573_v36 = vmul.f32 0.5, %v1327_v19 }
 0x227   :  { %905 = vtanh.f32 %v685_v7  ;;  %v888_v9 = vpop.eup %887  ;;  %v722_v56 = vadd.f32 1.0, %v886_v20  ;;  %v574_v10 = vmul.f32 0.5, %v1336_v63 }
 0x228   :  { %907 = vrsqrt.f32 %v475_v12  ;;  %v715_v50 = vadd.f32 1.0, %v888_v9 }
 0x229   :  { %909 = vrsqrt.f32 %v476_v17  ;;  %v742_v26 = vmul.f32 %v722_v56, %v582_v18 }
 0x22a   :  { %v890_v22 = vpop.eup %889  ;;  %v735_v33 = vmul.f32 %v715_v50, %v575_v35 }
 0x22b   :  { %v716_v31 = vadd.f32 1.0, %v890_v22  ;;  %762 = vst.msk [vmem:[%s1486_s5 + $0x68] sm:$0xff] %vm255_vm2, %v742_v26 }
 0x22c   :  { %v892_v32 = vpop.eup %891  ;;  %755 = vst.msk [vmem:[%s1486_s5 + $0x30] sm:$0xff] %vm255_vm2, %v735_v33 }
 0x22d   :  { %v736_v21 = vmul.f32 %v716_v31, %v576_v30  ;;  %v894_v15 = vpop.eup %893  ;;  %v713_v38 = vadd.f32 1.0, %v892_v32 }
 0x22e   :  { %v514_v37 = vmul.f32 %v894_v15, %v1173_v49 }
 0x22f   :  { %v896_v42 = vpop.eup %895  ;;  %756 = vst.msk [vmem:[%s1486_s5 + $0x38] sm:$0xff] %vm255_vm2, %v736_v21  ;;  %v733_v59 = vmul.f32 %v713_v38, %v573_v36 }
 0x230   :  { %v898_v34 = vpop.eup %897  ;;  %v714_v40 = vadd.f32 1.0, %v896_v42  ;;  %v540_v29 = vmul.f32 %v1226_v39, %v514_v37 }
 0x231   :  { %v900_v44 = vpop.eup %899  ;;  %v507_v47 = vmul.f32 %v898_v34, %v1187_v53  ;;  %753 = vst.msk [vmem:[%s1486_s5 + $0x20] sm:$0xff] %vm255_vm2, %v733_v59 }
 0x232   :  { %v902_v19 = vpop.eup %901  ;;  %v734_v11 = vmul.f32 %v714_v40, %v574_v10  ;;  %v508_v27 = vmul.f32 %v900_v44, %v1184_v54  ;;  %v1414_v48 = vadd.f32 %v1232_v45, %v540_v29  ;;  %v585_v54 = vmul.f32 0.5, %v1353_v16 }
 0x233   :  { %v904_v49 = vpop.eup %903  ;;  %v533_v63 = vmul.f32 %v1226_v39, %v507_v47  ;;  %v505_v51 = vmul.f32 %v902_v19, %v1200_v43 }
 0x234   :  { %v906_v52 = vpop.eup %905  ;;  %754 = vst.msk [vmem:[%s1486_s5 + $0x28] sm:$0xff] %vm255_vm2, %v734_v11  ;;  %v534_v53 = vmul.f32 %v1226_v39, %v508_v27  ;;  %v506_v62 = vmul.f32 %v904_v49, %v1197_v58  ;;  %v606_v25 = vmul.f32 0.044715, %v1414_v48  ;;  %v586_v47 = vmul.f32 0.5, %v1414_v48 }
 0x235   :  { %v908_v14 = vpop.eup %907  ;;  %v725_v41 = vadd.f32 1.0, %v906_v52  ;;  %v559_v4 = vadd.f32 %v1232_v45, %v533_v63  ;;  %v531_v46 = vmul.f32 %v1226_v39, %v505_v51 }
 0x236   :  { %v910_v3 = vpop.eup %909  ;;  %v560_v43 = vadd.f32 %v1232_v45, %v534_v53  ;;  %v532_v0 = vmul.f32 %v1226_v39, %v506_v62  ;;  %v515_v5 = vmul.f32 %v908_v14, %v1211_v1  ;;  %v626_v58 = vmul.f32 %v606_v25, %v1414_v48 }
 0x237   :  { %v745_v55 = vmul.f32 %v725_v41, %v585_v54  ;;  %v599_v60 = vmul.f32 0.044715, %v559_v4  ;;  %v557_v16 = vadd.f32 %v1232_v45, %v531_v46  ;;  %v516_v23 = vmul.f32 %v910_v3, %v1208_v2 }
 0x238   :  { %v600_v61 = vmul.f32 0.044715, %v560_v43  ;;  %v1434_v6 = vadd.f32 %v1232_v45, %v532_v0  ;;  %v646_v28 = vmul.f32 %v626_v58, %v1414_v48  ;;  %v541_v1 = vmul.f32 %v1226_v39, %v515_v5 }
 0x239   :  { %765 = vst.msk [vmem:[%s1486_s5 + $0x80] sm:$0xff] %vm255_vm2, %v745_v55  ;;  %v619_v8 = vmul.f32 %v599_v60, %v559_v4  ;;  %v597_v57 = vmul.f32 0.044715, %v557_v16  ;;  %v542_v18 = vmul.f32 %v1226_v39, %v516_v23  ;;  %v579_v63 = vmul.f32 0.5, %v559_v4 }
 0x23a   :  { %v620_v24 = vmul.f32 %v600_v61, %v560_v43  ;;  %v666_v13 = vadd.f32 %v646_v28, %v1414_v48  ;;  %v598_v12 = vmul.f32 0.044715, %v1434_v6  ;;  %v567_v17 = vadd.f32 %v1232_v45, %v541_v1 }
 0x23b   :  { %v639_v7 = vmul.f32 %v619_v8, %v559_v4  ;;  %v617_v9 = vmul.f32 %v597_v57, %v557_v16  ;;  %v568_v33 = vadd.f32 %v1232_v45, %v542_v18  ;;  %v580_v52 = vmul.f32 0.5, %v560_v43 }
 0x23c   :  { %v640_v20 = vmul.f32 %v620_v24, %v560_v43  ;;  %v686_v56 = vmul.f32 0.7978846, %v666_v13  ;;  %v618_v50 = vmul.f32 %v598_v12, %v1434_v6  ;;  %v607_v2 = vmul.f32 0.044715, %v567_v17 }
 0x23d   :  { %v659_v35 = vadd.f32 %v639_v7, %v559_v4  ;;  %v637_v26 = vmul.f32 %v617_v9, %v557_v16  ;;  %v608_v39 = vmul.f32 0.044715, %v568_v33  ;;  %v577_v25 = vmul.f32 0.5, %v557_v16 }
 0x23e   :  { %v660_v22 = vadd.f32 %v640_v20, %v560_v43  ;;  %911 = vtanh.f32 %v686_v56  ;;  %v638_v31 = vmul.f32 %v618_v50, %v1434_v6  ;;  %v627_v15 = vmul.f32 %v607_v2, %v567_v17 }
 0x23f   :  { %v679_v30 = vmul.f32 0.7978846, %v659_v35  ;;  %v657_v21 = vadd.f32 %v637_v26, %v557_v16  ;;  %v628_v34 = vmul.f32 %v608_v39, %v568_v33  ;;  %v578_v48 = vmul.f32 0.5, %v1434_v6 }
 0x240   :  { %v680_v32 = vmul.f32 0.7978846, %v660_v22  ;;  %v658_v36 = vadd.f32 %v638_v31, %v1434_v6  ;;  %v647_v42 = vmul.f32 %v627_v15, %v567_v17  ;;  %v587_v5 = vmul.f32 0.5, %v567_v17 }
 0x241   :  { %913 = vtanh.f32 %v679_v30  ;;  %v677_v38 = vmul.f32 0.7978846, %v657_v21  ;;  %v648_v45 = vmul.f32 %v628_v34, %v568_v33  ;;  %v588_v61 = vmul.f32 0.5, %v568_v33 }
 0x242   :  { %915 = vtanh.f32 %v680_v32  ;;  %v678_v37 = vmul.f32 0.7978846, %v658_v36  ;;  %v667_v59 = vadd.f32 %v647_v42, %v567_v17 }
 0x243   :  { %917 = vtanh.f32 %v677_v38  ;;  %v668_v40 = vadd.f32 %v648_v45, %v568_v33 }
 0x244   :  { %919 = vtanh.f32 %v678_v37  ;;  %v687_v10 = vmul.f32 0.7978846, %v667_v59 }
 0x245   :  { %v688_v44 = vmul.f32 0.7978846, %v668_v40 }
 0x246   :  { %921 = vtanh.f32 %v687_v10 }
 0x247   :  { %923 = vtanh.f32 %v688_v44 }
 0x24b   :  { %v912_v29 = vpop.eup %911 }
 0x24c   :  { %v726_v19 = vadd.f32 1.0, %v912_v29 }
 0x24e   :  { %v914_v11 = vpop.eup %913  ;;  %v746_v49 = vmul.f32 %v726_v19, %v586_v47 }
 0x24f   :  { %v916_v27 = vpop.eup %915  ;;  %v719_v51 = vadd.f32 1.0, %v914_v11 }
 0x250   :  { %v720_v53 = vadd.f32 1.0, %v916_v27  ;;  %v918_v62 = vpop.eup %917  ;;  %766 = vst.msk [vmem:[%s1486_s5 + $0x88] sm:$0xff] %vm255_vm2, %v746_v49 }
 0x251   :  { %v739_v14 = vmul.f32 %v719_v51, %v579_v63  ;;  %v920_v54 = vpop.eup %919  ;;  %v717_v3 = vadd.f32 1.0, %v918_v62 }
 0x252   :  { %v740_v41 = vmul.f32 %v720_v53, %v580_v52  ;;  %v718_v4 = vadd.f32 1.0, %v920_v54 }
 0x253   :  { %759 = vst.msk [vmem:[%s1486_s5 + $0x50] sm:$0xff] %vm255_vm2, %v739_v14  ;;  %v737_v43 = vmul.f32 %v717_v3, %v577_v25  ;;  %v922_v46 = vpop.eup %921 }
 0x254   :  { %760 = vst.msk [vmem:[%s1486_s5 + $0x58] sm:$0xff] %vm255_vm2, %v740_v41  ;;  %v738_v0 = vmul.f32 %v718_v4, %v578_v48  ;;  %v727_v55 = vadd.f32 1.0, %v922_v46  ;;  %v924_v58 = vpop.eup %923 }
 0x255   :  { %757 = vst.msk [vmem:[%s1486_s5 + $0x40] sm:$0xff] %vm255_vm2, %v737_v43  ;;  %v728_v16 = vadd.f32 1.0, %v924_v58 }
 0x256   :  { %758 = vst.msk [vmem:[%s1486_s5 + $0x48] sm:$0xff] %vm255_vm2, %v738_v0  ;;  %v747_v60 = vmul.f32 %v727_v55, %v587_v5 }
 0x257   :  { %v748_v6 = vmul.f32 %v728_v16, %v588_v61 }
 0x258   :  { %767 = vst.msk [vmem:[%s1486_s5 + $0x90] sm:$0xff] %vm255_vm2, %v747_v60 }
 0x259   :  { %768 = vst.msk [vmem:[%s1486_s5 + $0x98] sm:$0xff] %vm255_vm2, %v748_v6 }

// kernel: hubert_forward.7
= control target key start
LH: loop header
LB: loop body
LE: loop exit
PB: predicated region body
PF: predicated region fallthrough
CT: control target
= control target key end

     0   :  { %v597_v0 = vmov 0.0   ;;  %vm598_vm0 = vmmov 0   ;;  %vm111_vm1 = vcmask 785408   ;;  %vm202_vm2 = vcmask 261120   ;;  %s880_s1 = inlined_call_operand.vmem [shape: bf16[96,32], index: 1, kind: input, shape index: {}]   ;;  %s881_s0 = inlined_call_operand.vmem [shape: bf16[80,96], index: 0, kind: input, shape index: {}]   ;;  %s882_s2 = inlined_call_operand.vmem [shape: f32[1,32], index: 2, kind: input, shape index: {}]   ;;  %s883_s3 = inlined_call_operand.vmem [shape: f32[1,32], index: 3, kind: input, shape index: {}]   ;;  %s884_s4 = inlined_call_operand.vmem [shape: f32[1,32], index: 4, kind: input, shape index: {}]   ;;  %s885_s5 = inlined_call_operand.vmem [shape: f32[80,32], index: 5, kind: output, shape index: {}]  }
   0x1   :  { %500 = vmatprep.subr.bf16.mxu0 %v597_v0  ;;  %532 = vmatprep.subr.bf16.mxu1 %v597_v0  ;;  %v546_v1 = vld [vmem:[%s880_s1 + $0x28] sm:$0xff]   ;;  %v547_v2 = vld [vmem:[%s880_s1 + $0x20] sm:$0xff]   ;;  %v548_v3 = vld [vmem:[%s880_s1 + $0x18] sm:$0xff]  }
   0x2   :  { %512 = vmatprep.mubr.msk.bf16.mxu0 %vm598_vm0, %v597_v0  ;;  %524 = vmatprep.mubr.msk.bf16.mxu1 %vm598_vm0, %v597_v0  ;;  %v549_v4 = vld [vmem:[%s880_s1 + $0x10] sm:$0xff]   ;;  %v550_v5 = vld [vmem:[%s880_s1 + $0x8] sm:$0xff]   ;;  %v551_v6 = vld [vmem:[%s880_s1] sm:$0xff]  }
   0x3   :  { %501 = vmatpush3.bf16.msra.mxu0 %v546_v1  ;;  %538 = vmatpush3.bf16.msra.mxu1 %v546_v1  ;;  %v552_v7 = vld [vmem:[%s881_s0] sm:$0xff]   ;;  %v553_v8 = vld [vmem:[%s881_s0 + $0x18] sm:$0xff]   ;;  %v554_v9 = vld [vmem:[%s881_s0 + $0x8] sm:$0xff]  }
   0x4   :  { %502 = vmatprep.subr.bf16.mxu0 %v597_v0  ;;  %533 = vmatprep.subr.bf16.mxu1 %v597_v0  ;;  %v555_v10 = vld [vmem:[%s881_s0 + $0x20] sm:$0xff]   ;;  %v556_v11 = vld [vmem:[%s881_s0 + $0x10] sm:$0xff]  }
   0x5   :  { %v470_v12 = vld [vmem:[%s882_s2] ss:$0 sm:$0xff] }
   0x7   :  { %503 = vmatpush3.bf16.msra.mxu0 %v547_v2  ;;  %539 = vmatpush3.bf16.msra.mxu1 %v547_v2 }
   0x8   :  { %504 = vmatprep.subr.bf16.mxu0 %v597_v0  ;;  %534 = vmatprep.subr.bf16.mxu1 %v597_v0 }
   0xb   :  { %505 = vmatpush3.bf16.msra.mxu0 %v548_v3  ;;  %540 = vmatpush3.bf16.msra.mxu1 %v548_v3 }
   0xc   :  { %506 = vmatprep.subr.bf16.mxu0 %v597_v0  ;;  %535 = vmatprep.subr.bf16.mxu1 %v597_v0 }
   0xf   :  { %507 = vmatpush3.bf16.msra.mxu0 %v549_v4  ;;  %541 = vmatpush3.bf16.msra.mxu1 %v549_v4 }
  0x10   :  { %508 = vmatprep.subr.bf16.mxu0 %v597_v0  ;;  %536 = vmatprep.subr.bf16.mxu1 %v597_v0 }
  0x13   :  { %509 = vmatpush3.bf16.msra.mxu0 %v550_v5  ;;  %542 = vmatpush3.bf16.msra.mxu1 %v550_v5 }
  0x14   :  { %510 = vmatprep.subr.bf16.mxu0 %v597_v0  ;;  %537 = vmatprep.subr.bf16.mxu1 %v597_v0 }
  0x17   :  { %511 = vmatpush3.bf16.msra.mxu0 %v551_v6  ;;  %543 = vmatpush3.bf16.msra.mxu1 %v551_v6 }
  0x1a   :  { %513 = vmatmul.mubr.msk.bf16.vlgmr.msra.gmra.mxu0 %vm111_vm1, %v552_v7  ;;  %525 = vmatmul.mubr.msk.bf16.vlgmr.msra.gmra.mxu1 %vm111_vm1, %v553_v8 }
  0x1b   :  { %516 = vmatprep.mubr.msk.bf16.mxu0 %vm598_vm0, %v597_v0  ;;  %528 = vmatprep.mubr.msk.bf16.mxu1 %vm598_vm0, %v597_v0 }
  0x22   :  { %517 = vmatmul.mubr.msk.bf16.gmra.mxu0 %vm111_vm1, %v554_v9  ;;  %529 = vmatmul.mubr.msk.bf16.gmra.mxu1 %vm111_vm1, %v555_v10 }
  0x23   :  { %520 = vmatprep.mubr.msk.bf16.mxu0 %vm598_vm0, %v597_v0 }
  0x2a   :  { %521 = vmatmul.mubr.msk.bf16.gmra.mxu0 %vm111_vm1, %v556_v11 }
  0xda   :  { %v161_v13 = vpop.f32.mrf.mxu0  ;;  %v185_v14 = vpop.f32.mrf.mxu1 }
  0xdb   :  { %v162_v15 = vadd.f32 %v470_v12, %v161_v13  ;;  %v186_v16 = vadd.f32 %v470_v12, %v185_v14 }
  0xdc   :  { %v514_v17 = vpop.f32.mrf.mxu0  ;;  %v526_v18 = vpop.f32.mrf.mxu1 }
  0xdd   :  { %v203_v19 = vsel %vm202_vm2, %v162_v15, 0.0  ;;  %v221_v23 = vsel %vm202_vm2, %v186_v16, 0.0 }
  0xde   :  { %v188_v20 = vpop.f32.mrf.mxu1  ;;  %204 = vadd.xlane.f32.xlu0 %v203_v19  ;;  %v164_v21 = vpop.f32.mrf.mxu0 }
  0xdf   :  { %v189_v22 = vadd.f32 %v470_v12, %v188_v20  ;;  %v165_v26 = vadd.f32 %v470_v12, %v164_v21 }
  0xe0   :  { %v515_v24 = vpop.f32.mrf.mxu0  ;;  %v527_v25 = vpop.f32.mrf.mxu1 }
  0xe1   :  { %v224_v27 = vsel %vm202_vm2, %v189_v22, 0.0  ;;  %v206_v33 = vsel %vm202_vm2, %v165_v26, 0.0 }
  0xe2   :  { %225 = vadd.xlane.f32.xlu1 %v224_v27  ;;  %222 = vadd.xlane.f32.xlu0 %v221_v23  ;;  %v169_v28 = vpop.f32.mrf.mxu0  ;;  %v193_v29 = vpop.f32.mrf.mxu1 }
  0xe3   :  { %v170_v30 = vadd.f32 %v470_v12, %v169_v28  ;;  %v194_v42 = vadd.f32 %v470_v12, %v193_v29 }
  0xe4   :  { %v518_v31 = vpop.f32.mrf.mxu0  ;;  %v530_v32 = vpop.f32.mrf.mxu1 }
  0xe5   :  { %v209_v34 = vsel %vm202_vm2, %v170_v30, 0.0  ;;  %v227_v48 = vsel %vm202_vm2, %v194_v42, 0.0 }
  0xe6   :  { %207 = vadd.xlane.f32.xlu0 %v206_v33  ;;  %210 = vadd.xlane.f32.xlu1 %v209_v34  ;;  %v172_v35 = vpop.f32.mrf.mxu0  ;;  %v196_v36 = vpop.f32.mrf.mxu1 }
  0xe7   :  { %v173_v37 = vadd.f32 %v470_v12, %v172_v35  ;;  %v197_v50 = vadd.f32 %v470_v12, %v196_v36 }
  0xe8   :  { %v519_v38 = vpop.f32.mrf.mxu0  ;;  %v531_v39 = vpop.f32.mrf.mxu1 }
  0xe9   :  { %v212_v40 = vsel %vm202_vm2, %v173_v37, 0.0  ;;  %v230_v52 = vsel %vm202_vm2, %v197_v50, 0.0 }
  0xea   :  { %213 = vadd.xlane.f32.xlu1 %v212_v40  ;;  %v177_v41 = vpop.f32.mrf.mxu0 }
  0xeb   :  { %v178_v43 = vadd.f32 %v470_v12, %v177_v41 }
  0xec   :  { %v522_v44 = vpop.f32.mrf.mxu0 }
  0xed   :  { %v215_v45 = vsel %vm202_vm2, %v178_v43, 0.0 }
  0xee   :  { %216 = vadd.xlane.f32.xlu0 %v215_v45  ;;  %v180_v46 = vpop.f32.mrf.mxu0 }
  0xef   :  { %v181_v47 = vadd.f32 %v470_v12, %v180_v46 }
  0xf0   :  { %v523_v49 = vpop.f32.mrf.mxu0 }
  0xf1   :  { %v218_v51 = vsel %vm202_vm2, %v181_v47, 0.0 }
  0xf2   :  { %228 = vadd.xlane.f32.xlu0 %v227_v48  ;;  %219 = vadd.xlane.f32.xlu1 %v218_v51 }
  0xf6   :  { %231 = vadd.xlane.f32.xlu1 %v230_v52 }
 0x167   :  { %v205_v53 = vpop.xlane.xlu0 %204 }
 0x168   :  { %v234_v54 = vmul.f32 0.03125, %v205_v53 }
 0x16a   :  { %v680_v55 = vsub.f32 %v162_v15, %v234_v54 }
 0x16b   :  { %v226_v56 = vpop.xlane.xlu1 %225  ;;  %v223_v57 = vpop.xlane.xlu0 %222 }
 0x16c   :  { %v240_v58 = vmul.f32 0.03125, %v223_v57  ;;  %v254_v59 = vmul.f32 %v680_v55, %v680_v55  ;;  %v241_v60 = vmul.f32 0.03125, %v226_v56 }
 0x16e   :  { %v684_v61 = vsub.f32 %v186_v16, %v240_v58  ;;  %v264_v62 = vsel %vm202_vm2, %v254_v59, 0.0  ;;  %v689_v4 = vsub.f32 %v189_v22, %v241_v60  ;;  %v733_v60 = vld [vmem:[%s883_s3] ss:$0 sm:$0xff] }
 0x16f   :  { %v208_v63 = vpop.xlane.xlu0 %207  ;;  %v211_v0 = vpop.xlane.xlu1 %210  ;;  %265 = vadd.xlane.f32.xlu0 %v264_v62 }
 0x170   :  { %v235_v1 = vmul.f32 0.03125, %v208_v63  ;;  %v236_v2 = vmul.f32 0.03125, %v211_v0  ;;  %v260_v3 = vmul.f32 %v684_v61, %v684_v61  ;;  %v261_v15 = vmul.f32 %v689_v4, %v689_v4 }
 0x172   :  { %v691_v5 = vsub.f32 %v165_v26, %v235_v1  ;;  %v693_v6 = vsub.f32 %v170_v30, %v236_v2  ;;  %v282_v7 = vsel %vm202_vm2, %v260_v3, 0.0  ;;  %v285_v19 = vsel %vm202_vm2, %v261_v15, 0.0  ;;  %v739_v1 = vld [vmem:[%s884_s4] ss:$0 sm:$0xff] }
 0x173   :  { %v214_v8 = vpop.xlane.xlu1 %213  ;;  %283 = vadd.xlane.f32.xlu0 %v282_v7 }
 0x174   :  { %v237_v9 = vmul.f32 0.03125, %v214_v8  ;;  %v256_v10 = vmul.f32 %v693_v6, %v693_v6  ;;  %v255_v11 = vmul.f32 %v691_v5, %v691_v5 }
 0x176   :  { %v700_v12 = vsub.f32 %v173_v37, %v237_v9  ;;  %v270_v13 = vsel %vm202_vm2, %v256_v10, 0.0  ;;  %v267_v14 = vsel %vm202_vm2, %v255_v11, 0.0 }
 0x177   :  { %271 = vadd.xlane.f32.xlu0 %v270_v13  ;;  %v217_v16 = vpop.xlane.xlu0 %216  ;;  %268 = vadd.xlane.f32.xlu1 %v267_v14 }
 0x178   :  { %v238_v17 = vmul.f32 0.03125, %v217_v16  ;;  %v257_v20 = vmul.f32 %v700_v12, %v700_v12 }
 0x17a   :  { %v706_v18 = vsub.f32 %v178_v43, %v238_v17  ;;  %v273_v29 = vsel %vm202_vm2, %v257_v20, 0.0 }
 0x17b   :  { %v229_v21 = vpop.xlane.xlu0 %228  ;;  %286 = vadd.xlane.f32.xlu1 %v285_v19  ;;  %v220_v22 = vpop.xlane.xlu1 %219 }
 0x17c   :  { %v242_v23 = vmul.f32 0.03125, %v229_v21  ;;  %v239_v24 = vmul.f32 0.03125, %v220_v22  ;;  %v258_v25 = vmul.f32 %v706_v18, %v706_v18 }
 0x17e   :  { %v713_v26 = vsub.f32 %v194_v42, %v242_v23  ;;  %v715_v27 = vsub.f32 %v181_v47, %v239_v24  ;;  %v276_v28 = vsel %vm202_vm2, %v258_v25, 0.0 }
 0x17f   :  { %277 = vadd.xlane.f32.xlu0 %v276_v28  ;;  %274 = vadd.xlane.f32.xlu1 %v273_v29  ;;  %v232_v30 = vpop.xlane.xlu1 %231 }
 0x180   :  { %v243_v31 = vmul.f32 0.03125, %v232_v30  ;;  %v262_v32 = vmul.f32 %v713_v26, %v713_v26  ;;  %v259_v33 = vmul.f32 %v715_v27, %v715_v27 }
 0x182   :  { %v723_v34 = vsub.f32 %v197_v50, %v243_v31  ;;  %v288_v35 = vsel %vm202_vm2, %v262_v32, 0.0  ;;  %v279_v36 = vsel %vm202_vm2, %v259_v33, 0.0 }
 0x183   :  { %289 = vadd.xlane.f32.xlu0 %v288_v35  ;;  %280 = vadd.xlane.f32.xlu1 %v279_v36 }
 0x184   :  { %v263_v37 = vmul.f32 %v723_v34, %v723_v34 }
 0x186   :  { %v291_v38 = vsel %vm202_vm2, %v263_v37, 0.0 }
 0x187   :  { %292 = vadd.xlane.f32.xlu1 %v291_v38 }
 0x1f8   :  { %v266_v39 = vpop.xlane.xlu0 %265 }
 0x1f9   :  { %v294_v40 = vmul.f32 0.03125, %v266_v39 }
 0x1fb   :  { %v304_v41 = vadd.f32 1e-05, %v294_v40 }
 0x1fc   :  { %v284_v42 = vpop.xlane.xlu0 %283 }
 0x1fd   :  { %557 = vrsqrt.f32 %v304_v41  ;;  %v300_v43 = vmul.f32 0.03125, %v284_v42 }
 0x1ff   :  { %v310_v44 = vadd.f32 1e-05, %v300_v43 }
 0x200   :  { %v272_v45 = vpop.xlane.xlu0 %271  ;;  %v269_v46 = vpop.xlane.xlu1 %268 }
 0x201   :  { %559 = vrsqrt.f32 %v310_v44  ;;  %v296_v47 = vmul.f32 0.03125, %v272_v45  ;;  %v295_v48 = vmul.f32 0.03125, %v269_v46 }
 0x203   :  { %v306_v49 = vadd.f32 1e-05, %v296_v47  ;;  %v305_v50 = vadd.f32 1e-05, %v295_v48 }
 0x204   :  { %v287_v51 = vpop.xlane.xlu1 %286 }
 0x205   :  { %561 = vrsqrt.f32 %v306_v49  ;;  %v301_v52 = vmul.f32 0.03125, %v287_v51 }
 0x206   :  { %563 = vrsqrt.f32 %v305_v50 }
 0x207   :  { %v311_v53 = vadd.f32 1e-05, %v301_v52 }
 0x208   :  { %v278_v54 = vpop.xlane.xlu0 %277  ;;  %v275_v56 = vpop.xlane.xlu1 %274 }
 0x209   :  { %565 = vrsqrt.f32 %v311_v53  ;;  %v298_v57 = vmul.f32 0.03125, %v278_v54  ;;  %v297_v58 = vmul.f32 0.03125, %v275_v56 }
 0x20a   :  { %v558_v59 = vpop.eup %557 }
 0x20b   :  { %v324_v62 = vmul.f32 %v558_v59, %v680_v55  ;;  %v308_v63 = vadd.f32 1e-05, %v298_v57  ;;  %v307_v0 = vadd.f32 1e-05, %v297_v58 }
 0x20c   :  { %v290_v2 = vpop.xlane.xlu0 %289  ;;  %v281_v3 = vpop.xlane.xlu1 %280 }
 0x20d   :  { %v340_v7 = vmul.f32 %v733_v60, %v324_v62  ;;  %567 = vrsqrt.f32 %v308_v63  ;;  %v302_v8 = vmul.f32 0.03125, %v290_v2  ;;  %v299_v9 = vmul.f32 0.03125, %v281_v3 }
 0x20e   :  { %v560_v10 = vpop.eup %559  ;;  %569 = vrsqrt.f32 %v307_v0 }
 0x20f   :  { %v743_v11 = vadd.f32 %v739_v1, %v340_v7  ;;  %v330_v55 = vmul.f32 %v560_v10, %v684_v61  ;;  %v312_v13 = vadd.f32 1e-05, %v302_v8  ;;  %v309_v14 = vadd.f32 1e-05, %v299_v9 }
 0x210   :  { %v293_v15 = vpop.xlane.xlu1 %292 }
 0x211   :  { %v376_v16 = vmul.f32 0.044715, %v743_v11  ;;  %v346_v17 = vmul.f32 %v733_v60, %v330_v55  ;;  %571 = vrsqrt.f32 %v312_v13  ;;  %v303_v20 = vmul.f32 0.03125, %v293_v15 }
 0x212   :  { %v562_v19 = vpop.eup %561  ;;  %573 = vrsqrt.f32 %v309_v14 }
 0x213   :  { %v564_v21 = vpop.eup %563  ;;  %v386_v22 = vmul.f32 %v376_v16, %v743_v11  ;;  %v750_v23 = vadd.f32 %v739_v1, %v346_v17  ;;  %v326_v24 = vmul.f32 %v562_v19, %v693_v6  ;;  %v313_v25 = vadd.f32 1e-05, %v303_v20 }
 0x214   :  { %v325_v61 = vmul.f32 %v564_v21, %v691_v5 }
 0x215   :  { %v396_v28 = vmul.f32 %v386_v22, %v743_v11  ;;  %v382_v29 = vmul.f32 0.044715, %v750_v23  ;;  %v342_v30 = vmul.f32 %v733_v60, %v326_v24  ;;  %575 = vrsqrt.f32 %v313_v25 }
 0x216   :  { %v566_v31 = vpop.eup %565  ;;  %v341_v32 = vmul.f32 %v733_v60, %v325_v61 }
 0x217   :  { %v406_v33 = vadd.f32 %v396_v28, %v743_v11  ;;  %v392_v35 = vmul.f32 %v382_v29, %v750_v23  ;;  %v761_v36 = vadd.f32 %v739_v1, %v342_v30  ;;  %v331_v5 = vmul.f32 %v566_v31, %v689_v4 }
 0x218   :  { %v765_v6 = vadd.f32 %v739_v1, %v341_v32 }
 0x219   :  { %v416_v37 = vmul.f32 0.7978846, %v406_v33  ;;  %v402_v38 = vmul.f32 %v392_v35, %v750_v23  ;;  %v378_v39 = vmul.f32 0.044715, %v761_v36  ;;  %v347_v42 = vmul.f32 %v733_v60, %v331_v5 }
 0x21a   :  { %v568_v40 = vpop.eup %567  ;;  %v377_v41 = vmul.f32 0.044715, %v765_v6 }
 0x21b   :  { %v570_v43 = vpop.eup %569  ;;  %577 = vtanh.f32 %v416_v37  ;;  %v412_v44 = vadd.f32 %v402_v38, %v750_v23  ;;  %v388_v45 = vmul.f32 %v378_v39, %v761_v36  ;;  %v328_v4 = vmul.f32 %v568_v40, %v706_v18 }
 0x21c   :  { %v387_v46 = vmul.f32 %v377_v41, %v765_v6  ;;  %v776_v47 = vadd.f32 %v739_v1, %v347_v42  ;;  %v327_v48 = vmul.f32 %v570_v43, %v700_v12  ;;  %v372_v41 = vmul.f32 0.5, %v750_v23 }
 0x21d   :  { %v422_v49 = vmul.f32 0.7978846, %v412_v44  ;;  %v398_v50 = vmul.f32 %v388_v45, %v761_v36  ;;  %v344_v51 = vmul.f32 %v733_v60, %v328_v4  ;;  %v368_v23 = vmul.f32 0.5, %v761_v36 }
 0x21e   :  { %v572_v52 = vpop.eup %571  ;;  %v397_v53 = vmul.f32 %v387_v46, %v765_v6  ;;  %v383_v54 = vmul.f32 0.044715, %v776_v47  ;;  %v343_v56 = vmul.f32 %v733_v60, %v327_v48 }
 0x21f   :  { %v574_v18 = vpop.eup %573  ;;  %579 = vtanh.f32 %v422_v49  ;;  %v408_v57 = vadd.f32 %v398_v50, %v761_v36  ;;  %v786_v58 = vadd.f32 %v739_v1, %v344_v51  ;;  %v332_v12 = vmul.f32 %v572_v52, %v713_v26 }
 0x220   :  { %v407_v59 = vadd.f32 %v397_v53, %v765_v6  ;;  %v393_v62 = vmul.f32 %v383_v54, %v776_v47  ;;  %v792_v63 = vadd.f32 %v739_v1, %v343_v56  ;;  %v329_v0 = vmul.f32 %v574_v18, %v715_v27 }
 0x221   :  { %v418_v2 = vmul.f32 0.7978846, %v408_v57  ;;  %v380_v3 = vmul.f32 0.044715, %v786_v58  ;;  %v348_v7 = vmul.f32 %v733_v60, %v332_v12  ;;  %v367_v52 = vmul.f32 0.5, %v765_v6 }
 0x222   :  { %v417_v8 = vmul.f32 0.7978846, %v407_v59  ;;  %v403_v9 = vmul.f32 %v393_v62, %v776_v47  ;;  %v379_v10 = vmul.f32 0.044715, %v792_v63  ;;  %v576_v26 = vpop.eup %575  ;;  %v345_v14 = vmul.f32 %v733_v60, %v329_v0 }
 0x223   :  { %581 = vtanh.f32 %v418_v2  ;;  %v390_v55 = vmul.f32 %v380_v3, %v786_v58  ;;  %v801_v13 = vadd.f32 %v739_v1, %v348_v7  ;;  %v333_v16 = vmul.f32 %v576_v26, %v723_v34 }
 0x224   :  { %583 = vtanh.f32 %v417_v8  ;;  %v413_v27 = vadd.f32 %v403_v9, %v776_v47  ;;  %v389_v15 = vmul.f32 %v379_v10, %v792_v63  ;;  %v810_v20 = vadd.f32 %v739_v1, %v345_v14 }
 0x225   :  { %v400_v17 = vmul.f32 %v390_v55, %v786_v58  ;;  %v384_v19 = vmul.f32 0.044715, %v801_v13  ;;  %v349_v24 = vmul.f32 %v733_v60, %v333_v16  ;;  %v366_v34 = vmul.f32 0.5, %v743_v11 }
 0x226   :  { %v423_v21 = vmul.f32 0.7978846, %v413_v27  ;;  %v399_v22 = vmul.f32 %v389_v15, %v792_v63  ;;  %v381_v28 = vmul.f32 0.044715, %v810_v20  ;;  %v373_v36 = vmul.f32 0.5, %v776_v47 }
 0x227   :  { %v410_v61 = vadd.f32 %v400_v17, %v786_v58  ;;  %v394_v25 = vmul.f32 %v384_v19, %v801_v13  ;;  %v820_v31 = vadd.f32 %v739_v1, %v349_v24  ;;  %v370_v0 = vmul.f32 0.5, %v786_v58 }
 0x228   :  { %v578_v29 = vpop.eup %577  ;;  %585 = vtanh.f32 %v423_v21  ;;  %v409_v30 = vadd.f32 %v399_v22, %v792_v63  ;;  %v391_v60 = vmul.f32 %v381_v28, %v810_v20  ;;  %v369_v3 = vmul.f32 0.5, %v792_v63 }
 0x229   :  { %v436_v32 = vadd.f32 1.0, %v578_v29  ;;  %v420_v33 = vmul.f32 0.7978846, %v410_v61  ;;  %v404_v35 = vmul.f32 %v394_v25, %v801_v13  ;;  %v385_v37 = vmul.f32 0.044715, %v820_v31 }
 0x22a   :  { %v419_v5 = vmul.f32 0.7978846, %v409_v30  ;;  %v401_v11 = vmul.f32 %v391_v60, %v810_v20  ;;  %v374_v47 = vmul.f32 0.5, %v801_v13  ;;  %v371_v63 = vmul.f32 0.5, %v810_v20 }
 0x22b   :  { %v446_v38 = vmul.f32 %v436_v32, %v366_v34  ;;  %587 = vtanh.f32 %v420_v33  ;;  %v414_v39 = vadd.f32 %v404_v35, %v801_v13  ;;  %v395_v1 = vmul.f32 %v385_v37, %v820_v31 }
 0x22c   :  { %v580_v40 = vpop.eup %579  ;;  %589 = vtanh.f32 %v419_v5  ;;  %v411_v44 = vadd.f32 %v401_v11, %v810_v20  ;;  %v375_v13 = vmul.f32 0.5, %v820_v31 }
 0x22d   :  { %456 = vst.msk [vmem:[%s885_s5] sm:$0xff] %vm202_vm2, %v446_v38  ;;  %v442_v42 = vadd.f32 1.0, %v580_v40  ;;  %v424_v43 = vmul.f32 0.7978846, %v414_v39  ;;  %v405_v45 = vmul.f32 %v395_v1, %v820_v31 }
 0x22e   :  { %v421_v46 = vmul.f32 0.7978846, %v411_v44 }
 0x22f   :  { %v452_v4 = vmul.f32 %v442_v42, %v372_v41  ;;  %591 = vtanh.f32 %v424_v43  ;;  %v415_v49 = vadd.f32 %v405_v45, %v820_v31 }
 0x230   :  { %v582_v48 = vpop.eup %581  ;;  %593 = vtanh.f32 %v421_v46 }
 0x231   :  { %v584_v50 = vpop.eup %583  ;;  %462 = vst.msk [vmem:[%s885_s5 + $0x30] sm:$0xff] %vm202_vm2, %v452_v4  ;;  %v438_v51 = vadd.f32 1.0, %v582_v48  ;;  %v425_v54 = vmul.f32 0.7978846, %v415_v49 }
 0x232   :  { %v437_v53 = vadd.f32 1.0, %v584_v50 }
 0x233   :  { %v448_v56 = vmul.f32 %v438_v51, %v368_v23  ;;  %595 = vtanh.f32 %v425_v54 }
 0x234   :  { %v447_v18 = vmul.f32 %v437_v53, %v367_v52 }
 0x235   :  { %v586_v57 = vpop.eup %585  ;;  %458 = vst.msk [vmem:[%s885_s5 + $0x10] sm:$0xff] %vm202_vm2, %v448_v56 }
 0x236   :  { %457 = vst.msk [vmem:[%s885_s5 + $0x8] sm:$0xff] %vm202_vm2, %v447_v18  ;;  %v443_v12 = vadd.f32 1.0, %v586_v57 }
 0x238   :  { %v588_v6 = vpop.eup %587  ;;  %v453_v59 = vmul.f32 %v443_v12, %v373_v36 }
 0x239   :  { %v590_v62 = vpop.eup %589  ;;  %v440_v2 = vadd.f32 1.0, %v588_v6 }
 0x23a   :  { %463 = vst.msk [vmem:[%s885_s5 + $0x38] sm:$0xff] %vm202_vm2, %v453_v59  ;;  %v439_v7 = vadd.f32 1.0, %v590_v62 }
 0x23b   :  { %v450_v8 = vmul.f32 %v440_v2, %v370_v0 }
 0x23c   :  { %v592_v9 = vpop.eup %591  ;;  %v449_v10 = vmul.f32 %v439_v7, %v369_v3 }
 0x23d   :  { %460 = vst.msk [vmem:[%s885_s5 + $0x20] sm:$0xff] %vm202_vm2, %v450_v8  ;;  %v444_v58 = vadd.f32 1.0, %v592_v9  ;;  %v594_v26 = vpop.eup %593 }
 0x23e   :  { %459 = vst.msk [vmem:[%s885_s5 + $0x18] sm:$0xff] %vm202_vm2, %v449_v10  ;;  %v441_v14 = vadd.f32 1.0, %v594_v26 }
 0x23f   :  { %v454_v55 = vmul.f32 %v444_v58, %v374_v47 }
 0x240   :  { %v596_v27 = vpop.eup %595  ;;  %v451_v15 = vmul.f32 %v441_v14, %v371_v63 }
 0x241   :  { %464 = vst.msk [vmem:[%s885_s5 + $0x40] sm:$0xff] %vm202_vm2, %v454_v55  ;;  %v445_v16 = vadd.f32 1.0, %v596_v27 }
 0x242   :  { %461 = vst.msk [vmem:[%s885_s5 + $0x28] sm:$0xff] %vm202_vm2, %v451_v15 }
 0x243   :  { %v455_v17 = vmul.f32 %v445_v16, %v375_v13 }
 0x245   :  { %465 = vst.msk [vmem:[%s885_s5 + $0x48] sm:$0xff] %vm202_vm2, %v455_v17 }

// kernel: hubert_forward.9
= control target key start
LH: loop header
LB: loop body
LE: loop exit
PB: predicated region body
PF: predicated region fallthrough
CT: control target
= control target key end

     0   :  { %vm28_vm0 = vcmask 261120   ;;  %v265_v35 = vmov 0.0   ;;  %vm266_vm1 = vmmov 0   ;;  %vm208_vm2 = vcmask 523264   ;;  %s378_s0 = inlined_call_operand.vmem [shape: f32[40,32], index: 0, kind: input, shape index: {}]   ;;  %s379_s3 = inlined_call_operand.vmem [shape: bf16[32,64], index: 3, kind: input, shape index: {}]   ;;  %s380_s1 = inlined_call_operand.vmem [shape: f32[1,32], index: 1, kind: input, shape index: {}]   ;;  %s381_s2 = inlined_call_operand.vmem [shape: f32[1,32], index: 2, kind: input, shape index: {}]   ;;  %s382_s4 = inlined_call_operand.vmem [shape: f32[1,64], index: 4, kind: input, shape index: {}]   ;;  %s383_s5 = inlined_call_operand.vmem [shape: f32[40,64], index: 5, kind: output, shape index: {}]  }
   0x1   :  { %v23_v0 = vld [vmem:[%s378_s0 + $0x10] sm:$0xff]  ;;  %v24_v1 = vld [vmem:[%s378_s0 + $0x18] sm:$0xff]  ;;  %v21_v2 = vld [vmem:[%s378_s0] sm:$0xff]  ;;  %247 = vmatprep.subr.bf16.mxu1 %v265_v35  ;;  %231 = vmatprep.subr.bf16.mxu0 %v265_v35 }
   0x2   :  { %v35_v3 = vsel %vm28_vm0, %v23_v0, 0.0  ;;  %v29_v4 = vsel %vm28_vm0, %v21_v2, 0.0  ;;  %v22_v5 = vld [vmem:[%s378_s0 + $0x8] sm:$0xff]  ;;  %v38_v6 = vsel %vm28_vm0, %v24_v1, 0.0  ;;  %v25_v8 = vld [vmem:[%s378_s0 + $0x20] sm:$0xff]  ;;  %239 = vmatprep.mubr.msk.bf16.mxu1 %vm266_vm1, %v265_v35  ;;  %235 = vmatprep.mubr.msk.bf16.mxu0 %vm266_vm1, %v265_v35 }
   0x3   :  { %36 = vadd.xlane.f32.xlu0 %v35_v3  ;;  %30 = vadd.xlane.f32.xlu1 %v29_v4  ;;  %v32_v7 = vsel %vm28_vm0, %v22_v5, 0.0  ;;  %v41_v9 = vsel %vm28_vm0, %v25_v8, 0.0  ;;  %v253_v36 = vld [vmem:[%s379_s3 + $0x8] sm:$0xff]   ;;  %v254_v37 = vld [vmem:[%s379_s3] sm:$0xff]  }
   0x4   :  { %249 = vmatpush3.bf16.msra.mxu1 %v253_v36  ;;  %232 = vmatpush3.bf16.msra.mxu0 %v253_v36  ;;  %v218_v55 = vld [vmem:[%s380_s1] ss:$0 sm:$0xff] }
   0x5   :  { %248 = vmatprep.subr.bf16.mxu1 %v265_v35  ;;  %233 = vmatprep.subr.bf16.mxu0 %v265_v35  ;;  %v219_v60 = vld [vmem:[%s381_s2] ss:$0 sm:$0xff] }
   0x7   :  { %39 = vadd.xlane.f32.xlu0 %v38_v6  ;;  %33 = vadd.xlane.f32.xlu1 %v32_v7 }
   0x8   :  { %250 = vmatpush3.bf16.msra.mxu1 %v254_v37  ;;  %234 = vmatpush3.bf16.msra.mxu0 %v254_v37 }
   0xb   :  { %42 = vadd.xlane.f32.xlu0 %v41_v9 }
  0x8c   :  { %v37_v10 = vpop.xlane.xlu0 %36  ;;  %v31_v11 = vpop.xlane.xlu1 %30 }
  0x8d   :  { %v47_v12 = vmul.f32 0.03125, %v37_v10  ;;  %v45_v13 = vmul.f32 0.03125, %v31_v11 }
  0x8f   :  { %v317_v14 = vsub.f32 %v23_v0, %v47_v12  ;;  %v319_v15 = vsub.f32 %v21_v2, %v45_v13 }
  0x90   :  { %v40_v16 = vpop.xlane.xlu0 %39  ;;  %v34_v17 = vpop.xlane.xlu1 %33 }
  0x91   :  { %v48_v18 = vmul.f32 0.03125, %v40_v16  ;;  %v57_v19 = vmul.f32 %v317_v14, %v317_v14  ;;  %v46_v20 = vmul.f32 0.03125, %v34_v17  ;;  %v55_v21 = vmul.f32 %v319_v15, %v319_v15 }
  0x93   :  { %v53_v22 = vsub.f32 %v24_v1, %v48_v18  ;;  %v66_v23 = vsel %vm28_vm0, %v57_v19, 0.0  ;;  %v326_v24 = vsub.f32 %v22_v5, %v46_v20  ;;  %v60_v28 = vsel %vm28_vm0, %v55_v21, 0.0 }
  0x94   :  { %v43_v25 = vpop.xlane.xlu0 %42  ;;  %67 = vadd.xlane.f32.xlu1 %v66_v23 }
  0x95   :  { %v49_v26 = vmul.f32 0.03125, %v43_v25  ;;  %v58_v27 = vmul.f32 %v53_v22, %v53_v22  ;;  %v56_v29 = vmul.f32 %v326_v24, %v326_v24 }
  0x97   :  { %v54_v30 = vsub.f32 %v25_v8, %v49_v26  ;;  %v69_v31 = vsel %vm28_vm0, %v58_v27, 0.0  ;;  %v63_v33 = vsel %vm28_vm0, %v56_v29, 0.0 }
  0x98   :  { %70 = vadd.xlane.f32.xlu0 %v69_v31  ;;  %61 = vadd.xlane.f32.xlu1 %v60_v28 }
  0x99   :  { %v59_v32 = vmul.f32 %v54_v30, %v54_v30 }
  0x9b   :  { %v72_v34 = vsel %vm28_vm0, %v59_v32, 0.0 }
  0x9c   :  { %73 = vadd.xlane.f32.xlu1 %v72_v34  ;;  %64 = vadd.xlane.f32.xlu0 %v63_v33 }
 0x11d   :  { %v68_v38 = vpop.xlane.xlu1 %67 }
 0x11e   :  { %v77_v39 = vmul.f32 0.03125, %v68_v38 }
 0x120   :  { %v82_v40 = vadd.f32 1e-05, %v77_v39 }
 0x121   :  { %v71_v41 = vpop.xlane.xlu0 %70  ;;  %v62_v42 = vpop.xlane.xlu1 %61 }
 0x122   :  { %255 = vrsqrt.f32 %v82_v40  ;;  %v78_v43 = vmul.f32 0.03125, %v71_v41  ;;  %v75_v44 = vmul.f32 0.03125, %v62_v42 }
 0x124   :  { %v83_v45 = vadd.f32 1e-05, %v78_v43  ;;  %v80_v46 = vadd.f32 1e-05, %v75_v44 }
 0x125   :  { %v65_v47 = vpop.xlane.xlu0 %64  ;;  %v74_v48 = vpop.xlane.xlu1 %73 }
 0x126   :  { %257 = vrsqrt.f32 %v83_v45  ;;  %v76_v49 = vmul.f32 0.03125, %v65_v47  ;;  %v79_v50 = vmul.f32 0.03125, %v74_v48 }
 0x127   :  { %259 = vrsqrt.f32 %v80_v46 }
 0x128   :  { %v81_v51 = vadd.f32 1e-05, %v76_v49  ;;  %v84_v52 = vadd.f32 1e-05, %v79_v50 }
 0x12a   :  { %261 = vrsqrt.f32 %v81_v51 }
 0x12b   :  { %263 = vrsqrt.f32 %v84_v52 }
 0x12f   :  { %v256_v53 = vpop.eup %255 }
 0x130   :  { %v92_v54 = vmul.f32 %v256_v53, %v317_v14  ;;  %v220_v14 = vld [vmem:[%s382_s4] ss:$0 sm:$0xff] }
 0x132   :  { %v103_v59 = vmul.f32 %v218_v55, %v92_v54 }
 0x133   :  { %v258_v56 = vpop.eup %257 }
 0x134   :  { %v260_v57 = vpop.eup %259  ;;  %v93_v58 = vmul.f32 %v258_v56, %v53_v22  ;;  %v114_v1 = vadd.f32 %v219_v60, %v103_v59 }
 0x135   :  { %v90_v61 = vmul.f32 %v260_v57, %v319_v15 }
 0x136   :  { %v104_v62 = vmul.f32 %v218_v55, %v93_v58 }
 0x137   :  { %v262_v63 = vpop.eup %261  ;;  %v101_v4 = vmul.f32 %v218_v55, %v90_v61 }
 0x138   :  { %v264_v0 = vpop.eup %263  ;;  %v115_v2 = vadd.f32 %v219_v60, %v104_v62  ;;  %v91_v3 = vmul.f32 %v262_v63, %v326_v24 }
 0x139   :  { %v94_v5 = vmul.f32 %v264_v0, %v54_v30  ;;  %v112_v9 = vadd.f32 %v219_v60, %v101_v4 }
 0x13a   :  { %v118_v6 = vpack.c.bf16 %v115_v2, %v114_v1  ;;  %v102_v7 = vmul.f32 %v218_v55, %v91_v3 }
 0x13b   :  { %v105_v8 = vmul.f32 %v218_v55, %v94_v5 }
 0x13c   :  { %240 = vmatmul.mubr.msk.bf16.vlgmr.msra.gmra.mxu1 %vm28_vm0, %v118_v6  ;;  %v113_v10 = vadd.f32 %v219_v60, %v102_v7 }
 0x13d   :  { %243 = vmatprep.mubr.msk.bf16.mxu1 %vm266_vm1, %v265_v35  ;;  %v116_v12 = vadd.f32 %v219_v60, %v105_v8 }
 0x13e   :  { %v117_v11 = vpack.c.bf16 %v113_v10, %v112_v9 }
 0x13f   :  { %v119_v13 = vpack.c.bf16 %v116_v12, %v116_v12 }
 0x140   :  { %236 = vmatmul.mubr.msk.bf16.vlgmr.msra.gmra.mxu0 %vm28_vm0, %v117_v11 }
 0x144   :  { %244 = vmatmul.mubr.msk.bf16.gmra.mxu1 %vm28_vm0, %v119_v13 }
 0x1fc   :  { %v194_v15 = vpop.f32.mrf.mxu1 }
 0x1fd   :  { %v195_v16 = vadd.f32 %v220_v14, %v194_v15 }
 0x1fe   :  { %v241_v17 = vpop.f32.mrf.mxu1 }
 0x1ff   :  { %211 = vst.msk [vmem:[%s383_s5 + $0x10] sm:$0xff] %vm208_vm2, %v195_v16 }
 0x200   :  { %v186_v18 = vpop.f32.mrf.mxu0  ;;  %v197_v19 = vpop.f32.mrf.mxu1 }
 0x201   :  { %v187_v20 = vadd.f32 %v220_v14, %v186_v18  ;;  %v198_v21 = vadd.f32 %v220_v14, %v197_v19 }
 0x202   :  { %v237_v22 = vpop.f32.mrf.mxu0  ;;  %v242_v23 = vpop.f32.mrf.mxu1 }
 0x203   :  { %209 = vst.msk [vmem:[%s383_s5] sm:$0xff] %vm208_vm2, %v187_v20  ;;  %212 = vst.msk [vmem:[%s383_s5 + $0x18] sm:$0xff] %vm208_vm2, %v198_v21 }
 0x204   :  { %v189_v24 = vpop.f32.mrf.mxu0  ;;  %v202_v25 = vpop.f32.mrf.mxu1 }
 0x205   :  { %v190_v26 = vadd.f32 %v220_v14, %v189_v24  ;;  %v203_v27 = vadd.f32 %v220_v14, %v202_v25 }
 0x206   :  { %v238_v28 = vpop.f32.mrf.mxu0  ;;  %v245_v29 = vpop.f32.mrf.mxu1 }
 0x207   :  { %210 = vst.msk [vmem:[%s383_s5 + $0x8] sm:$0xff] %vm208_vm2, %v190_v26  ;;  %213 = vst.msk [vmem:[%s383_s5 + $0x20] sm:$0xff] %vm208_vm2, %v203_v27 }
 0x208   :  { %v205_v30 = vpop.f32.mrf.mxu1 }
 0x20a   :  { %v246_v31 = vpop.f32.mrf.mxu1 }

// kernel: hubert_forward.8
= control target key start
LH: loop header
LB: loop body
LE: loop exit
PB: predicated region body
PF: predicated region fallthrough
CT: control target
= control target key end

     0   :  { %v396_v0 = vmov 0.0   ;;  %vm397_vm0 = vmmov 0   ;;  %vm94_vm1 = vcmask 785408   ;;  %vm162_vm2 = vcmask 261120   ;;  %s497_s1 = inlined_call_operand.vmem [shape: bf16[96,32], index: 1, kind: input, shape index: {}]   ;;  %s498_s0 = inlined_call_operand.vmem [shape: bf16[40,96], index: 0, kind: input, shape index: {}]   ;;  %s499_s2 = inlined_call_operand.vmem [shape: f32[1,32], index: 2, kind: input, shape index: {}]   ;;  %s500_s3 = inlined_call_operand.vmem [shape: f32[1,32], index: 3, kind: input, shape index: {}]   ;;  %s501_s4 = inlined_call_operand.vmem [shape: f32[1,32], index: 4, kind: input, shape index: {}]   ;;  %s502_s5 = inlined_call_operand.vmem [shape: f32[40,32], index: 5, kind: output, shape index: {}]  }
   0x1   :  { %329 = vmatprep.subr.bf16.mxu0 %v396_v0  ;;  %353 = vmatprep.subr.bf16.mxu1 %v396_v0  ;;  %v367_v1 = vld [vmem:[%s497_s1 + $0x28] sm:$0xff]   ;;  %v368_v2 = vld [vmem:[%s497_s1 + $0x20] sm:$0xff]   ;;  %v369_v3 = vld [vmem:[%s497_s1 + $0x18] sm:$0xff]  }
   0x2   :  { %341 = vmatprep.mubr.msk.bf16.mxu0 %vm397_vm0, %v396_v0  ;;  %345 = vmatprep.mubr.msk.bf16.mxu1 %vm397_vm0, %v396_v0  ;;  %v370_v4 = vld [vmem:[%s497_s1 + $0x10] sm:$0xff]   ;;  %v371_v5 = vld [vmem:[%s497_s1 + $0x8] sm:$0xff]   ;;  %v372_v6 = vld [vmem:[%s497_s1] sm:$0xff]  }
   0x3   :  { %330 = vmatpush3.bf16.msra.mxu0 %v367_v1  ;;  %359 = vmatpush3.bf16.msra.mxu1 %v367_v1  ;;  %v373_v7 = vld [vmem:[%s498_s0] sm:$0xff]   ;;  %v374_v8 = vld [vmem:[%s498_s0 + $0x8] sm:$0xff]   ;;  %v375_v9 = vld [vmem:[%s498_s0 + $0x10] ss:$0 sps:$4 sm:$0xff]  }
   0x4   :  { %331 = vmatprep.subr.bf16.mxu0 %v396_v0  ;;  %354 = vmatprep.subr.bf16.mxu1 %v396_v0  ;;  %v305_v10 = vld [vmem:[%s499_s2] ss:$0 sm:$0xff] }
   0x7   :  { %332 = vmatpush3.bf16.msra.mxu0 %v368_v2  ;;  %360 = vmatpush3.bf16.msra.mxu1 %v368_v2 }
   0x8   :  { %333 = vmatprep.subr.bf16.mxu0 %v396_v0  ;;  %355 = vmatprep.subr.bf16.mxu1 %v396_v0 }
   0xb   :  { %334 = vmatpush3.bf16.msra.mxu0 %v369_v3  ;;  %361 = vmatpush3.bf16.msra.mxu1 %v369_v3 }
   0xc   :  { %335 = vmatprep.subr.bf16.mxu0 %v396_v0  ;;  %356 = vmatprep.subr.bf16.mxu1 %v396_v0 }
   0xf   :  { %336 = vmatpush3.bf16.msra.mxu0 %v370_v4  ;;  %362 = vmatpush3.bf16.msra.mxu1 %v370_v4 }
  0x10   :  { %337 = vmatprep.subr.bf16.mxu0 %v396_v0  ;;  %357 = vmatprep.subr.bf16.mxu1 %v396_v0 }
  0x13   :  { %338 = vmatpush3.bf16.msra.mxu0 %v371_v5  ;;  %363 = vmatpush3.bf16.msra.mxu1 %v371_v5 }
  0x14   :  { %339 = vmatprep.subr.bf16.mxu0 %v396_v0  ;;  %358 = vmatprep.subr.bf16.mxu1 %v396_v0 }
  0x17   :  { %340 = vmatpush3.bf16.msra.mxu0 %v372_v6  ;;  %364 = vmatpush3.bf16.msra.mxu1 %v372_v6 }
  0x1a   :  { %342 = vmatmul.mubr.msk.bf16.vlgmr.msra.gmra.mxu0 %vm94_vm1, %v373_v7  ;;  %346 = vmatmul.mubr.msk.bf16.vlgmr.msra.gmra.mxu1 %vm94_vm1, %v374_v8 }
  0x1b   :  { %349 = vmatprep.mubr.msk.bf16.mxu1 %vm397_vm0, %v396_v0 }
  0x22   :  { %350 = vmatmul.mubr.msk.bf16.gmra.mxu1 %vm94_vm1, %v375_v9 }
  0xda   :  { %v138_v11 = vpop.f32.mrf.mxu0  ;;  %v146_v12 = vpop.f32.mrf.mxu1 }
  0xdb   :  { %v139_v13 = vadd.f32 %v305_v10, %v138_v11  ;;  %v147_v14 = vadd.f32 %v305_v10, %v146_v12  ;;  %v319_v12 = vld [vmem:[%s501_s4] ss:$0 sm:$0xff] }
  0xdc   :  { %v343_v15 = vpop.f32.mrf.mxu0  ;;  %v347_v16 = vpop.f32.mrf.mxu1 }
  0xdd   :  { %v169_v17 = vsel %vm162_vm2, %v147_v14, 0.0  ;;  %v163_v18 = vsel %vm162_vm2, %v139_v13, 0.0 }
  0xde   :  { %170 = vadd.xlane.f32.xlu1 %v169_v17  ;;  %v149_v19 = vpop.f32.mrf.mxu1  ;;  %164 = vadd.xlane.f32.xlu0 %v163_v18  ;;  %v141_v20 = vpop.f32.mrf.mxu0 }
  0xdf   :  { %v150_v21 = vadd.f32 %v305_v10, %v149_v19  ;;  %v142_v22 = vadd.f32 %v305_v10, %v141_v20 }
  0xe0   :  { %v344_v23 = vpop.f32.mrf.mxu0  ;;  %v348_v24 = vpop.f32.mrf.mxu1 }
  0xe1   :  { %v172_v25 = vsel %vm162_vm2, %v150_v21, 0.0  ;;  %v166_v26 = vsel %vm162_vm2, %v142_v22, 0.0 }
  0xe2   :  { %173 = vadd.xlane.f32.xlu1 %v172_v25  ;;  %v154_v27 = vpop.f32.mrf.mxu1  ;;  %167 = vadd.xlane.f32.xlu0 %v166_v26 }
  0xe3   :  { %v155_v28 = vadd.f32 %v305_v10, %v154_v27  ;;  %v318_v10 = vld [vmem:[%s500_s3] ss:$0 sm:$0xff] }
  0xe4   :  { %v351_v29 = vpop.f32.mrf.mxu1 }
  0xe5   :  { %v175_v30 = vsel %vm162_vm2, %v155_v28, 0.0 }
  0xe6   :  { %v157_v31 = vpop.f32.mrf.mxu1  ;;  %176 = vadd.xlane.f32.xlu0 %v175_v30 }
  0xe8   :  { %v352_v32 = vpop.f32.mrf.mxu1 }
 0x167   :  { %v171_v33 = vpop.xlane.xlu1 %170  ;;  %v165_v34 = vpop.xlane.xlu0 %164 }
 0x168   :  { %v181_v35 = vmul.f32 0.03125, %v171_v33  ;;  %v179_v36 = vmul.f32 0.03125, %v165_v34 }
 0x16a   :  { %v186_v37 = vsub.f32 %v147_v14, %v181_v35  ;;  %v184_v38 = vsub.f32 %v139_v13, %v179_v36 }
 0x16b   :  { %v174_v39 = vpop.xlane.xlu1 %173  ;;  %v168_v40 = vpop.xlane.xlu0 %167 }
 0x16c   :  { %v182_v41 = vmul.f32 0.03125, %v174_v39  ;;  %v180_v42 = vmul.f32 0.03125, %v168_v40  ;;  %v189_v43 = vmul.f32 %v184_v38, %v184_v38  ;;  %v191_v47 = vmul.f32 %v186_v37, %v186_v37 }
 0x16e   :  { %v187_v44 = vsub.f32 %v150_v21, %v182_v41  ;;  %v185_v45 = vsub.f32 %v142_v22, %v180_v42  ;;  %v194_v46 = vsel %vm162_vm2, %v189_v43, 0.0  ;;  %v200_v52 = vsel %vm162_vm2, %v191_v47, 0.0 }
 0x16f   :  { %195 = vadd.xlane.f32.xlu1 %v194_v46  ;;  %v177_v48 = vpop.xlane.xlu0 %176 }
 0x170   :  { %v183_v49 = vmul.f32 0.03125, %v177_v48  ;;  %v190_v50 = vmul.f32 %v185_v45, %v185_v45  ;;  %v192_v54 = vmul.f32 %v187_v44, %v187_v44 }
 0x172   :  { %v188_v51 = vsub.f32 %v155_v28, %v183_v49  ;;  %v197_v53 = vsel %vm162_vm2, %v190_v50, 0.0  ;;  %v203_v56 = vsel %vm162_vm2, %v192_v54, 0.0 }
 0x173   :  { %201 = vadd.xlane.f32.xlu1 %v200_v52  ;;  %198 = vadd.xlane.f32.xlu0 %v197_v53 }
 0x174   :  { %v193_v55 = vmul.f32 %v188_v51, %v188_v51 }
 0x176   :  { %v206_v57 = vsel %vm162_vm2, %v193_v55, 0.0 }
 0x177   :  { %204 = vadd.xlane.f32.xlu0 %v203_v56  ;;  %207 = vadd.xlane.f32.xlu1 %v206_v57 }
 0x1f8   :  { %v196_v58 = vpop.xlane.xlu1 %195 }
 0x1f9   :  { %v209_v59 = vmul.f32 0.03125, %v196_v58 }
 0x1fb   :  { %v214_v60 = vadd.f32 1e-05, %v209_v59 }
 0x1fc   :  { %v202_v61 = vpop.xlane.xlu1 %201  ;;  %v199_v62 = vpop.xlane.xlu0 %198 }
 0x1fd   :  { %376 = vrsqrt.f32 %v214_v60  ;;  %v211_v63 = vmul.f32 0.03125, %v202_v61  ;;  %v210_v0 = vmul.f32 0.03125, %v199_v62 }
 0x1ff   :  { %v216_v1 = vadd.f32 1e-05, %v211_v63  ;;  %v215_v2 = vadd.f32 1e-05, %v210_v0 }
 0x200   :  { %v208_v3 = vpop.xlane.xlu1 %207  ;;  %v205_v4 = vpop.xlane.xlu0 %204 }
 0x201   :  { %378 = vrsqrt.f32 %v216_v1  ;;  %v213_v5 = vmul.f32 0.03125, %v208_v3  ;;  %v212_v6 = vmul.f32 0.03125, %v205_v4 }
 0x202   :  { %380 = vrsqrt.f32 %v215_v2 }
 0x203   :  { %v218_v7 = vadd.f32 1e-05, %v213_v5  ;;  %v217_v8 = vadd.f32 1e-05, %v212_v6 }
 0x205   :  { %382 = vrsqrt.f32 %v218_v7 }
 0x206   :  { %384 = vrsqrt.f32 %v217_v8 }
 0x20a   :  { %v377_v9 = vpop.eup %376 }
 0x20b   :  { %v224_v11 = vmul.f32 %v377_v9, %v184_v38 }
 0x20d   :  { %v235_v13 = vmul.f32 %v318_v10, %v224_v11 }
 0x20e   :  { %v379_v14 = vpop.eup %378 }
 0x20f   :  { %v381_v15 = vpop.eup %380  ;;  %v246_v16 = vadd.f32 %v319_v12, %v235_v13  ;;  %v226_v17 = vmul.f32 %v379_v14, %v186_v37 }
 0x210   :  { %v225_v18 = vmul.f32 %v381_v15, %v185_v45 }
 0x211   :  { %v256_v19 = vmul.f32 0.044715, %v246_v16  ;;  %v237_v20 = vmul.f32 %v318_v10, %v226_v17  ;;  %v251_v57 = vmul.f32 0.5, %v246_v16 }
 0x212   :  { %v383_v21 = vpop.eup %382  ;;  %v236_v22 = vmul.f32 %v318_v10, %v225_v18 }
 0x213   :  { %v385_v23 = vpop.eup %384  ;;  %v261_v24 = vmul.f32 %v256_v19, %v246_v16  ;;  %v248_v25 = vadd.f32 %v319_v12, %v237_v20  ;;  %v228_v26 = vmul.f32 %v383_v21, %v188_v51 }
 0x214   :  { %v247_v27 = vadd.f32 %v319_v12, %v236_v22  ;;  %v227_v28 = vmul.f32 %v385_v23, %v187_v44 }
 0x215   :  { %v266_v29 = vmul.f32 %v261_v24, %v246_v16  ;;  %v258_v30 = vmul.f32 0.044715, %v248_v25  ;;  %v239_v31 = vmul.f32 %v318_v10, %v228_v26  ;;  %v253_v62 = vmul.f32 0.5, %v248_v25 }
 0x216   :  { %v257_v32 = vmul.f32 0.044715, %v247_v27  ;;  %v238_v33 = vmul.f32 %v318_v10, %v227_v28  ;;  %v252_v0 = vmul.f32 0.5, %v247_v27 }
 0x217   :  { %v271_v34 = vadd.f32 %v266_v29, %v246_v16  ;;  %v263_v35 = vmul.f32 %v258_v30, %v248_v25  ;;  %v250_v36 = vadd.f32 %v319_v12, %v239_v31 }
 0x218   :  { %v262_v37 = vmul.f32 %v257_v32, %v247_v27  ;;  %v249_v38 = vadd.f32 %v319_v12, %v238_v33 }
 0x219   :  { %v276_v39 = vmul.f32 0.7978846, %v271_v34  ;;  %v268_v40 = vmul.f32 %v263_v35, %v248_v25  ;;  %v260_v41 = vmul.f32 0.044715, %v250_v36  ;;  %v255_v6 = vmul.f32 0.5, %v250_v36 }
 0x21a   :  { %v267_v42 = vmul.f32 %v262_v37, %v247_v27  ;;  %v259_v43 = vmul.f32 0.044715, %v249_v38  ;;  %v254_v8 = vmul.f32 0.5, %v249_v38 }
 0x21b   :  { %386 = vtanh.f32 %v276_v39  ;;  %v273_v45 = vadd.f32 %v268_v40, %v248_v25  ;;  %v265_v46 = vmul.f32 %v260_v41, %v250_v36 }
 0x21c   :  { %v272_v47 = vadd.f32 %v267_v42, %v247_v27  ;;  %v264_v44 = vmul.f32 %v259_v43, %v249_v38 }
 0x21d   :  { %v278_v48 = vmul.f32 0.7978846, %v273_v45  ;;  %v270_v49 = vmul.f32 %v265_v46, %v250_v36 }
 0x21e   :  { %v277_v50 = vmul.f32 0.7978846, %v272_v47  ;;  %v269_v51 = vmul.f32 %v264_v44, %v249_v38 }
 0x21f   :  { %388 = vtanh.f32 %v278_v48  ;;  %v275_v52 = vadd.f32 %v270_v49, %v250_v36 }
 0x220   :  { %390 = vtanh.f32 %v277_v50  ;;  %v274_v53 = vadd.f32 %v269_v51, %v249_v38 }
 0x221   :  { %v280_v54 = vmul.f32 0.7978846, %v275_v52 }
 0x222   :  { %v279_v55 = vmul.f32 0.7978846, %v274_v53 }
 0x223   :  { %392 = vtanh.f32 %v280_v54 }
 0x224   :  { %394 = vtanh.f32 %v279_v55 }
 0x228   :  { %v387_v56 = vpop.eup %386 }
 0x229   :  { %v286_v58 = vadd.f32 1.0, %v387_v56 }
 0x22b   :  { %v291_v59 = vmul.f32 %v286_v58, %v251_v57 }
 0x22c   :  { %v389_v60 = vpop.eup %388 }
 0x22d   :  { %v391_v61 = vpop.eup %390  ;;  %296 = vst.msk [vmem:[%s502_s5] sm:$0xff] %vm162_vm2, %v291_v59  ;;  %v288_v63 = vadd.f32 1.0, %v389_v60 }
 0x22e   :  { %v287_v1 = vadd.f32 1.0, %v391_v61 }
 0x22f   :  { %v293_v2 = vmul.f32 %v288_v63, %v253_v62 }
 0x230   :  { %v393_v3 = vpop.eup %392  ;;  %v292_v4 = vmul.f32 %v287_v1, %v252_v0 }
 0x231   :  { %v395_v5 = vpop.eup %394  ;;  %298 = vst.msk [vmem:[%s502_s5 + $0x10] sm:$0xff] %vm162_vm2, %v293_v2  ;;  %v290_v7 = vadd.f32 1.0, %v393_v3 }
 0x232   :  { %297 = vst.msk [vmem:[%s502_s5 + $0x8] sm:$0xff] %vm162_vm2, %v292_v4  ;;  %v289_v9 = vadd.f32 1.0, %v395_v5 }
 0x233   :  { %v295_v10 = vmul.f32 %v290_v7, %v255_v6 }
 0x234   :  { %v294_v11 = vmul.f32 %v289_v9, %v254_v8 }
 0x235   :  { %300 = vst.msk [vmem:[%s502_s5 + $0x20] sm:$0xff] %vm162_vm2, %v295_v10 }
 0x236   :  { %299 = vst.msk [vmem:[%s502_s5 + $0x18] sm:$0xff] %vm162_vm2, %v294_v11 }

// kernel: hubert_forward.10
= control target key start
LH: loop header
LB: loop body
LE: loop exit
PB: predicated region body
PF: predicated region fallthrough
CT: control target
= control target key end

     0   :  { %s857_s12 = smov 0   ;;  %s971_s0 = inlined_call_operand.vmem [shape: f32[2,24,64], index: 0, kind: input, shape index: {}]   ;;  %s972_s1 = inlined_call_operand.vmem [shape: bf16[4,64,64], index: 1, kind: input, shape index: {}]   ;;  %s973_s2 = inlined_call_operand.vmem [shape: f32[1,64], index: 2, kind: input, shape index: {}]   ;;  %s974_s3 = inlined_call_operand.vmem [shape: f32[2,24,64], index: 3, kind: output, shape index: {}]  }
   0x1 LB: > { %s668_s13 = sadd.s32 4294967295, %s835_s12   ;;  %p672_p0 = scmp.ge.s32.totalorder %s835_s12, 1  ;;  %s835_s12 = sphi %s857_s12, %s13_s12  }
   0x2   : > { %p137_p1 = scmp.lt.s32.totalorder %s835_s12, 3 }
   0x4   : > { %p138_p2 = pnand %p672_p0, %p137_p1 }
   0x5   : > { %p161_p3 = scmp.lt.s32.totalorder (!%p138_p2), %s668_s13, 1 }
   0x6   : > { %141 = sbr.rel (%p138_p2) target bundleno = 280 (0x118), region = 32 }
   0xb   : > { %v807_v0 = vld [vmem:[%s972_s1 + $0x38] sm:$0xff]   ;;  %v809_v2 = vld [vmem:[%s972_s1 + $0x30] sm:$0xff]   ;;  %s976_s13 = smov (!%p161_p3, %s668_s13), 1  ;;  %v811_v4 = vld [vmem:[%s972_s1 + $0x28] sm:$0xff]   ;;  %vm198_vm0 = vcmask 1040384   ;;  %vm178_vm1 = vcmask 1041408  }
   0xc   : > { %v808_v1 = vld [vmem:[%s972_s1 + $0x18] sm:$0xff]   ;;  %750 = vmatprep.subr.bf16.mxu0 %v807_v0  ;;  %v810_v3 = vld [vmem:[%s972_s1 + $0x10] sm:$0xff]   ;;  %s798_s24 = smul.u32 24, %s976_s13  ;;  %v812_v5 = vld [vmem:[%s972_s1 + $0x8] sm:$0xff]   ;;  %vm243_vm2 = vcmask 523264   ;;  %vm468_vm3 = vcmask 1046528  }
   0xd   : > { %762 = vmatprep.subr.bf16.mxu1 %v808_v1  ;;  %751 = vmatpush3.bf16.msra.mxu0 %v807_v0  ;;  %v813_v6 = vld [vmem:[%s972_s1 + $0x20] sm:$0xff]   ;;  %v815_v23 = vld [vmem:[%s972_s1 + $0x58] sm:$0xff]   ;;  %v817_v33 = vld [vmem:[%s972_s1 + $0x50] sm:$0xff]  }
   0xe   : > { %763 = vmatpush3.bf16.msra.mxu1 %v808_v1  ;;  %752 = vmatprep.subr.bf16.mxu0 %v809_v2  ;;  %s165_s4 = scalar_lea.vmem %s971_s0, %s798_s24  ;;  %v814_v7 = vld [vmem:[%s972_s1] sm:$0xff]   ;;  %v816_v27 = vld [vmem:[%s972_s1 + $0x78] sm:$0xff]   ;;  %v818_v35 = vld [vmem:[%s972_s1 + $0x70] sm:$0xff]   ;;  %s170_s30 = scalar_lea.vmem %s974_s3, %s798_s24 }
   0xf   : > { %764 = vmatprep.subr.bf16.mxu1 %v810_v3  ;;  %v897_v8 = vld [vmem:[%s165_s4] sm:$0xff]  ;;  %v899_v9 = vld [vmem:[%s165_s4 + $0x8] sm:$0xff]  ;;  %v901_v10 = vld [vmem:[%s165_s4 + $0x10] sm:$0xff] }
  0x10   : > { %v199_v11 = vrot.slane %v897_v8, 7  ;;  %v200_v12 = vrot.slane %v899_v9, 7  ;;  %v202_v13 = vrot.slane %v901_v10, 7  ;;  %v179_v14 = vrot.slane %v897_v8, 6  ;;  %v819_v38 = vld [vmem:[%s972_s1 + $0x48] sm:$0xff]   ;;  %v821_v40 = vld [vmem:[%s972_s1 + $0x40] sm:$0xff]  }
  0x11   : > { %753 = vmatpush3.bf16.msra.mxu0 %v809_v2  ;;  %v180_v15 = vrot.slane %v899_v9, 6  ;;  %v182_v16 = vrot.slane %v901_v10, 6  ;;  %v469_v24 = vrot.slane %v897_v8, 1  ;;  %v470_v28 = vrot.slane %v899_v9, 1  ;;  %v820_v39 = vld [vmem:[%s972_s1 + $0x68] sm:$0xff]   ;;  %v822_v41 = vld [vmem:[%s972_s1 + $0x60] sm:$0xff]  }
  0x12   : > { %765 = vmatpush3.bf16.msra.mxu1 %v810_v3  ;;  %754 = vmatprep.subr.bf16.mxu0 %v811_v4  ;;  %v201_v17 = vsel %vm198_vm0, %v199_v11, %v200_v12  ;;  %v203_v18 = vsel %vm198_vm0, %v200_v12, %v202_v13  ;;  %v207_v19 = vsel %vm198_vm0, 0.0, %v199_v11  ;;  %v187_v20 = vsel %vm178_vm1, 0.0, %v179_v14  ;;  %v723_v58 = vld [vmem:[%s973_s2] ss:$0 sm:$0xff] }
  0x13   : > { %766 = vmatprep.subr.bf16.mxu1 %v812_v5  ;;  %v208_v21 = vpack.c.bf16 %v201_v17, %v207_v19  ;;  %v181_v22 = vsel %vm178_vm1, %v179_v14, %v180_v15  ;;  %v183_v25 = vsel %vm178_vm1, %v180_v15, %v182_v16  ;;  %v209_v29 = vpack.c.bf16 %v203_v18, %v203_v18 }
  0x14   : > { %v188_v26 = vpack.c.bf16 %v181_v22, %v187_v20  ;;  %v472_v30 = vrot.slane %v901_v10, 1  ;;  %v189_v31 = vpack.c.bf16 %v183_v25, %v183_v25  ;;  %v471_v32 = vsel %vm468_vm3, %v469_v24, %v470_v28 }
  0x15   : > { %755 = vmatpush3.bf16.msra.mxu0 %v811_v4  ;;  %758 = vmatprep.mubr.msk.bf16.mxu0 %vm243_vm2, %v208_v21  ;;  %v376_v36 = vpack.c.bf16 %v899_v9, %v897_v8  ;;  %v377_v43 = vpack.c.bf16 %v901_v10, %v901_v10 }
  0x16   : > { %767 = vmatpush3.bf16.msra.mxu1 %v812_v5  ;;  %756 = vmatprep.subr.bf16.mxu0 %v813_v6  ;;  %v473_v34 = vsel %vm468_vm3, %v470_v28, %v472_v30  ;;  %v477_v42 = vsel %vm468_vm3, %v472_v30, 0.0 }
  0x17   : > { %768 = vmatprep.subr.bf16.mxu1 %v814_v7  ;;  %770 = vmatprep.mubr.msk.bf16.mxu1 %vm243_vm2, %v188_v26  ;;  %v478_v37 = vpack.c.bf16 %v473_v34, %v471_v32  ;;  %v479_v44 = vpack.c.bf16 %v477_v42, %v477_v42 }
  0x19   : > { %757 = vmatpush3.bf16.msra.mxu0 %v813_v6 }
  0x1a   : > { %769 = vmatpush3.bf16.msra.mxu1 %v814_v7  ;;  %774 = vmatprep.subr.bf16.mxu0 %v815_v23 }
  0x1b   : > { %786 = vmatprep.subr.bf16.mxu1 %v816_v27 }
  0x1c   : > { %759 = vmatmul.mubr.msk.bf16.vlgmr.msra.gmra.mxu0 %vm243_vm2, %v209_v29 }
  0x1d   : > { %771 = vmatmul.mubr.msk.bf16.vlgmr.msra.gmra.mxu1 %vm243_vm2, %v189_v31  ;;  %775 = vmatpush3.bf16.msra.mxu0 %v815_v23 }
  0x1e   : > { %787 = vmatpush3.bf16.msra.mxu1 %v816_v27  ;;  %776 = vmatprep.subr.bf16.mxu0 %v817_v33 }
  0x1f   : > { %788 = vmatprep.subr.bf16.mxu1 %v818_v35  ;;  %782 = vmatprep.mubr.msk.bf16.mxu0 %vm243_vm2, %v376_v36 }
  0x20   : > { %794 = vmatprep.mubr.msk.bf16.mxu1 %vm243_vm2, %v478_v37 }
  0x21   : > { %777 = vmatpush3.bf16.msra.mxu0 %v817_v33 }
  0x22   : > { %789 = vmatpush3.bf16.msra.mxu1 %v818_v35  ;;  %778 = vmatprep.subr.bf16.mxu0 %v819_v38 }
  0x23   : > { %790 = vmatprep.subr.bf16.mxu1 %v820_v39 }
  0x25   : > { %779 = vmatpush3.bf16.msra.mxu0 %v819_v38 }
  0x26   : > { %791 = vmatpush3.bf16.msra.mxu1 %v820_v39  ;;  %780 = vmatprep.subr.bf16.mxu0 %v821_v40 }
  0x27   : > { %792 = vmatprep.subr.bf16.mxu1 %v822_v41 }
  0x29   : > { %781 = vmatpush3.bf16.msra.mxu0 %v821_v40 }
  0x2a   : > { %793 = vmatpush3.bf16.msra.mxu1 %v822_v41 }
  0x2c   : > { %783 = vmatmul.mubr.msk.bf16.vlgmr.msra.gmra.mxu0 %vm243_vm2, %v377_v43 }
  0x2d   : > { %795 = vmatmul.mubr.msk.bf16.vlgmr.msra.gmra.mxu1 %vm243_vm2, %v479_v44 }
  0xdc   : > { %v760_v45 = vpop.f32.mrf.mxu0 }
  0xdd   : > { %v772_v46 = vpop.f32.mrf.mxu1 }
  0xde   : > { %v284_v47 = vpop.f32.mrf.mxu0  ;;  %v371_v52 = vadd.f32 %v772_v46, %v760_v45 }
  0xdf   : > { %v362_v48 = vpop.f32.mrf.mxu1 }
  0xe0   : > { %v761_v49 = vpop.f32.mrf.mxu0  ;;  %v363_v55 = vadd.f32 %v362_v48, %v284_v47 }
  0xe1   : > { %v773_v50 = vpop.f32.mrf.mxu1 }
  0xe2   : > { %v287_v51 = vpop.f32.mrf.mxu0 }
  0xe3   : > { %v365_v53 = vpop.f32.mrf.mxu1 }
  0xe4   : > { %v366_v0 = vadd.f32 %v365_v53, %v287_v51 }
  0xec   : > { %v784_v54 = vpop.f32.mrf.mxu0 }
  0xed   : > { %v467_v56 = vadd.f32 %v784_v54, %v371_v52  ;;  %v796_v57 = vpop.f32.mrf.mxu1 }
  0xee   : > { %v451_v59 = vpop.f32.mrf.mxu0 }
  0xef   : > { %v569_v60 = vadd.f32 %v796_v57, %v467_v56  ;;  %v465_v61 = vadd.f32 %v451_v59, %v363_v55  ;;  %v553_v62 = vpop.f32.mrf.mxu1 }
  0xf0   : > { %v785_v63 = vpop.f32.mrf.mxu0 }
  0xf1   : > { %v579_v1 = vadd.f32 %v723_v58, %v569_v60  ;;  %v567_v2 = vadd.f32 %v553_v62, %v465_v61  ;;  %v797_v3 = vpop.f32.mrf.mxu1 }
  0xf2   : > { %v454_v4 = vpop.f32.mrf.mxu0 }
  0xf3   : > { %v585_v5 = vmul.f32 0.044715, %v579_v1  ;;  %v577_v6 = vadd.f32 %v723_v58, %v567_v2  ;;  %v466_v7 = vadd.f32 %v454_v4, %v366_v0  ;;  %v556_v11 = vpop.f32.mrf.mxu1  ;;  %v582_v29 = vmul.f32 0.5, %v579_v1 }
  0xf5   : > { %v588_v12 = vmul.f32 %v585_v5, %v579_v1  ;;  %v583_v13 = vmul.f32 0.044715, %v577_v6  ;;  %v568_v14 = vadd.f32 %v556_v11, %v466_v7  ;;  %v580_v33 = vmul.f32 0.5, %v577_v6 }
  0xf7   : > { %v591_v15 = vmul.f32 %v588_v12, %v579_v1  ;;  %v586_v16 = vmul.f32 %v583_v13, %v577_v6  ;;  %v578_v17 = vadd.f32 %v723_v58, %v568_v14 }
  0xf9   : > { %v594_v18 = vadd.f32 %v591_v15, %v579_v1  ;;  %v589_v19 = vmul.f32 %v586_v16, %v577_v6  ;;  %v584_v20 = vmul.f32 0.044715, %v578_v17  ;;  %v581_v39 = vmul.f32 0.5, %v578_v17 }
  0xfb   : > { %v597_v21 = vmul.f32 0.7978846, %v594_v18  ;;  %v592_v22 = vadd.f32 %v589_v19, %v577_v6  ;;  %v587_v23 = vmul.f32 %v584_v20, %v578_v17 }
  0xfd   : > { %823 = vtanh.f32 %v597_v21  ;;  %v595_v24 = vmul.f32 0.7978846, %v592_v22  ;;  %v590_v25 = vmul.f32 %v587_v23, %v578_v17 }
  0xff   : > { %825 = vtanh.f32 %v595_v24  ;;  %v593_v26 = vadd.f32 %v590_v25, %v578_v17 }
 0x101   : > { %v596_v27 = vmul.f32 0.7978846, %v593_v26 }
 0x103   : > { %827 = vtanh.f32 %v596_v27 }
 0x10a   : > { %v824_v28 = vpop.eup %823 }
 0x10b   : > { %v603_v30 = vadd.f32 1.0, %v824_v28 }
 0x10c   : > { %v826_v31 = vpop.eup %825 }
 0x10d   : > { %v606_v32 = vmul.f32 %v603_v30, %v582_v29  ;;  %v601_v34 = vadd.f32 1.0, %v826_v31 }
 0x10f   : > { %v609_v35 = vadd.f32 %v606_v32, %v901_v10  ;;  %v604_v36 = vmul.f32 %v601_v34, %v580_v33 }
 0x110   : > { %v828_v37 = vpop.eup %827 }
 0x111   : > { %612 = vst.msk [vmem:[%s170_s30 + $0x10] sm:$0xff] %vm243_vm2, %v609_v35  ;;  %v607_v38 = vadd.f32 %v604_v36, %v897_v8  ;;  %v602_v40 = vadd.f32 1.0, %v828_v37 }
 0x113   : > { %610 = vst.msk [vmem:[%s170_s30] sm:$0xff] %vm243_vm2, %v607_v38  ;;  %v605_v41 = vmul.f32 %v602_v40, %v581_v39 }
 0x115   : > { %v608_v42 = vadd.f32 %v605_v41, %v899_v9 }
 0x117   : > { %611 = vst.msk [vmem:[%s170_s30 + $0x8] sm:$0xff] %vm243_vm2, %v608_v42 }
 0x118 PF: > { %s13_s12 = sadd.s32 1, %s835_s12  }
 0x119   : > { %p10_p4 = scmp.ge.s32.totalorder %s13_s12, 4  }
 0x11b   :  { %12 = sbr.rel (!%p10_p4) target bundleno = 1 (0x1), region = 65 }

// kernel: hubert_forward.11
= control target key start
LH: loop header
LB: loop body
LE: loop exit
PB: predicated region body
PF: predicated region fallthrough
CT: control target
= control target key end

     0   :  { %s3098_s27 = smov 0   ;;  %s3100_s28 = smov 0   ;;  %s3549_s0 = inlined_call_operand.vmem [shape: f32[2,24,64], index: 0, kind: input, shape index: {}]   ;;  %s3550_s1 = inlined_call_operand.vmem [shape: f32[24,24], index: 1, kind: input, shape index: {}]   ;;  %s3551_s2 = inlined_call_operand.vmem [shape: f32[11,1,64], index: 2, kind: input, shape index: {}]   ;;  %s3552_s3 = inlined_call_operand.vmem [shape: f32[11,1,64], index: 3, kind: input, shape index: {}]   ;;  %s3553_s4 = inlined_call_operand.vmem [shape: bf16[11,64,192], index: 4, kind: input, shape index: {}]   ;;  %s3554_s5 = inlined_call_operand.vmem [shape: f32[11,1,192], index: 5, kind: input, shape index: {}]   ;;  %s3555_s6 = inlined_call_operand.vmem [shape: bf16[11,64,64], index: 6, kind: input, shape index: {}]   ;;  %s3556_s7 = inlined_call_operand.vmem [shape: f32[11,1,64], index: 7, kind: input, shape index: {}]   ;;  %s3557_s8 = inlined_call_operand.vmem [shape: f32[11,1,64], index: 8, kind: input, shape index: {}]   ;;  %s3558_s9 = inlined_call_operand.vmem [shape: f32[11,1,64], index: 9, kind: input, shape index: {}]   ;;  %s3559_s10 = inlined_call_operand.vmem [shape: bf16[11,64,128], index: 10, kind: input, shape index: {}]   ;;  %s3560_s11 = inlined_call_operand.vmem [shape: f32[11,1,128], index: 11, kind: input, shape index: {}]   ;;  %s3561_s12 = inlined_call_operand.vmem [shape: bf16[11,128,64], index: 12, kind: input, shape index: {}]   ;;  %s3562_s13 = inlined_call_operand.vmem [shape: f32[11,1,64], index: 13, kind: input, shape index: {}]   ;;  %s3563_s14 = inlined_call_operand.vmem [shape: bf16[64,48], index: 14, kind: input, shape index: {}]   ;;  %s3564_s15 = inlined_call_operand.vmem [shape: f32[1,48], index: 15, kind: input, shape index: {}]   ;;  %s3565_s16 = inlined_call_operand.vmem [shape: bf16[48,8], index: 16, kind: input, shape index: {}]   ;;  %s3566_s17 = inlined_call_operand.vmem [shape: f32[1,8], index: 17, kind: input, shape index: {}]   ;;  %s3567_s18 = inlined_call_operand.vmem [shape: f32[2,8,8], index: 18, kind: output, shape index: {}]  }
   0x1   :  { %3575 = sst [smem:[#allocation9_spill]] %s3549_s0  ;;  %s3102_s29 = smov 0  }
   0x2   :  { %3576 = sst [smem:[#allocation10_spill]] %s3550_s1  ;;  %s3104_s30 = smov 0  }
   0x3   :  { %3577 = sst [smem:[#allocation11_spill]] %s3551_s2  ;;  %s3106_s0 = smov 0  }
   0x4   :  { %3578 = sst [smem:[#allocation12_spill]] %s3553_s4 }
   0x5   :  { %3579 = sst [smem:[#allocation13_spill]] %s3554_s5 }
   0x6   :  { %3580 = sst [smem:[#allocation14_spill]] %s3555_s6 }
   0x7   :  { %3581 = sst [smem:[#allocation15_spill]] %s3558_s9 }
   0x8   :  { %3582 = sst [smem:[#allocation16_spill]] %s3562_s13 }
   0x9   :  { %3583 = sst [smem:[#allocation17_spill]] %s3563_s14 }
   0xa   :  { %3584 = sst [smem:[#allocation18_spill]] %s3564_s15 }
   0xb   :  { %3585 = sst [smem:[#allocation19_spill]] %s3565_s16 }
   0xc   :  { %3586 = sst [smem:[#allocation20_spill]] %s3566_s17 }
   0xd   :  { %3587 = sst [smem:[#allocation21_spill]] %s3567_s18 }
   0xe LB: > { %3588 = sst [smem:[#allocation3_spill]] %s2975_s27  ;;  %s37_s19 = sadd.s32 1, %s2983_s29  ;;  %s2991_s0 = sphi %s3106_s0, %s28_s0   ;;  %s2987_s30 = sphi %s3104_s30, %s3621_s30   ;;  %s2983_s29 = sphi %s3102_s29, %s3620_s29   ;;  %s2979_s28 = sphi %s3100_s28, %s3619_s28   ;;  %s2975_s27 = sphi %s3098_s27, %s3618_s27  }
   0xf   : > { %3589 = sst [smem:[#allocation4_spill]] %s2983_s29  ;;  %s40_s1 = sadd.s32 1, %s2987_s30 }
  0x10   : > { %3590 = sst [smem:[#allocation5_spill]] %s2987_s30  ;;  %p38_p0 = scmp.ge.s32.totalorder %s37_s19, 11 }
  0x11   : > { %3591 = sst [smem:[#allocation6_spill]] %s2991_s0  ;;  %p2494_p1 = scmp.ge.s32.totalorder %s2991_s0, 1 }
  0x12   : > { %p629_p2 = scmp.lt.s32.totalorder %s2991_s0, 23  ;;  %s3623_s19 = smov (%p38_p0, %s37_s19), 0 }
  0x13   : > { %3592 = sst [smem:[#allocation7_spill]] %s3623_s19  ;;  %s3625_s1 = smov (!%p38_p0, %s40_s1), %s2987_s30 }
  0x14   : > { %p630_p3 = pnand %p2494_p1, %p629_p2  ;;  %p42_p4 = scmp.ge.s32.totalorder %s3625_s1, 2 }
  0x15   : > { %p727_p5 = scmp.lt.s32.totalorder (!%p630_p3), %s2979_s28, 1  ;;  %p732_p6 = scmp.lt.s32.totalorder (!%p630_p3), %s2975_s27, 10 }
  0x16   : > { %s3627_s1 = smov (%p42_p4, %s3625_s1), 0  ;;  %633 = sbr.rel (%p630_p3) target bundleno = 3537 (0xdd1), region = 92 }
  0x17   : > { %3593 = sst [smem:[#allocation8_spill]] %s3627_s1 }
  0x18   : > { %s3595_s0 = sld [smem:[#allocation9_spill]] (!%p630_p3) }
  0x19   : > { %s3596_s4 = sld [smem:[#allocation12_spill]] (!%p630_p3) }
  0x1a   : > { %s3597_s5 = sld [smem:[#allocation13_spill]] (!%p630_p3) }
  0x1b   : > { %s3629_s28 = smov (!%p727_p5, %s2979_s28), 1  ;;  %s3598_s6 = sld [smem:[#allocation14_spill]] }
  0x1c   : > { %s3132_s20 = scalar_select %p732_p6, %s2975_s27, 10 }
  0x1d   : > { %s2781_s21 = smul.u32 24, %s3629_s28  ;;  %s2505_s22 = sshll.u32 %s3629_s28, 3 }
  0x1e   : > { %s2572_s15 = sshll.u32 %s3132_s20, 6  ;;  %s2498_s28 = sshll.u32 %s3132_s20, 1 }
  0x1f   : > { %s731_s17 = scalar_lea.vmem %s3595_s0, %s2781_s21  ;;  %s3149_s27 = scalar_lea.vmem %s3596_s4, %s2572_s15 }
  0x20   : > { %s3155_s2 = scalar_lea.vmem %s3597_s5, %s2498_s28  ;;  %s2573_s23 = sshll.u32 %s3132_s20, 5 }
  0x21   : > { %s3161_s26 = scalar_lea.vmem %s3598_s6, %s2573_s23  ;;  %s3178_s4 = scalar_lea.vmem %s3559_s10, %s2573_s23 }
  0x22   : > { %s768_s5 = scalar_lea.vmem %s3560_s11, %s3132_s20  ;;  %s3187_s30 = scalar_lea.vmem %s3561_s12, %s2572_s15 }
  0x23   : > { %s3600_s16 = sld [smem:[#allocation16_spill]] }
  0x24   : > { %s3601_s13 = sld [smem:[#allocation21_spill]] }
  0x25   : > { %s3602_s23 = sld [smem:[#allocation3_spill]] }
  0x29   : > { %s776_s0 = scalar_lea.vmem %s3600_s16, %s3132_s20 }
  0x2a   : > { %s3196_s9 = scalar_lea.vmem %s3601_s13, %s2505_s22 }
  0x2b   : > { %p2506_p7 = scmp.ne.s32.totalorder %s3602_s23, 0 }
  0x2d   : > { %785 = sbr.rel (%p2506_p7) target bundleno = 53 (0x35), region = 96 }
  0x32   : > { %v786_v0 = vld [vmem:[%s731_s17] sm:$0xff]  ;;  %vm789_vm0 = vcmask 523264   ;;  %v787_v1 = vld [vmem:[%s731_s17 + $0x8] sm:$0xff]  ;;  %v788_v2 = vld [vmem:[%s731_s17 + $0x10] sm:$0xff] }
  0x33   : > { %790 = vst.msk [vmem:[#allocation2] sm:$0xff] %vm789_vm0, %v786_v0  ;;  %791 = vst.msk [vmem:[#allocation2 + $0x8] sm:$0xff] %vm789_vm0, %v787_v1 }
  0x34   : > { %792 = vst.msk [vmem:[#allocation2 + $0x10] sm:$0xff] %vm789_vm0, %v788_v2 }
  0x35 PF: > { %vm798_vm1 = vcmask 523264   ;;  %v2847_v24 = vld [vmem:[%s3149_s27 + $0x34] ss:$8 sps:$4 sm:$0xff]   ;;  %v2849_v25 = vld [vmem:[%s3149_s27 + $0x30] ss:$8 sps:$4 sm:$0xff]   ;;  %v2993_v28 = vmov 0   ;;  %s3605_s13 = scalar_lea.vmem %s3552_s3, %s3132_s20  ;;  %v869_v58 = vlaneseq  ;;  %s3607_s22 = scalar_lea.vmem %s3556_s7, %s3132_s20 }
  0x36   : > { %v2850_v26 = vld [vmem:[%s3149_s27 + $0x24] ss:$8 sps:$4 sm:$0xff]   ;;  %933 = vmatprep.subr.bf16.mxu1 %v2847_v24  ;;  %v2852_v27 = vld [vmem:[%s3149_s27 + $0x20] ss:$8 sps:$4 sm:$0xff]   ;;  %957 = vmatprep.mubr.bf16.mxu1 %v2993_v28  ;;  %v2853_v29 = vld [vmem:[%s3149_s27 + $0x14] ss:$8 sps:$4 sm:$0xff]  }
  0x37   : > { %934 = vmatpush1.bf16.msra.mxu1 %v2849_v25  ;;  %v2855_v30 = vld [vmem:[%s3149_s27 + $0x10] ss:$8 sps:$4 sm:$0xff]   ;;  %v2856_v31 = vld [vmem:[%s3149_s27 + $0x4] ss:$8 sps:$4 sm:$0xff]   ;;  %v2858_v32 = vld [vmem:[%s3149_s27] ss:$8 sps:$4 sm:$0xff]  }
  0x38   : > { %935 = vmatprep.subr.bf16.mxu1 %v2850_v26  ;;  %s3603_s17 = sld [smem:[#allocation11_spill]]  ;;  %v2508_v49 = vld [vmem:[%s3605_s13] ss:$0 sm:$0xff]  ;;  %v3225_v59 = vshrl.u32 %v869_v58, 7  ;;  %vm989_vm2 = vcmask 130048   ;;  %s2995_s18 = smov 64  }
  0x39   : > { %v867_v61 = vld [vmem:[%s3155_s2] sm:$0x3]  ;;  %s2994_s2 = smov 48   ;;  %s2996_s28 = smov 112   ;;  %vm1098_vm3 = vcmask 1043456   ;;  %vm1056_vm4 = vcmask 195584  }
  0x3a   : > { %v793_v3 = vld [vmem:[#allocation2] sm:$0xff]  ;;  %v794_v5 = vld [vmem:[#allocation2 + $0x8] sm:$0xff]  ;;  %v871_v60 = vsub.s32 0, %v3225_v59  ;;  %v875_v62 = vsub.s32 1, %v3225_v59  ;;  %s2997_s24 = smov 96   ;;  %s2998_s1 = smov 32  }
  0x3b   : > { %v795_v4 = vld [vmem:[#allocation2 + $0x10] sm:$0xff]  ;;  %v799_v6 = vsel %vm798_vm1, %v793_v3, 0.0  ;;  %v802_v8 = vsel %vm798_vm1, %v794_v5, 0.0  ;;  %936 = vmatpush1.bf16.msra.mxu1 %v2852_v27  ;;  %s3606_s14 = sld [smem:[#allocation10_spill]]  ;;  %s2999_s15 = smov 16   ;;  %vm1704_vm5 = vcmask 261120  }
  0x3c   : > { %v805_v7 = vsel %vm798_vm1, %v795_v4, 0.0  ;;  %800 = vadd.xlane.f32.xlu0 %v799_v6  ;;  %937 = vmatprep.subr.bf16.mxu1 %v2853_v29  ;;  %v872_v0 = vrot.slane %v867_v61, %v871_v60  ;;  %v876_v2 = vrot.slane %v867_v61, %v875_v62  ;;  %vm1708_vm6 = vcmask 392192   ;;  %s3608_s13 = scalar_lea.vmem %s3557_s8, %s3132_s20 }
  0x3d   : > { %806 = vadd.xlane.f32.xlu1 %v805_v7 }
  0x3e   : > { %s3604_s27 = scalar_lea.vmem %s3603_s17, %s3132_s20  ;;  %s3000_s17 = smov 80  }
  0x3f   : > { %938 = vmatpush1.bf16.msra.mxu1 %v2855_v30  ;;  %v2507_v44 = vld [vmem:[%s3604_s27] ss:$0 sm:$0xff] }
  0x40   : > { %803 = vadd.xlane.f32.xlu0 %v802_v8  ;;  %939 = vmatprep.subr.bf16.mxu1 %v2856_v31 }
  0x43   : > { %940 = vmatpush1.bf16.msra.mxu1 %v2858_v32 }
  0xc5   : > { %v801_v9 = vpop.xlane.xlu0 %800 }
  0xc6   : > { %v807_v10 = vpop.xlane.xlu1 %806  ;;  %v809_v11 = vmul.f32 0.015625, %v801_v9 }
  0xc7   : > { %v811_v12 = vmul.f32 0.015625, %v807_v10 }
  0xc8   : > { %v812_v13 = vsub.f32 %v793_v3, %v809_v11 }
  0xc9   : > { %v814_v14 = vsub.f32 %v795_v4, %v811_v12  ;;  %v804_v15 = vpop.xlane.xlu0 %803 }
  0xca   : > { %v810_v16 = vmul.f32 0.015625, %v804_v15  ;;  %v815_v17 = vmul.f32 %v812_v13, %v812_v13 }
  0xcb   : > { %v817_v18 = vmul.f32 %v814_v14, %v814_v14 }
  0xcc   : > { %v813_v19 = vsub.f32 %v794_v5, %v810_v16  ;;  %v818_v20 = vsel %vm798_vm1, %v815_v17, 0.0 }
  0xcd   : > { %819 = vadd.xlane.f32.xlu1 %v818_v20  ;;  %v824_v21 = vsel %vm798_vm1, %v817_v18, 0.0 }
  0xce   : > { %v816_v22 = vmul.f32 %v813_v19, %v813_v19 }
  0xd0   : > { %v821_v23 = vsel %vm798_vm1, %v816_v22, 0.0 }
  0xd1   : > { %825 = vadd.xlane.f32.xlu1 %v824_v21  ;;  %822 = vadd.xlane.f32.xlu0 %v821_v23 }
 0x156   : > { %v820_v33 = vpop.xlane.xlu1 %819 }
 0x157   : > { %v827_v34 = vmul.f32 0.015625, %v820_v33 }
 0x159   : > { %v830_v35 = vadd.f32 1e-05, %v827_v34 }
 0x15a   : > { %v826_v36 = vpop.xlane.xlu1 %825  ;;  %v823_v37 = vpop.xlane.xlu0 %822 }
 0x15b   : > { %2875 = vrsqrt.f32 %v830_v35  ;;  %v829_v38 = vmul.f32 0.015625, %v826_v36  ;;  %v828_v39 = vmul.f32 0.015625, %v823_v37 }
 0x15d   : > { %v832_v40 = vadd.f32 1e-05, %v829_v38  ;;  %v831_v41 = vadd.f32 1e-05, %v828_v39 }
 0x15f   : > { %2877 = vrsqrt.f32 %v832_v40  ;;  %v3287_v40 = vld [vmem:[%s3606_s14] sm:$0xff] }
 0x160   : > { %2879 = vrsqrt.f32 %v831_v41 }
 0x168   : > { %v2876_v42 = vpop.eup %2875 }
 0x169   : > { %v836_v43 = vmul.f32 %v2876_v42, %v812_v13 }
 0x16b   : > { %v845_v48 = vmul.f32 %v2507_v44, %v836_v43 }
 0x16c   : > { %v2878_v45 = vpop.eup %2877 }
 0x16d   : > { %v2880_v46 = vpop.eup %2879  ;;  %v838_v51 = vmul.f32 %v2878_v45, %v814_v14  ;;  %v854_v52 = vadd.f32 %v2508_v49, %v845_v48  ;;  %v3292_v45 = vld [vmem:[%s3606_s14 + $0x10] sm:$0xff] }
 0x16e   : > { %v837_v47 = vmul.f32 %v2880_v46, %v813_v19 }
 0x16f   : > { %v847_v55 = vmul.f32 %v2507_v44, %v838_v51 }
 0x170   : > { %v846_v50 = vmul.f32 %v2507_v44, %v837_v47 }
 0x171   : > { %v856_v56 = vadd.f32 %v2508_v49, %v847_v55 }
 0x172   : > { %v855_v53 = vadd.f32 %v2508_v49, %v846_v50  ;;  %v3298_v49 = vld [vmem:[%s3606_s14 + $0x8] sm:$0xff] }
 0x173   : > { %v858_v57 = vpack.c.bf16 %v856_v56, %v856_v56 }
 0x174   : > { %v857_v54 = vpack.c.bf16 %v855_v53, %v854_v52 }
 0x176   : > { %2517 = vmatmul.mubr.msk.bf16.vlgmr.msra.gmra.mxu1 %vm798_vm1, %v857_v54 }
 0x177   : > { %967 = vmatprep.mubr.bf16.mxu1 %v2993_v28 }
 0x17e   : > { %2518 = vmatmul.mubr.msk.bf16.gmra.mxu1 %vm798_vm1, %v858_v57 }
 0x236   : > { %v959_v63 = vpop.f32.mrf.mxu1 }
 0x237   : > { %v960_v4 = vadd.f32 %v959_v63, %v872_v0 }
 0x238   : > { %v961_v1 = vpop.f32.mrf.mxu1 }
 0x239   : > { %v962_v7 = vadd.f32 %v961_v1, %v876_v2 }
 0x23a   : > { %v963_v3 = vpop.f32.mrf.mxu1 }
 0x23b   : > { %v964_v5 = vadd.f32 %v963_v3, %v872_v0 }
 0x23c   : > { %v965_v6 = vpop.f32.mrf.mxu1 }
 0x23d   : > { %v3232_v8 = vpack.c.bf16 %v964_v5, %v960_v4  ;;  %v966_v9 = vadd.f32 %v965_v6, %v876_v2 }
 0x23e   : > { %v969_v10 = vpop.f32.mrf.mxu1 }
 0x23f   : > { %v3234_v11 = vpack.c.bf16 %v966_v9, %v962_v7  ;;  %v970_v12 = vadd.f32 %v969_v10, %v872_v0  ;;  %2643 = vmatprep.mubr.msk.bf16.mxu1 %vm989_vm2, %v3232_v8 }
 0x240   : > { %v971_v13 = vpop.f32.mrf.mxu1 }
 0x241   : > { %v3238_v14 = vpack.c.bf16 %v970_v12, %v970_v12  ;;  %v972_v23 = vadd.f32 %v971_v13, %v876_v2 }
 0x242   : > { %v973_v15 = vpop.f32.mrf.mxu1 }
 0x243   : > { %1156 = vrot.lane.b32.xlu1 %v3238_v14, %s2994_s2  ;;  %987 = vrot.lane.b32.xlu0 %v3238_v14, %s2995_s18  ;;  %v3264_v25 = vpack.c.bf16 %v972_v23, %v972_v23 }
 0x244   : > { %v974_v16 = vpop.f32.mrf.mxu1 }
 0x245   : > { %v1100_v31 = vsel %vm1098_vm3, %v3264_v25, 0 }
 0x247   : > { %1150 = vrot.lane.b32.xlu0 %v3232_v8, %s2996_s28  ;;  %985 = vrot.lane.b32.xlu1 %v3232_v8, %s2995_s18 }
 0x24b   : > { %1152 = vrot.lane.b32.xlu0 %v3238_v14, %s2996_s28  ;;  %1154 = vrot.lane.b32.xlu1 %v3232_v8, %s2994_s2 }
 0x24f   : > { %1323 = vrot.lane.b32.xlu0 %v3232_v8, %s2997_s24  ;;  %1329 = vrot.lane.b32.xlu1 %v3238_v14, %s2998_s1 }
 0x253   : > { %1327 = vrot.lane.b32.xlu1 %v3232_v8, %s2998_s1 }
 0x257   : > { %1325 = vrot.lane.b32.xlu1 %v3238_v14, %s2997_s24 }
 0x2b5   : > { %v1157_v17 = vpop.permute.xlu1 %1156  ;;  %v988_v18 = vpop.permute.xlu0 %987 }
 0x2b6   : > { %v1000_v19 = vsel %vm989_vm2, %v988_v18, 0  ;;  %2769 = vmatprep.subr.msk.bf16.mxu1 %vm989_vm2, %v988_v18  ;;  %2772 = vmatprep.subr.msk.bf16.mxu0 %vm989_vm2, %v1157_v17  ;;  %v1168_v20 = vsel %vm989_vm2, %v1157_v17, 0 }
 0x2b7   : > { %2640 = vmatpush3.bf16.xpose.msra.mxu1 %v1000_v19  ;;  %2656 = vmatpush3.bf16.xpose.msra.mxu0 %v1168_v20 }
 0x2b9   : > { %v1151_v21 = vpop.permute.xlu0 %1150  ;;  %v986_v22 = vpop.permute.xlu1 %985 }
 0x2ba   : > { %2770 = vmatprep.subr.msk.bf16.mxu1 %vm989_vm2, %v986_v22  ;;  %2659 = vmatprep.mubr.msk.bf16.mxu0 %vm989_vm2, %v1151_v21  ;;  %v997_v26 = vsel %vm989_vm2, %v986_v22, 0 }
 0x2bd   : > { %v1155_v24 = vpop.permute.xlu1 %1154  ;;  %v1153_v28 = vpop.permute.xlu0 %1152 }
 0x2be   : > { %2773 = vmatprep.subr.msk.bf16.mxu0 %vm989_vm2, %v1155_v24  ;;  %v1165_v27 = vsel %vm989_vm2, %v1155_v24, 0 }
 0x2bf   : > { %2642 = vmatpush3.bf16.xpose.msra.mxu1 %v997_v26  ;;  %2658 = vmatpush3.bf16.xpose.msra.mxu0 %v1165_v27 }
 0x2c0   : > { %2771 = vmatprep.subr.msk.bf16.mxu1 %vm1098_vm3, %v3264_v25 }
 0x2c1   : > { %v1330_v29 = vpop.permute.xlu1 %1329  ;;  %v1324_v32 = vpop.permute.xlu0 %1323 }
 0x2c2   : > { %2775 = vmatprep.subr.msk.bf16.mxu0 %vm989_vm2, %v1330_v29  ;;  %v1341_v30 = vsel %vm989_vm2, %v1330_v29, 0 }
 0x2c5   : > { %v1328_v33 = vpop.permute.xlu1 %1327 }
 0x2c6   : > { %2644 = vmatmul.mubr.msk.bf16.vlgmr.msra.gmra.mxu1 %vm989_vm2, %v3238_v14  ;;  %2660 = vmatmul.mubr.msk.bf16.vlgmr.msra.gmra.mxu0 %vm989_vm2, %v1153_v28  ;;  %v1338_v34 = vsel %vm989_vm2, %v1328_v33, 0 }
 0x2c7   : > { %2648 = vmatpush3.bf16.msra.mxu1 %v1100_v31  ;;  %2672 = vmatpush3.bf16.xpose.msra.mxu0 %v1341_v30 }
 0x2c8   : > { %2675 = vmatprep.mubr.msk.bf16.mxu0 %vm989_vm2, %v1324_v32  ;;  %2649 = vmatprep.subr.bf16.mxu1 %v3234_v11 }
 0x2c9   : > { %2776 = vmatprep.subr.msk.bf16.mxu0 %vm989_vm2, %v1328_v33  ;;  %v1326_v35 = vpop.permute.xlu1 %1325 }
 0x2cb   : > { %2650 = vmatpush3.bf16.msra.mxu1 %v3234_v11 }
 0x2cf   : > { %2674 = vmatpush3.bf16.xpose.msra.mxu0 %v1338_v34 }
 0x2d6   : > { %2676 = vmatmul.mubr.msk.bf16.vlgmr.msra.gmra.mxu0 %vm989_vm2, %v1326_v35 }
 0x386   : > { %v2645_v36 = vpop.f32.mrf.mxu1  ;;  %v2661_v37 = vpop.f32.mrf.mxu0 }
 0x387   : > { %v1052_v41 = vmul.f32 0.25, %v2645_v36  ;;  %v1220_v47 = vmul.f32 0.25, %v2661_v37 }
 0x388   : > { %v1036_v38 = vpop.f32.mrf.mxu1  ;;  %v1204_v39 = vpop.f32.mrf.mxu0 }
 0x389   : > { %v1050_v42 = vmul.f32 0.25, %v1036_v38  ;;  %v1218_v50 = vmul.f32 0.25, %v1204_v39  ;;  %v1055_v53 = vadd.f32 %v1052_v41, %v3292_v45  ;;  %v1223_v56 = vadd.f32 %v1220_v47, %v3292_v45 }
 0x38a   : > { %v2646_v43 = vpop.f32.mrf.mxu1  ;;  %v2662_v44 = vpop.f32.mrf.mxu0 }
 0x38b   : > { %v1053_v46 = vadd.f32 %v1050_v42, %v3287_v40  ;;  %v1063_v58 = vsel %vm1056_vm4, %v1055_v53, -inf  ;;  %v1221_v62 = vadd.f32 %v1218_v50, %v3287_v40  ;;  %v1230_v0 = vsel %vm1056_vm4, %v1223_v56, -inf }
 0x38c   : > { %v1039_v48 = vpop.f32.mrf.mxu1  ;;  %v1207_v54 = vpop.f32.mrf.mxu0 }
 0x38d   : > { %v1051_v51 = vmul.f32 0.25, %v1039_v48  ;;  %v1057_v52 = vsel %vm1056_vm4, %v1053_v46, -inf  ;;  %v1219_v57 = vmul.f32 0.25, %v1207_v54  ;;  %v1224_v63 = vsel %vm1056_vm4, %v1221_v62, -inf }
 0x38e   : > { %1058 = vmax.xlane.f32.xlu0 %v1057_v52 }
 0x38f   : > { %v1054_v55 = vadd.f32 %v1051_v51, %v3298_v49  ;;  %v3310_v1 = vadd.f32 %v1219_v57, %v3298_v49 }
 0x391   : > { %v1060_v61 = vsel %vm1056_vm4, %v1054_v55, -inf  ;;  %v1227_v6 = vsel %vm1056_vm4, %v3310_v1, -inf }
 0x392   : > { %1064 = vmax.xlane.f32.xlu0 %v1063_v58  ;;  %1061 = vmax.xlane.f32.xlu1 %v1060_v61 }
 0x396   : > { %v2677_v2 = vpop.f32.mrf.mxu0  ;;  %1225 = vmax.xlane.f32.xlu0 %v1224_v63  ;;  %1231 = vmax.xlane.f32.xlu1 %v1230_v0 }
 0x397   : > { %v1393_v4 = vmul.f32 0.25, %v2677_v2 }
 0x398   : > { %v1377_v3 = vpop.f32.mrf.mxu0 }
 0x399   : > { %v1391_v5 = vmul.f32 0.25, %v1377_v3  ;;  %v1396_v15 = vadd.f32 %v1393_v4, %v3292_v45 }
 0x39a   : > { %v2678_v7 = vpop.f32.mrf.mxu0  ;;  %1228 = vmax.xlane.f32.xlu0 %v1227_v6 }
 0x39b   : > { %v1394_v9 = vadd.f32 %v1391_v5, %v3287_v40  ;;  %v1403_v17 = vsel %vm1056_vm4, %v1396_v15, -inf }
 0x39c   : > { %v1380_v10 = vpop.f32.mrf.mxu0 }
 0x39d   : > { %v1392_v12 = vmul.f32 0.25, %v1380_v10  ;;  %v1397_v13 = vsel %vm1056_vm4, %v1394_v9, -inf }
 0x39e   : > { %1398 = vmax.xlane.f32.xlu0 %v1397_v13 }
 0x39f   : > { %v1395_v16 = vadd.f32 %v1392_v12, %v3298_v49 }
 0x3a1   : > { %v1400_v18 = vsel %vm1056_vm4, %v1395_v16, -inf }
 0x3a2   : > { %1404 = vmax.xlane.f32.xlu0 %v1403_v17  ;;  %1401 = vmax.xlane.f32.xlu1 %v1400_v18 }
 0x417   : > { %v1059_v19 = vpop.xlane.xlu0 %1058 }
 0x418   : > { %v1066_v20 = vsub.f32 %v1053_v46, %v1059_v19 }
 0x41a   : > { %v1069_v24 = vmul.f32 1.442695, %v1066_v20 }
 0x41b   : > { %v1065_v21 = vpop.xlane.xlu0 %1064  ;;  %v1062_v22 = vpop.xlane.xlu1 %1061 }
 0x41c   : > { %v1068_v23 = vsub.f32 %v1055_v53, %v1065_v21  ;;  %v1067_v32 = vsub.f32 %v1054_v55, %v1062_v22 }
 0x41e   : > { %v1073_v26 = vmul.f32 1.442695, %v1068_v23  ;;  %v1071_v34 = vmul.f32 1.442695, %v1067_v32 }
 0x41f   : > { %v1226_v27 = vpop.xlane.xlu0 %1225  ;;  %v1232_v28 = vpop.xlane.xlu1 %1231 }
 0x420   : > { %2881 = vpow2.f32 %v1073_v26  ;;  %v1233_v29 = vsub.f32 %v1221_v62, %v1226_v27  ;;  %v1235_v30 = vsub.f32 %v1223_v56, %v1232_v28 }
 0x421   : > { %2883 = vpow2.f32 %v1069_v24 }
 0x422   : > { %v1240_v31 = vmul.f32 1.442695, %v1235_v30  ;;  %v1236_v33 = vmul.f32 1.442695, %v1233_v29 }
 0x423   : > { %v1229_v47 = vpop.xlane.xlu0 %1228 }
 0x424   : > { %2885 = vpow2.f32 %v1240_v31  ;;  %v1234_v50 = vsub.f32 %v3310_v1, %v1229_v47 }
 0x425   : > { %2887 = vpow2.f32 %v1236_v33 }
 0x426   : > { %2889 = vpow2.f32 %v1071_v34  ;;  %v1238_v53 = vmul.f32 1.442695, %v1234_v50 }
 0x427   : > { %v1399_v48 = vpop.xlane.xlu0 %1398 }
 0x428   : > { %2891 = vpow2.f32 %v1238_v53  ;;  %v1406_v56 = vsub.f32 %v1394_v9, %v1399_v48 }
 0x42a   : > { %v1409_v61 = vmul.f32 1.442695, %v1406_v56 }
 0x42b   : > { %v1405_v51 = vpop.xlane.xlu0 %1404  ;;  %v1402_v52 = vpop.xlane.xlu1 %1401 }
 0x42c   : > { %v1408_v54 = vsub.f32 %v1396_v15, %v1405_v51  ;;  %v1407_v55 = vsub.f32 %v1395_v16, %v1402_v52 }
 0x42d   : > { %v3320_v35 = vpop.eup %2881 }
 0x42e   : > { %v1081_v36 = vsel %vm1056_vm4, %v3320_v35, 0.0  ;;  %v3324_v37 = vpop.eup %2883  ;;  %v1413_v57 = vmul.f32 1.442695, %v1408_v54  ;;  %v1411_v58 = vmul.f32 1.442695, %v1407_v55 }
 0x42f   : > { %1082 = vadd.xlane.f32.xlu1 %v1081_v36  ;;  %v1075_v39 = vsel %vm1056_vm4, %v3324_v37, 0.0 }
 0x430   : > { %2893 = vpow2.f32 %v1413_v57 }
 0x431   : > { %v3326_v38 = vpop.eup %2885  ;;  %2895 = vpow2.f32 %v1411_v58 }
 0x432   : > { %v1248_v41 = vsel %vm1056_vm4, %v3326_v38, 0.0  ;;  %v3332_v42 = vpop.eup %2887  ;;  %2897 = vpow2.f32 %v1409_v61 }
 0x433   : > { %1076 = vadd.xlane.f32.xlu1 %v1075_v39  ;;  %1249 = vadd.xlane.f32.xlu0 %v1248_v41  ;;  %v1242_v43 = vsel %vm1056_vm4, %v3332_v42, 0.0  ;;  %v2890_v44 = vpop.eup %2889 }
 0x434   : > { %v1078_v46 = vsel %vm1056_vm4, %v2890_v44, 0.0 }
 0x435   : > { %v2892_v62 = vpop.eup %2891 }
 0x436   : > { %v1245_v63 = vsel %vm1056_vm4, %v2892_v62, 0.0 }
 0x437   : > { %1243 = vadd.xlane.f32.xlu0 %v1242_v43 }
 0x43b   : > { %1079 = vadd.xlane.f32.xlu0 %v1078_v46 }
 0x43d   : > { %v3345_v0 = vpop.eup %2893 }
 0x43e   : > { %v3347_v1 = vpop.eup %2895  ;;  %v1421_v2 = vsel %vm1056_vm4, %v3345_v0, 0.0 }
 0x43f   : > { %v3351_v3 = vpop.eup %2897  ;;  %v1418_v4 = vsel %vm1056_vm4, %v3347_v1, 0.0 }
 0x440   : > { %v1415_v5 = vsel %vm1056_vm4, %v3351_v3, 0.0 }
 0x444   : > { %1261 = vrot.lane.b32.xlu1 %v3234_v11, %s2996_s28 }
 0x448   : > { %1434 = vrot.lane.b32.xlu1 %v3264_v25, %s2997_s24 }
 0x451   : > { %1263 = vrot.lane.b32.xlu0 %v3264_v25, %s2996_s28  ;;  %s3609_s28 = sld [smem:[#allocation15_spill]] }
 0x46c   : > { %1246 = vadd.xlane.f32.xlu1 %v1245_v63 }
 0x470   : > { %1422 = vadd.xlane.f32.xlu1 %v1421_v2  ;;  %1419 = vadd.xlane.f32.xlu0 %v1418_v4 }
 0x474   : > { %1416 = vadd.xlane.f32.xlu1 %v1415_v5 }
 0x485   : > { %1432 = vrot.lane.b32.xlu1 %v3234_v11, %s2997_s24  ;;  %s3610_s24 = scalar_lea.vmem %s3609_s28, %s3132_s20  ;;  %s3612_s20 = sld [smem:[#allocation3_spill]] }
 0x486   : > { %1500 = vrot.lane.b32.xlu0 %v3238_v14, %s2999_s15 }
 0x489   : > { %1498 = vrot.lane.b32.xlu1 %v3232_v8, %s2999_s15 }
 0x48a   : > { %1494 = vrot.lane.b32.xlu0 %v3232_v8, %s3000_s17 }
 0x48b   : > { %p2560_p8 = scmp.ne.s32.totalorder %s3612_s20, 10 }
 0x48c   : > { %s3613_s25 = sld [smem:[#allocation17_spill]] (!%p2560_p8) }
 0x48d   : > { %1496 = vrot.lane.b32.xlu1 %v3238_v14, %s3000_s17  ;;  %s3614_s16 = sld [smem:[#allocation19_spill]] (!%p2560_p8) }
 0x48e   : > { %s3615_s29 = sld [smem:[#allocation18_spill]] (!%p2560_p8) }
 0x48f   : > { %s3616_s21 = sld [smem:[#allocation20_spill]] (!%p2560_p8) }
 0x4b8   : > { %v1083_v6 = vpop.xlane.xlu1 %1082 }
 0x4b9   : > { %2899 = vrcp.f32 %v1083_v6 }
 0x4bc   : > { %v1250_v7 = vpop.xlane.xlu0 %1249  ;;  %v1077_v9 = vpop.xlane.xlu1 %1076 }
 0x4bd   : > { %2901 = vrcp.f32 %v1077_v9 }
 0x4c0   : > { %v1244_v10 = vpop.xlane.xlu0 %1243  ;;  %v1262_v21 = vpop.permute.xlu1 %1261 }
 0x4c4   : > { %v1080_v12 = vpop.xlane.xlu0 %1079  ;;  %v1435_v23 = vpop.permute.xlu1 %1434 }
 0x4c5   : > { %2903 = vrcp.f32 %v1080_v12  ;;  %v1444_v41 = vsel %vm1098_vm3, %v1435_v23, 0 }
 0x4c6   : > { %v2900_v15 = vpop.eup %2899  ;;  %2905 = vrcp.f32 %v1250_v7 }
 0x4c7   : > { %v1089_v18 = vmul.f32 %v2900_v15, %v3320_v35  ;;  %2907 = vrcp.f32 %v1244_v10 }
 0x4c8   : > { %v1264_v13 = vpop.permute.xlu0 %1263 }
 0x4c9   : > { %2774 = vmatprep.subr.msk.bf16.mxu1 %vm1098_vm3, %v1264_v13  ;;  %v1091_v20 = vpack.c.bf16 %v1089_v18, %v1089_v18  ;;  %v1273_v22 = vsel %vm1098_vm3, %v1264_v13, 0 }
 0x4ca   : > { %v2902_v16 = vpop.eup %2901 }
 0x4cb   : > { %v1087_v8 = vmul.f32 %v2902_v16, %v3324_v37 }
 0x4d2   : > { %v2904_v17 = vpop.eup %2903 }
 0x4d3   : > { %v1088_v19 = vmul.f32 %v2904_v17, %v2890_v44  ;;  %v2906_v29 = vpop.eup %2905 }
 0x4d4   : > { %v2908_v30 = vpop.eup %2907  ;;  %v1256_v32 = vmul.f32 %v2906_v29, %v3326_v38 }
 0x4d5   : > { %v1090_v14 = vpack.c.bf16 %v1088_v19, %v1087_v8  ;;  %v1254_v33 = vmul.f32 %v2908_v30, %v3332_v42 }
 0x4d6   : > { %v1258_v36 = vpack.c.bf16 %v1256_v32, %v1256_v32 }
 0x4d7   : > { %2651 = vmatprep.mubr.msk.bf16.mxu1 %vm1056_vm4, %v1090_v14 }
 0x4d8   : > { %2652 = vmatmul.mubr.msk.bf16.vlgmr.msra.gmra.mxu1 %vm1056_vm4, %v1091_v20 }
 0x4d9   : > { %2664 = vmatpush3.bf16.msra.mxu1 %v1273_v22 }
 0x4da   : > { %2665 = vmatprep.subr.bf16.mxu1 %v1262_v21 }
 0x4dd   : > { %2666 = vmatpush3.bf16.msra.mxu1 %v1262_v21 }
 0x4de   : > { %2777 = vmatprep.subr.msk.bf16.mxu1 %vm1098_vm3, %v1435_v23 }
 0x4f5   : > { %v1247_v24 = vpop.xlane.xlu1 %1246 }
 0x4f6   : > { %2909 = vrcp.f32 %v1247_v24 }
 0x4f9   : > { %v1423_v26 = vpop.xlane.xlu1 %1422  ;;  %v1420_v27 = vpop.xlane.xlu0 %1419 }
 0x4fa   : > { %2911 = vrcp.f32 %v1423_v26 }
 0x4fb   : > { %2913 = vrcp.f32 %v1420_v27 }
 0x4fd   : > { %v1417_v28 = vpop.xlane.xlu1 %1416  ;;  %v1501_v46 = vpop.permute.xlu0 %1500 }
 0x4fe   : > { %2915 = vrcp.f32 %v1417_v28  ;;  %v1512_v51 = vsel %vm989_vm2, %v1501_v46, 0 }
 0x501   : > { %v1433_v43 = vpop.permute.xlu1 %1432  ;;  %v1495_v52 = vpop.permute.xlu0 %1494 }
 0x503   : > { %v2910_v31 = vpop.eup %2909 }
 0x504   : > { %v1255_v34 = vmul.f32 %v2910_v31, %v2892_v62 }
 0x505   : > { %v1499_v53 = vpop.permute.xlu1 %1498 }
 0x506   : > { %v1257_v35 = vpack.c.bf16 %v1255_v34, %v1254_v33  ;;  %v1509_v54 = vsel %vm989_vm2, %v1499_v53, 0 }
 0x507   : > { %v2912_v37 = vpop.eup %2911 }
 0x508   : > { %2667 = vmatprep.mubr.msk.bf16.mxu1 %vm1056_vm4, %v1257_v35  ;;  %v2914_v39 = vpop.eup %2913  ;;  %v1429_v38 = vmul.f32 %v2912_v37, %v3345_v0 }
 0x509   : > { %2668 = vmatmul.mubr.msk.bf16.vlgmr.msra.gmra.mxu1 %vm1056_vm4, %v1258_v36  ;;  %v1428_v47 = vmul.f32 %v2914_v39, %v3347_v1  ;;  %v1497_v55 = vpop.permute.xlu1 %1496 }
 0x50a   : > { %2680 = vmatpush3.bf16.msra.mxu1 %v1444_v41  ;;  %v1431_v50 = vpack.c.bf16 %v1429_v38, %v1429_v38 }
 0x50b   : > { %v2916_v44 = vpop.eup %2915  ;;  %2681 = vmatprep.subr.bf16.mxu1 %v1433_v43 }
 0x50c   : > { %v1427_v42 = vmul.f32 %v2916_v44, %v3351_v3 }
 0x50e   : > { %2682 = vmatpush3.bf16.msra.mxu1 %v1433_v43  ;;  %v1430_v48 = vpack.c.bf16 %v1428_v47, %v1427_v42 }
 0x50f   : > { %2778 = vmatprep.subr.msk.bf16.mxu1 %vm989_vm2, %v1501_v46 }
 0x510   : > { %2683 = vmatprep.mubr.msk.bf16.mxu1 %vm1056_vm4, %v1430_v48 }
 0x511   : > { %2684 = vmatmul.mubr.msk.bf16.vlgmr.msra.gmra.mxu1 %vm1056_vm4, %v1431_v50  ;;  %v2859_v50 = vld [vmem:[%s3161_s26 + $0x18] sm:$0xff]  }
 0x512   : > { %2688 = vmatpush3.bf16.xpose.msra.mxu1 %v1512_v51  ;;  %2691 = vmatprep.mubr.msk.bf16.mxu1 %vm989_vm2, %v1495_v52  ;;  %v2860_v51 = vld [vmem:[%s3161_s26 + $0x10] sm:$0xff]   ;;  %v2861_v52 = vld [vmem:[%s3161_s26 + $0x8] sm:$0xff]  }
 0x513   : > { %2779 = vmatprep.subr.msk.bf16.mxu1 %vm989_vm2, %v1499_v53  ;;  %v2862_v53 = vld [vmem:[%s3161_s26] sm:$0xff]  }
 0x51a   : > { %2690 = vmatpush3.bf16.xpose.msra.mxu1 %v1509_v54 }
 0x521   : > { %2692 = vmatmul.mubr.msk.bf16.vlgmr.msra.gmra.mxu1 %vm989_vm2, %v1497_v55 }
 0x598   : > { %v3390_v56 = vpop.f32.mrf.mxu1 }
 0x59a   : > { %v3392_v57 = vpop.f32.mrf.mxu1 }
 0x59c   : > { %v2654_v58 = vpop.f32.mrf.mxu1 }
 0x59e   : > { %v3394_v61 = vpop.f32.mrf.mxu1 }
 0x5c9   : > { %v2669_v62 = vpop.f32.mrf.mxu1 }
 0x5cb   : > { %v1309_v63 = vpop.f32.mrf.mxu1 }
 0x5cd   : > { %v2670_v0 = vpop.f32.mrf.mxu1 }
 0x5cf   : > { %v1312_v1 = vpop.f32.mrf.mxu1 }
 0x5d0   : > { %v2832_v2 = vpack.i.bf16 %v1312_v1, %v1309_v63 }
 0x5d1   : > { %v2685_v3 = vpop.f32.mrf.mxu1 }
 0x5d3   : > { %v1480_v4 = vpop.f32.mrf.mxu1 }
 0x5d5   : > { %v2686_v5 = vpop.f32.mrf.mxu1 }
 0x5d7   : > { %v1483_v6 = vpop.f32.mrf.mxu1 }
 0x5d8   : > { %v2837_v7 = vpack.i.bf16 %v1483_v6, %v1480_v4 }
 0x5e1   : > { %v2693_v9 = vpop.f32.mrf.mxu1 }
 0x5e2   : > { %v1564_v12 = vmul.f32 0.25, %v2693_v9 }
 0x5e3   : > { %v1548_v10 = vpop.f32.mrf.mxu1 }
 0x5e4   : > { %v1562_v13 = vmul.f32 0.25, %v1548_v10  ;;  %v1567_v19 = vadd.f32 %v1564_v12, %v3292_v45 }
 0x5e5   : > { %v2694_v15 = vpop.f32.mrf.mxu1 }
 0x5e6   : > { %v1565_v16 = vadd.f32 %v1562_v13, %v3287_v40  ;;  %v1574_v20 = vsel %vm1056_vm4, %v1567_v19, -inf }
 0x5e7   : > { %v1551_v17 = vpop.f32.mrf.mxu1 }
 0x5e8   : > { %v1563_v18 = vmul.f32 0.25, %v1551_v17  ;;  %v1568_v8 = vsel %vm1056_vm4, %v1565_v16, -inf }
 0x5e9   : > { %1569 = vmax.xlane.f32.xlu0 %v1568_v8 }
 0x5ea   : > { %v1566_v14 = vadd.f32 %v1563_v18, %v3298_v49 }
 0x5ec   : > { %v1571_v21 = vsel %vm1056_vm4, %v1566_v14, -inf }
 0x5ed   : > { %1575 = vmax.xlane.f32.xlu0 %v1574_v20  ;;  %1572 = vmax.xlane.f32.xlu1 %v1571_v21 }
 0x672   : > { %v1570_v22 = vpop.xlane.xlu0 %1569 }
 0x673   : > { %v1577_v23 = vsub.f32 %v1565_v16, %v1570_v22 }
 0x675   : > { %v1580_v24 = vmul.f32 1.442695, %v1577_v23  ;;  %v2941_v23 = vld [vmem:[#allocation2 + $0x10] sm:$0xff] }
 0x676   : > { %v1576_v26 = vpop.xlane.xlu0 %1575  ;;  %v1573_v40 = vpop.xlane.xlu1 %1572 }
 0x677   : > { %2917 = vpow2.f32 %v1580_v24  ;;  %v1579_v27 = vsub.f32 %v1567_v19, %v1576_v26  ;;  %v1578_v28 = vsub.f32 %v1566_v14, %v1573_v40  ;;  %v2942_v26 = vld [vmem:[#allocation2] sm:$0xff] }
 0x679   : > { %v1584_v29 = vmul.f32 1.442695, %v1579_v27  ;;  %v1582_v30 = vmul.f32 1.442695, %v1578_v28  ;;  %v2541_v27 = vld [vmem:[%s3607_s22] ss:$0 sm:$0xff] }
 0x67b   : > { %2919 = vpow2.f32 %v1584_v29 }
 0x67c   : > { %2921 = vpow2.f32 %v1582_v30 }
 0x684   : > { %v2918_v45 = vpop.eup %2917 }
 0x685   : > { %v1586_v49 = vsel %vm1056_vm4, %v2918_v45, 0.0 }
 0x686   : > { %1587 = vadd.xlane.f32.xlu0 %v1586_v49  ;;  %v2943_v49 = vld [vmem:[#allocation2 + $0x8] sm:$0xff] }
 0x688   : > { %v2920_v31 = vpop.eup %2919 }
 0x689   : > { %v2922_v32 = vpop.eup %2921  ;;  %v1592_v33 = vsel %vm1056_vm4, %v2920_v31, 0.0 }
 0x68a   : > { %1593 = vadd.xlane.f32.xlu1 %v1592_v33  ;;  %v1589_v34 = vsel %vm1056_vm4, %v2922_v32, 0.0 }
 0x68b   : > { %1590 = vadd.xlane.f32.xlu0 %v1589_v34 }
 0x69b   : > { %1603 = vrot.lane.b32.xlu1 %v3234_v11, %s3000_s17 }
 0x69f   : > { %2833 = vrot.lane.b32.xlu1 %v2832_v2, %s2999_s15 }
 0x6a1   : > { %1605 = vrot.lane.b32.xlu0 %v3264_v25, %s3000_s17 }
 0x6a3   : > { %1672 = vrot.lane.b32.xlu1 %v2669_v62, %s2999_s15 }
 0x6a5   : > { %2838 = vrot.lane.b32.xlu0 %v2837_v7, %s2998_s1 }
 0x6a7   : > { %1684 = vrot.lane.b32.xlu1 %v2685_v3, %s2998_s1 }
 0x70f   : > { %v1588_v35 = vpop.xlane.xlu0 %1587 }
 0x710   : > { %2923 = vrcp.f32 %v1588_v35 }
 0x713   : > { %v1594_v36 = vpop.xlane.xlu1 %1593 }
 0x714   : > { %v1591_v37 = vpop.xlane.xlu0 %1590  ;;  %2925 = vrcp.f32 %v1594_v36 }
 0x715   : > { %2927 = vrcp.f32 %v1591_v37 }
 0x717   : > { %v1604_v41 = vpop.permute.xlu1 %1603 }
 0x718   : > { %v1606_v39 = vpop.permute.xlu0 %1605 }
 0x719   : > { %v1615_v11 = vsel %vm1098_vm3, %v1606_v39, 0  ;;  %2780 = vmatprep.subr.msk.bf16.mxu0 %vm1098_vm3, %v1606_v39 }
 0x71a   : > { %2696 = vmatpush3.bf16.msra.mxu0 %v1615_v11 }
 0x71b   : > { %2697 = vmatprep.subr.bf16.mxu0 %v1604_v41  ;;  %v2834_v0 = vpop.permute.xlu1 %2833 }
 0x71c   : > { %v2839_v2 = vpop.permute.xlu0 %2838  ;;  %v2836_v3 = vunpack.i.h.bf16 %v2834_v0  ;;  %v2835_v4 = vunpack.i.l.bf16 %v2834_v0 }
 0x71d   : > { %v2924_v25 = vpop.eup %2923  ;;  %v2841_v6 = vunpack.i.h.bf16 %v2839_v2  ;;  %v2840_v7 = vunpack.i.l.bf16 %v2839_v2 }
 0x71e   : > { %2698 = vmatpush3.bf16.msra.mxu0 %v1604_v41  ;;  %v1598_v38 = vmul.f32 %v2924_v25, %v2918_v45  ;;  %v1702_v9 = vsel %vm989_vm2, %v3394_v61, %v2836_v3  ;;  %v1701_v10 = vsel %vm989_vm2, %v3392_v57, %v2835_v4 }
 0x71f   : > { %2703 = vmatprep.subr.bf16.mxu0 %v2859_v50  ;;  %v1673_v1 = vpop.permute.xlu1 %1672  ;;  %v1705_v8 = vsel %vm1704_vm5, %v1701_v10, %v2840_v7  ;;  %v1706_v19 = vsel %vm1704_vm5, %v1702_v9, %v2841_v6  ;;  %v2542_v9 = vld [vmem:[%s3608_s13] ss:$0 sm:$0xff] }
 0x720   : > { %v1703_v13 = vsel %vm989_vm2, %v3390_v56, %v1673_v1 }
 0x721   : > { %v2926_v43 = vpop.eup %2925 }
 0x722   : > { %v2928_v44 = vpop.eup %2927  ;;  %v1600_v46 = vmul.f32 %v2926_v43, %v2920_v31 }
 0x723   : > { %v1599_v42 = vmul.f32 %v2928_v44, %v2922_v32  ;;  %v1685_v5 = vpop.permute.xlu1 %1684 }
 0x724   : > { %v1602_v47 = vpack.c.bf16 %v1600_v46, %v1600_v46  ;;  %v1707_v16 = vsel %vm1704_vm5, %v1703_v13, %v1685_v5 }
 0x725   : > { %v1601_v48 = vpack.c.bf16 %v1599_v42, %v1598_v38 }
 0x727   : > { %2699 = vmatprep.mubr.msk.bf16.mxu0 %vm1056_vm4, %v1601_v48 }
 0x728   : > { %2700 = vmatmul.mubr.msk.bf16.vlgmr.msra.gmra.mxu0 %vm1056_vm4, %v1602_v47 }
 0x729   : > { %2704 = vmatpush3.bf16.msra.mxu0 %v2859_v50 }
 0x72a   : > { %2705 = vmatprep.subr.bf16.mxu0 %v2860_v51 }
 0x72d   : > { %2706 = vmatpush3.bf16.msra.mxu0 %v2860_v51 }
 0x72e   : > { %2707 = vmatprep.subr.bf16.mxu0 %v2861_v52 }
 0x731   : > { %2708 = vmatpush3.bf16.msra.mxu0 %v2861_v52  ;;  %v2863_v52 = vld [vmem:[%s3178_s4 + $0x18] sm:$0xff]  }
 0x732   : > { %2709 = vmatprep.subr.bf16.mxu0 %v2862_v53  ;;  %2715 = vmatprep.subr.bf16.mxu1 %v2863_v52 }
 0x733   : > { %2716 = vmatpush3.bf16.msra.mxu1 %v2863_v52 }
 0x735   : > { %2710 = vmatpush3.bf16.msra.mxu0 %v2862_v53  ;;  %v2864_v53 = vld [vmem:[%s3178_s4 + $0x10] sm:$0xff]  }
 0x736   : > { %2717 = vmatprep.subr.bf16.mxu1 %v2864_v53 }
 0x737   : > { %2718 = vmatpush3.bf16.msra.mxu1 %v2864_v53 }
 0x7e8   : > { %v2701_v54 = vpop.f32.mrf.mxu0 }
 0x7e9   : > { %1696 = vrot.lane.b32.xlu1 %v2701_v54, %s2994_s2  ;;  %v2865_v54 = vld [vmem:[%s3178_s4 + $0x8] sm:$0xff]  }
 0x7ea   : > { %v1651_v55 = vpop.f32.mrf.mxu0  ;;  %2719 = vmatprep.subr.bf16.mxu1 %v2865_v54 }
 0x7eb   : > { %2720 = vmatpush3.bf16.msra.mxu1 %v2865_v54 }
 0x7ec   : > { %v2702_v58 = vpop.f32.mrf.mxu0 }
 0x7ee   : > { %v1654_v62 = vpop.f32.mrf.mxu0 }
 0x7ef   : > { %v2842_v63 = vpack.i.bf16 %v1654_v62, %v1651_v55  ;;  %v2866_v55 = vld [vmem:[%s3178_s4] sm:$0xff]  }
 0x7f0   : > { %2721 = vmatprep.subr.bf16.mxu1 %v2866_v55 }
 0x7f1   : > { %2843 = vrot.lane.b32.xlu0 %v2842_v63, %s2994_s2  ;;  %2722 = vmatpush3.bf16.msra.mxu1 %v2866_v55 }
 0x85b   : > { %v1697_v12 = vpop.permute.xlu1 %1696 }
 0x85c   : > { %v1711_v14 = vsel %vm1708_vm6, %v1707_v16, %v1697_v12 }
 0x85d   : > { %v1713_v21 = vpack.c.bf16 %v1711_v14, %v1711_v14 }
 0x863   : > { %v2844_v15 = vpop.permute.xlu0 %2843 }
 0x864   : > { %v2846_v17 = vunpack.i.h.bf16 %v2844_v15  ;;  %v2845_v18 = vunpack.i.l.bf16 %v2844_v15 }
 0x866   : > { %v1709_v61 = vsel %vm1708_vm6, %v1705_v8, %v2845_v18  ;;  %v1710_v20 = vsel %vm1708_vm6, %v1706_v19, %v2846_v17  ;;  %v2543_v17 = vld [vmem:[%s3610_s24] ss:$0 sm:$0xff] }
 0x867   : > { %v1712_v57 = vpack.c.bf16 %v1710_v20, %v1709_v61 }
 0x869   : > { %2711 = vmatprep.mubr.msk.bf16.mxu0 %vm798_vm1, %v1712_v57 }
 0x86a   : > { %2712 = vmatmul.mubr.msk.bf16.vlgmr.msra.gmra.mxu0 %vm798_vm1, %v1713_v21  ;;  %v2867_v21 = vld [vmem:[%s3187_s30 + $0x38] sm:$0xff]  }
 0x86b   : > { %2727 = vmatprep.subr.bf16.mxu0 %v2867_v21 }
 0x86c   : > { %2728 = vmatpush3.bf16.msra.mxu0 %v2867_v21 }
 0x92a   : > { %v2713_v56 = vpop.f32.mrf.mxu0 }
 0x92b   : > { %v1802_v24 = vadd.f32 %v2941_v23, %v2713_v56  ;;  %v2868_v56 = vld [vmem:[%s3187_s30 + $0x30] sm:$0xff]   ;;  %v2870_v23 = vld [vmem:[%s3187_s30 + $0x20] sm:$0xff]  }
 0x92c   : > { %v1786_v22 = vpop.f32.mrf.mxu0  ;;  %2729 = vmatprep.subr.bf16.mxu0 %v2868_v56 }
 0x92d   : > { %v1800_v40 = vadd.f32 %v2942_v26, %v1786_v22  ;;  %v3441_v45 = vadd.f32 %v2541_v27, %v1802_v24  ;;  %v2869_v22 = vld [vmem:[%s3187_s30 + $0x28] sm:$0xff]   ;;  %2730 = vmatpush3.bf16.msra.mxu0 %v2868_v56  ;;  %v2871_v24 = vld [vmem:[%s3187_s30 + $0x18] sm:$0xff]   ;;  %v2872_v26 = vld [vmem:[%s3187_s30 + $0x10] sm:$0xff]  }
 0x92e   : > { %v2714_v28 = vpop.f32.mrf.mxu0  ;;  %2731 = vmatprep.subr.bf16.mxu0 %v2869_v22 }
 0x92f   : > { %v3439_v29 = vadd.f32 %v2541_v27, %v1800_v40  ;;  %v1821_v34 = vsel %vm798_vm1, %v3441_v45, 0.0  ;;  %v2873_v40 = vld [vmem:[%s3187_s30 + $0x8] sm:$0xff]   ;;  %v2544_v28 = vld [vmem:[%s768_s5] ss:$0 sm:$0xff] }
 0x930   : > { %v1789_v30 = vpop.f32.mrf.mxu0 }
 0x931   : > { %v1801_v31 = vadd.f32 %v2943_v49, %v1789_v30  ;;  %v1815_v32 = vsel %vm798_vm1, %v3439_v29, 0.0  ;;  %2732 = vmatpush3.bf16.msra.mxu0 %v2869_v22 }
 0x932   : > { %1816 = vadd.xlane.f32.xlu0 %v1815_v32  ;;  %2733 = vmatprep.subr.bf16.mxu0 %v2870_v23 }
 0x933   : > { %v3445_v33 = vadd.f32 %v2541_v27, %v1801_v31  ;;  %v2874_v27 = vld [vmem:[%s3187_s30] sm:$0xff]  }
 0x935   : > { %v1818_v35 = vsel %vm798_vm1, %v3445_v33, 0.0  ;;  %2734 = vmatpush3.bf16.msra.mxu0 %v2870_v23 }
 0x936   : > { %1822 = vadd.xlane.f32.xlu0 %v1821_v34  ;;  %1819 = vadd.xlane.f32.xlu1 %v1818_v35 }
 0x937   : > { %2735 = vmatprep.subr.bf16.mxu0 %v2871_v24 }
 0x939   : > { %2736 = vmatpush3.bf16.msra.mxu0 %v2871_v24 }
 0x93a   : > { %2737 = vmatprep.subr.bf16.mxu0 %v2872_v26 }
 0x93d   : > { %2738 = vmatpush3.bf16.msra.mxu0 %v2872_v26 }
 0x93e   : > { %2739 = vmatprep.subr.bf16.mxu0 %v2873_v40 }
 0x941   : > { %2740 = vmatpush3.bf16.msra.mxu0 %v2873_v40 }
 0x942   : > { %2741 = vmatprep.subr.bf16.mxu0 %v2874_v27 }
 0x945   : > { %2742 = vmatpush3.bf16.msra.mxu0 %v2874_v27 }
 0x9bb   : > { %v1817_v36 = vpop.xlane.xlu0 %1816 }
 0x9bc   : > { %v1824_v37 = vmul.f32 0.015625, %v1817_v36 }
 0x9be   : > { %v1827_v39 = vsub.f32 %v3439_v29, %v1824_v37 }
 0x9bf   : > { %v1823_v11 = vpop.xlane.xlu0 %1822  ;;  %v1820_v41 = vpop.xlane.xlu1 %1819 }
 0x9c0   : > { %v1826_v25 = vmul.f32 0.015625, %v1823_v11  ;;  %v1825_v43 = vmul.f32 0.015625, %v1820_v41  ;;  %v1830_v44 = vmul.f32 %v1827_v39, %v1827_v39 }
 0x9c2   : > { %v1829_v46 = vsub.f32 %v3441_v45, %v1826_v25  ;;  %v1828_v38 = vsub.f32 %v3445_v33, %v1825_v43  ;;  %v1833_v42 = vsel %vm798_vm1, %v1830_v44, 0.0 }
 0x9c3   : > { %1834 = vadd.xlane.f32.xlu0 %v1833_v42 }
 0x9c4   : > { %v1832_v47 = vmul.f32 %v1829_v46, %v1829_v46  ;;  %v1831_v48 = vmul.f32 %v1828_v38, %v1828_v38 }
 0x9c6   : > { %v1839_v50 = vsel %vm798_vm1, %v1832_v47, 0.0  ;;  %v1836_v51 = vsel %vm798_vm1, %v1831_v48, 0.0 }
 0x9c7   : > { %1840 = vadd.xlane.f32.xlu1 %v1839_v50  ;;  %1837 = vadd.xlane.f32.xlu0 %v1836_v51 }
 0xa4c   : > { %v1835_v58 = vpop.xlane.xlu0 %1834 }
 0xa4d   : > { %v1842_v62 = vmul.f32 0.015625, %v1835_v58 }
 0xa4f   : > { %v1845_v63 = vadd.f32 1e-05, %v1842_v62 }
 0xa50   : > { %v1838_v0 = vpop.xlane.xlu0 %1837  ;;  %v1841_v1 = vpop.xlane.xlu1 %1840 }
 0xa51   : > { %2929 = vrsqrt.f32 %v1845_v63  ;;  %v1843_v2 = vmul.f32 0.015625, %v1838_v0  ;;  %v1844_v3 = vmul.f32 0.015625, %v1841_v1 }
 0xa53   : > { %v1846_v4 = vadd.f32 1e-05, %v1843_v2  ;;  %v1847_v5 = vadd.f32 1e-05, %v1844_v3 }
 0xa55   : > { %2931 = vrsqrt.f32 %v1846_v4 }
 0xa56   : > { %2933 = vrsqrt.f32 %v1847_v5 }
 0xa5e   : > { %v2930_v6 = vpop.eup %2929 }
 0xa5f   : > { %v1851_v7 = vmul.f32 %v2930_v6, %v1827_v39 }
 0xa61   : > { %v1860_v15 = vmul.f32 %v2542_v9, %v1851_v7 }
 0xa62   : > { %v2932_v10 = vpop.eup %2931 }
 0xa63   : > { %v2934_v12 = vpop.eup %2933  ;;  %v1852_v13 = vmul.f32 %v2932_v10, %v1828_v38  ;;  %v1869_v19 = vadd.f32 %v2543_v17, %v1860_v15  ;;  %v2559_v10 = vld [vmem:[%s776_s0] ss:$0 sm:$0xff] }
 0xa64   : > { %v1853_v16 = vmul.f32 %v2934_v12, %v1829_v46 }
 0xa65   : > { %v1861_v18 = vmul.f32 %v2542_v9, %v1852_v13 }
 0xa66   : > { %v1862_v8 = vmul.f32 %v2542_v9, %v1853_v16 }
 0xa67   : > { %v1870_v14 = vadd.f32 %v2543_v17, %v1861_v18 }
 0xa68   : > { %v1871_v61 = vadd.f32 %v2543_v17, %v1862_v8 }
 0xa69   : > { %v1872_v20 = vpack.c.bf16 %v1870_v14, %v1869_v19 }
 0xa6a   : > { %v1873_v57 = vpack.c.bf16 %v1871_v61, %v1871_v61 }
 0xa6b   : > { %2723 = vmatprep.mubr.msk.bf16.mxu1 %vm798_vm1, %v1872_v20 }
 0xa6c   : > { %2724 = vmatmul.mubr.msk.bf16.vlgmr.msra.gmra.mxu1 %vm798_vm1, %v1873_v57 }
 0xb2c   : > { %v2725_v30 = vpop.f32.mrf.mxu1 }
 0xb2d   : > { %v1962_v49 = vadd.f32 %v2725_v30, %v2544_v28 }
 0xb2e   : > { %v1953_v31 = vpop.f32.mrf.mxu1 }
 0xb2f   : > { %v1972_v32 = vmul.f32 0.044715, %v1962_v49  ;;  %v1954_v34 = vadd.f32 %v2544_v28, %v1953_v31  ;;  %v1969_v63 = vmul.f32 0.5, %v1962_v49 }
 0xb30   : > { %v2726_v35 = vpop.f32.mrf.mxu1 }
 0xb31   : > { %v1975_v36 = vmul.f32 %v1972_v32, %v1962_v49  ;;  %v1970_v37 = vmul.f32 0.044715, %v1954_v34  ;;  %v1967_v0 = vmul.f32 0.5, %v1954_v34 }
 0xb32   : > { %v1956_v39 = vpop.f32.mrf.mxu1 }
 0xb33   : > { %v1978_v11 = vmul.f32 %v1975_v36, %v1962_v49  ;;  %v1973_v41 = vmul.f32 %v1970_v37, %v1954_v34  ;;  %v1957_v25 = vadd.f32 %v2544_v28, %v1956_v39 }
 0xb35   : > { %v1981_v43 = vadd.f32 %v1978_v11, %v1962_v49  ;;  %v1976_v44 = vmul.f32 %v1973_v41, %v1954_v34  ;;  %v1971_v46 = vmul.f32 0.044715, %v1957_v25  ;;  %v1968_v1 = vmul.f32 0.5, %v1957_v25 }
 0xb37   : > { %v1984_v38 = vmul.f32 0.7978846, %v1981_v43  ;;  %v1974_v42 = vmul.f32 %v1971_v46, %v1957_v25  ;;  %v1979_v47 = vadd.f32 %v1976_v44, %v1954_v34 }
 0xb39   : > { %v1977_v48 = vmul.f32 %v1974_v42, %v1957_v25  ;;  %v1982_v50 = vmul.f32 0.7978846, %v1979_v47  ;;  %2935 = vtanh.f32 %v1984_v38 }
 0xb3b   : > { %v1980_v51 = vadd.f32 %v1977_v48, %v1957_v25  ;;  %2937 = vtanh.f32 %v1982_v50 }
 0xb3d   : > { %v1983_v52 = vmul.f32 0.7978846, %v1980_v51 }
 0xb3f   : > { %2939 = vtanh.f32 %v1983_v52 }
 0xb46   : > { %v2936_v53 = vpop.eup %2935 }
 0xb47   : > { %v1990_v55 = vadd.f32 1.0, %v2936_v53 }
 0xb48   : > { %v2938_v54 = vpop.eup %2937 }
 0xb49   : > { %v1988_v58 = vadd.f32 1.0, %v2938_v54  ;;  %v1993_v3 = vmul.f32 %v1990_v55, %v1969_v63 }
 0xb4b   : > { %v1991_v4 = vmul.f32 %v1988_v58, %v1967_v0  ;;  %v1995_v7 = vpack.c.bf16 %v1993_v3, %v1993_v3 }
 0xb4c   : > { %v2940_v62 = vpop.eup %2939 }
 0xb4d   : > { %v1989_v2 = vadd.f32 1.0, %v2940_v62 }
 0xb4f   : > { %v1992_v5 = vmul.f32 %v1989_v2, %v1968_v1 }
 0xb51   : > { %v1994_v6 = vpack.c.bf16 %v1992_v5, %v1991_v4 }
 0xb53   : > { %2743 = vmatprep.mubr.bf16.mxu0 %v1994_v6 }
 0xb54   : > { %2744 = vmatmul.mubr.bf16.vlgmr.msra.gmra.mxu0 %v1995_v7 }
 0xc14   : > { %v2745_v9 = vpop.f32.mrf.mxu0 }
 0xc15   : > { %v2110_v12 = vadd.f32 %v2745_v9, %v3441_v45 }
 0xc16   : > { %v2094_v13 = vpop.f32.mrf.mxu0 }
 0xc17   : > { %v2120_v15 = vadd.f32 %v2559_v10, %v2110_v12  ;;  %v2108_v16 = vadd.f32 %v2094_v13, %v3439_v29 }
 0xc18   : > { %v2746_v17 = vpop.f32.mrf.mxu0 }
 0xc19   : > { %2123 = vst.msk [vmem:[#allocation2 + $0x10] sm:$0xff] %vm798_vm1, %v2120_v15  ;;  %v2118_v18 = vadd.f32 %v2559_v10, %v2108_v16 }
 0xc1a   : > { %v2097_v8 = vpop.f32.mrf.mxu0 }
 0xc1b   : > { %2121 = vst.msk [vmem:[#allocation2] sm:$0xff] %vm798_vm1, %v2118_v18  ;;  %v2109_v19 = vadd.f32 %v2097_v8, %v3445_v33  ;;  %2127 = sbr.rel (%p2560_p8) target bundleno = 3537 (0xdd1), region = 100 }
 0xc1d   : > { %v2119_v14 = vadd.f32 %v2559_v10, %v2109_v19 }
 0xc1f   : > { %2122 = vst.msk [vmem:[#allocation2 + $0x8] sm:$0xff] %vm798_vm1, %v2119_v14 }
 0xc20   : > { %v2944_v45 = vld [vmem:[%s3613_s25 + $0x18] sm:$0xff]   ;;  %v3001_v29 = vmov 0.0   ;;  %v2945_v61 = vld [vmem:[%s3613_s25 + $0x10] sm:$0xff]   ;;  %vm3002_vm7 = vmmov 0   ;;  %v2131_v33 = vadd.s32 16, %v3225_v59  ;;  %v2138_v20 = vsel %vm798_vm1, %v2118_v18, 0.0 }
 0xc21   : > { %2747 = vmatprep.subr.bf16.mxu0 %v3001_v29  ;;  %2759 = vmatprep.subr.bf16.mxu1 %v3001_v29  ;;  %v2139_v57 = vsel %vm798_vm1, %v2119_v14, 0.0  ;;  %v2946_v22 = vld [vmem:[%s3613_s25 + $0x8] sm:$0xff]   ;;  %v2947_v40 = vld [vmem:[%s3613_s25] sm:$0xff]   ;;  %v2948_v35 = vld [vmem:[%s3614_s16 + $0x10] sm:$0xff]   ;;  %vm2301_vm9 = vcmask 64512  }
 0xc22   : > { %2748 = vmatpush3.bf16.msra.mxu0 %v2944_v45  ;;  %2755 = vmatprep.mubr.msk.bf16.mxu0 %vm3002_vm7, %v3001_v29  ;;  %vm2134_vm8 = vcmp.lt.s32.totalorder %v2131_v33, 19  ;;  %v2140_v56 = vadd.f32 %v2139_v57, %v2138_v20  ;;  %v2949_v36 = vld [vmem:[%s3614_s16 + $0x8] sm:$0xff]   ;;  %v2950_v37 = vld [vmem:[%s3614_s16] sm:$0xff]  }
 0xc23   : > { %2749 = vmatprep.subr.bf16.mxu0 %v3001_v29  ;;  %2765 = vmatprep.mubr.msk.bf16.mxu1 %vm3002_vm7, %v3001_v29  ;;  %v2137_v21 = vsel %vm2134_vm8, %v2120_v15, 0.0  ;;  %v2159_v39 = vld [vmem:[%s3615_s29] sm:$0x1] }
 0xc24   : > { %v2141_v23 = vsel %vm798_vm1, %v2137_v21, 0.0  ;;  %2760 = vmatpush3.bf16.msra.mxu1 %v2948_v35  ;;  %v2235_v42 = vld [vmem:[%s3616_s21] sm:$0x1] }
 0xc25   : > { %v2142_v24 = vadd.f32 %v2141_v23, %v2140_v56  ;;  %2761 = vmatprep.subr.bf16.mxu1 %v3001_v29 }
 0xc26   : > { %2750 = vmatpush3.bf16.msra.mxu0 %v2945_v61 }
 0xc27   : > { %2751 = vmatprep.subr.bf16.mxu0 %v3001_v29  ;;  %v2143_v26 = vrot.slane %v2142_v24, 4 }
 0xc28   : > { %2762 = vmatpush3.bf16.msra.mxu1 %v2949_v36 }
 0xc29   : > { %v2144_v27 = vadd.f32 %v2143_v26, %v2142_v24  ;;  %2763 = vmatprep.subr.bf16.mxu1 %v3001_v29 }
 0xc2a   : > { %2752 = vmatpush3.bf16.msra.mxu0 %v2946_v22 }
 0xc2b   : > { %2753 = vmatprep.subr.bf16.mxu0 %v3001_v29  ;;  %v2145_v28 = vrot.slane %v2144_v27, 2 }
 0xc2c   : > { %2764 = vmatpush3.bf16.msra.mxu1 %v2950_v37 }
 0xc2d   : > { %v2146_v30 = vadd.f32 %v2145_v28, %v2144_v27 }
 0xc2e   : > { %2754 = vmatpush3.bf16.msra.mxu0 %v2947_v40 }
 0xc2f   : > { %v2147_v49 = vrot.slane %v2146_v30, 1 }
 0xc31   : > { %v2148_v31 = vadd.f32 %v2147_v49, %v2146_v30 }
 0xc33   : > { %v2149_v32 = vmul.f32 0.05263158, %v2148_v31 }
 0xc35   : > { %v2150_v34 = vpack.c.bf16 %v2149_v32, %v2149_v32 }
 0xc37   : > { %2756 = vmatmul.mubr.msk.bf16.vlgmr.msra.gmra.mxu0 %vm798_vm1, %v2150_v34 }
 0xcf7   : > { %v2221_v11 = vpop.f32.mrf.mxu0 }
 0xcf8   : > { %v2222_v41 = vadd.f32 %v2221_v11, %v2159_v39 }
 0xcf9   : > { %v2757_v25 = vpop.f32.mrf.mxu0 }
 0xcfa   : > { %2951 = vtanh.f32 %v2222_v41 }
 0xcfb   : > { %v2224_v43 = vpop.f32.mrf.mxu0 }
 0xcfd   : > { %v2758_v44 = vpop.f32.mrf.mxu0 }
 0xd07   : > { %v2952_v46 = vpop.eup %2951 }
 0xd08   : > { %v2228_v38 = vpack.c.bf16 %v2952_v46, %v2952_v46 }
 0xd0a   : > { %2766 = vmatmul.mubr.msk.bf16.vlgmr.msra.gmra.mxu1 %vm1708_vm6, %v2228_v38 }
 0xdca   : > { %v2291_v47 = vpop.f32.mrf.mxu1 }
 0xdcb   : > { %v2292_v48 = vadd.f32 %v2291_v47, %v2235_v42 }
 0xdcc   : > { %v2767_v50 = vpop.f32.mrf.mxu1 }
 0xdcd   : > { %v2300_v51 = vrot.slane %v2292_v48, %v871_v60 }
 0xdce   : > { %v2294_v52 = vpop.f32.mrf.mxu1 }
 0xdcf   : > { %2302 = vst.msk [vmem:[%s3196_s9] sm:$0xff] %vm2301_vm9, %v2300_v51 }
 0xdd0   : > { %v2768_v53 = vpop.f32.mrf.mxu1 }
 0xdd1 PF: > { %s3617_s20 = sld [smem:[#allocation6_spill]] }
 0xdd2   : > { %s3618_s27 = sld [smem:[#allocation4_spill]] }
 0xdd3   : > { %s3619_s28 = sld [smem:[#allocation5_spill]] }
 0xdd4   : > { %s3620_s29 = sld [smem:[#allocation7_spill]] }
 0xdd5   : > { %s3621_s30 = sld [smem:[#allocation8_spill]] }
 0xdd7   : > { %s28_s0 = sadd.s32 1, %s3617_s20  }
 0xdd8   : > { %p25_p9 = scmp.ge.s32.totalorder %s28_s0, 24  }
 0xdda   :  { %27 = sbr.rel (!%p25_p9) target bundleno = 14 (0xe), region = 166 }

</bundles_post_ra>
